<compile_context>
chip_gen: v7x
topology: tpu7x:2x2x1
jax: 0.10.0
libtpu: 0.0.40
codegen_flags: <defaults>
</compile_context>

<pallas_src>
import functools

import jax
import jax.numpy as jnp
from jax.experimental import pallas as pl
from jax.experimental.pallas import tpu as pltpu

# Small deterministic hyper-params consistent with the module structure.
VOCAB_SIZE = 65
N_EMBD = 64
N_HEAD = 4            # head_size = 16
N_LAYER = 2
BLOCK_SIZE = 16
LN_EPS = 1e-5
LOGIT_PAD = 128       # lm-head output padded to a lane-dense 128 columns
# TODO(synk): dropout (p=0.1) is implemented as identity (eval / inference mode).


# ----------------------------- fused Pallas kernel -----------------------------

def _fused_forward_kernel(x_ref,
                          ln1_g_ref, ln1_b_ref, wq_ref, wk_ref, wv_ref,
                          wproj_ref, bproj_ref, ln2_g_ref, ln2_b_ref,
                          wff1_ref, bff1_ref, wff2_ref, bff2_ref,
                          lnf_g_ref, lnf_b_ref, lmw_ref, lmb_ref,
                          o_ref, *, B, T):
    C = N_EMBD
    H = N_HEAD
    hs = C // H
    f32 = jnp.float32
    bf16 = jnp.bfloat16

    def layernorm(v, g, b):
        mu = jnp.mean(v, axis=-1, keepdims=True)
        var = jnp.mean((v - mu) ** 2, axis=-1, keepdims=True)
        return (v - mu) * jax.lax.rsqrt(var + LN_EPS) * g + b

    def mm(a, w):
        # bf16 MXU operands, f32 accumulation.
        return jnp.dot(a.astype(bf16), w.astype(bf16), preferred_element_type=f32)

    x = x_ref[...].astype(f32)                              # (B*T, C) resident in VMEM

    # Causal mask (key index > query index), built once and reused.
    q_idx = jax.lax.broadcasted_iota(jnp.int32, (B, T, T), 1)
    k_idx = jax.lax.broadcasted_iota(jnp.int32, (B, T, T), 2)
    causal = k_idx > q_idx
    scale = float(hs) ** 0.5                                # reference quirk: *multiply*

    for l in range(N_LAYER):
        # --- self-attention sub-block ---
        h = layernorm(x, ln1_g_ref[l], ln1_b_ref[l])
        hb = h.astype(bf16)
        sa = jnp.zeros((B * T, C), f32)
        for hd in range(H):
            q = jnp.dot(hb, wq_ref[l, hd].astype(bf16), preferred_element_type=f32)
            k = jnp.dot(hb, wk_ref[l, hd].astype(bf16), preferred_element_type=f32)
            v = jnp.dot(hb, wv_ref[l, hd].astype(bf16), preferred_element_type=f32)
            qb = q.reshape(B, T, hs)
            kb = k.reshape(B, T, hs)
            vb = v.reshape(B, T, hs)
            wei = jnp.einsum("bqd,bkd->bqk", qb.astype(bf16), kb.astype(bf16),
                             preferred_element_type=f32) * scale
            wei = jnp.where(causal, -jnp.inf, wei)
            # Reference quirk: softmax over the QUERY axis (torch dim=1).
            m = jnp.max(wei, axis=1, keepdims=True)
            e = jnp.exp(wei - m)
            p = e * pl.reciprocal(jnp.sum(e, axis=1, keepdims=True), approx=True)
            out_h = jnp.einsum("bqk,bkd->bqd", p.astype(bf16), vb.astype(bf16),
                               preferred_element_type=f32)   # (B, T, hs)
            # Head merge + output projection fused: concat(heads) @ Wp == sum_h out_h @ Wp[h]
            sa = sa + jnp.dot(out_h.reshape(B * T, hs).astype(bf16),
                              wproj_ref[l, hd].astype(bf16),
                              preferred_element_type=f32)
        x = x + sa + bproj_ref[l]                            # residual (dropout = identity)

        # --- feed-forward sub-block ---
        h2 = layernorm(x, ln2_g_ref[l], ln2_b_ref[l])
        ff = jnp.maximum(mm(h2, wff1_ref[l]) + bff1_ref[l], 0.0)
        x = x + mm(ff, wff2_ref[l]) + bff2_ref[l]            # residual (dropout = identity)

    xf = layernorm(x, lnf_g_ref[...], lnf_b_ref[...])
    o_ref[...] = (mm(xf, lmw_ref[...]) + lmb_ref[...]).astype(o_ref.dtype)


def _fused_forward(x2, p, *, B, T):
    BT, C = x2.shape

    def full_spec(shape):
        r = len(shape)
        return pl.BlockSpec(shape, lambda i, _r=r: (0,) * _r)

    args = (x2,
            p["ln1_g"], p["ln1_b"], p["wq"], p["wk"], p["wv"],
            p["w_proj"], p["b_proj"], p["ln2_g"], p["ln2_b"],
            p["w_ff1"], p["b_ff1"], p["w_ff2"], p["b_ff2"],
            p["ln_f_g"], p["ln_f_b"], p["lm_w_pad"], p["lm_b_pad"])
    return pl.pallas_call(
        functools.partial(_fused_forward_kernel, B=B, T=T),
        out_shape=jax.ShapeDtypeStruct((BT, LOGIT_PAD), jnp.float32),
        grid=(1,),
        in_specs=[full_spec(a.shape) for a in args],
        out_specs=full_spec((BT, LOGIT_PAD)),
        compiler_params=pltpu.CompilerParams(dimension_semantics=("arbitrary",)),
    )(*args)


# ------------------------------ model glue ------------------------------

def init_params(key):
    C, H, L = N_EMBD, N_HEAD, N_LAYER
    hs = C // H
    keys = iter(jax.random.split(key, 32))

    def nrm(shape):
        return 0.02 * jax.random.normal(next(keys), shape, jnp.float32)

    lm_w = nrm((C, VOCAB_SIZE))
    return {
        "tok_emb": nrm((VOCAB_SIZE, C)),
        "pos_emb": nrm((BLOCK_SIZE, C)),
        "ln1_g": jnp.ones((L, 1, C), jnp.float32),
        "ln1_b": jnp.zeros((L, 1, C), jnp.float32),
        "ln2_g": jnp.ones((L, 1, C), jnp.float32),
        "ln2_b": jnp.zeros((L, 1, C), jnp.float32),
        # per-head query/key/value Linears (bias=False): (L, H, C, hs)
        "wq": jnp.stack([nrm((H, C, hs)) for _ in range(L)]),
        "wk": jnp.stack([nrm((H, C, hs)) for _ in range(L)]),
        "wv": jnp.stack([nrm((H, C, hs)) for _ in range(L)]),
        # output projection stored per head: (L, H, hs, C)
        "w_proj": jnp.stack([nrm((H, hs, C)) for _ in range(L)]),
        "b_proj": jnp.zeros((L, 1, C), jnp.float32),
        "w_ff1": jnp.stack([nrm((C, 4 * C)) for _ in range(L)]),
        "b_ff1": jnp.zeros((L, 1, 4 * C), jnp.float32),
        "w_ff2": jnp.stack([nrm((4 * C, C)) for _ in range(L)]),
        "b_ff2": jnp.zeros((L, 1, C), jnp.float32),
        "ln_f_g": jnp.ones((1, C), jnp.float32),
        "ln_f_b": jnp.zeros((1, C), jnp.float32),
        # lm head zero-padded 65 -> 128 output lanes (lane-dense store)
        "lm_w_pad": jnp.zeros((C, LOGIT_PAD), jnp.float32).at[:, :VOCAB_SIZE].set(lm_w),
        "lm_b_pad": jnp.zeros((1, LOGIT_PAD), jnp.float32),
    }


def bigram_lm_forward(params, idx):
    B, T = idx.shape
    C = N_EMBD
    # Embedding gather stays in XLA (HBM gather); everything else is one fused kernel.
    x = params["tok_emb"][idx] + params["pos_emb"][:T]      # (B, T, C)
    x2 = x.reshape(B * T, C)
    logits = _fused_forward(x2, params, B=B, T=T)           # (B*T, 128)
    logits = logits[:, :VOCAB_SIZE].reshape(B, T, VOCAB_SIZE)
    return logits, None                                     # (logits, loss=None)


# ------------------------- pure-JAX reference -------------------------

def reference_forward(params, idx):
    B, T = idx.shape
    C, H, L = N_EMBD, N_HEAD, N_LAYER
    hs = C // H

    def ln(x, g, b):
        mu = x.mean(-1, keepdims=True)
        var = ((x - mu) ** 2).mean(-1, keepdims=True)
        return (x - mu) / jnp.sqrt(var + LN_EPS) * g + b

    x = params["tok_emb"][idx] + params["pos_emb"][:T]
    mask = jnp.tril(jnp.ones((T, T))) == 0
    for l in range(L):
        h = ln(x, params["ln1_g"][l, 0], params["ln1_b"][l, 0])
        q = jnp.einsum("btc,hcd->bhtd", h, params["wq"][l])
        k = jnp.einsum("btc,hcd->bhtd", h, params["wk"][l])
        v = jnp.einsum("btc,hcd->bhtd", h, params["wv"][l])
        wei = jnp.einsum("bhqd,bhkd->bhqk", q, k) * hs ** 0.5
        wei = jnp.where(mask, -jnp.inf, wei)
        wei = jax.nn.softmax(wei, axis=2)                    # torch softmax(dim=1) quirk
        out = jnp.einsum("bhqk,bhkd->bhqd", wei, v)          # (B, H, T, hs)
        sa = jnp.einsum("bhtd,hdc->btc", out, params["w_proj"][l]) + params["b_proj"][l, 0]
        x = x + sa
        h2 = ln(x, params["ln2_g"][l, 0], params["ln2_b"][l, 0])
        ff = jnp.maximum(h2 @ params["w_ff1"][l] + params["b_ff1"][l, 0], 0.0)
        x = x + ff @ params["w_ff2"][l] + params["b_ff2"][l, 0]
    x = ln(x, params["ln_f_g"][0], params["ln_f_b"][0])
    logits = x @ params["lm_w_pad"] + params["lm_b_pad"][0]
    return logits[..., :VOCAB_SIZE]


if __name__ == "__main__":
    key = jax.random.PRNGKey(0)
    pkey, dkey = jax.random.split(key)
    params = init_params(pkey)

    B, T = 2, 8                                              # T <= BLOCK_SIZE
    idx = jax.random.randint(dkey, (B, T), 0, VOCAB_SIZE, dtype=jnp.int32)

    logits, loss = jax.jit(bigram_lm_forward)(params, idx)
    logits = jax.block_until_ready(logits)

    ref = reference_forward(params, idx)
    assert logits.shape == (B, T, VOCAB_SIZE)
    assert loss is None
    assert bool(jnp.allclose(logits, ref, atol=1e-2, rtol=1e-2))
    print("KERNEL_OK")
</pallas_src>

<mosaic_0001>
module attributes {stable_mosaic.version = 11 : i64} {
  func.func @_fused_forward_kernel(%arg0: i32, %arg1: memref<16x64xf32, #tpu.memory_space<vmem>>, %arg2: memref<2x1x64xf32, #tpu.memory_space<vmem>>, %arg3: memref<2x1x64xf32, #tpu.memory_space<vmem>>, %arg4: memref<2x4x64x16xf32, #tpu.memory_space<vmem>>, %arg5: memref<2x4x64x16xf32, #tpu.memory_space<vmem>>, %arg6: memref<2x4x64x16xf32, #tpu.memory_space<vmem>>, %arg7: memref<2x4x16x64xf32, #tpu.memory_space<vmem>>, %arg8: memref<2x1x64xf32, #tpu.memory_space<vmem>>, %arg9: memref<2x1x64xf32, #tpu.memory_space<vmem>>, %arg10: memref<2x1x64xf32, #tpu.memory_space<vmem>>, %arg11: memref<2x64x256xf32, #tpu.memory_space<vmem>>, %arg12: memref<2x1x256xf32, #tpu.memory_space<vmem>>, %arg13: memref<2x256x64xf32, #tpu.memory_space<vmem>>, %arg14: memref<2x1x64xf32, #tpu.memory_space<vmem>>, %arg15: memref<1x64xf32, #tpu.memory_space<vmem>>, %arg16: memref<1x64xf32, #tpu.memory_space<vmem>>, %arg17: memref<64x128xf32, #tpu.memory_space<vmem>>, %arg18: memref<1x128xf32, #tpu.memory_space<vmem>>, %arg19: memref<16x128xf32, #tpu.memory_space<vmem>>) attributes {dimension_semantics = [#tpu.dimension_semantics<arbitrary>], iteration_bounds = array<i64: 1>, scalar_prefetch = 0 : i64, scratch_operands = 0 : i64, tpu.core_type = #tpu.core_type<tc>, window_params = [{pipeline_mode = #tpu.pipeline_mode<synchronous>, transform_indices = @transform_0, window_bounds = array<i64: 16, 64>}, {pipeline_mode = #tpu.pipeline_mode<synchronous>, transform_indices = @transform_1, window_bounds = array<i64: 2, 1, 64>}, {pipeline_mode = #tpu.pipeline_mode<synchronous>, transform_indices = @transform_2, window_bounds = array<i64: 2, 1, 64>}, {pipeline_mode = #tpu.pipeline_mode<synchronous>, transform_indices = @transform_3, window_bounds = array<i64: 2, 4, 64, 16>}, {pipeline_mode = #tpu.pipeline_mode<synchronous>, transform_indices = @transform_4, window_bounds = array<i64: 2, 4, 64, 16>}, {pipeline_mode = #tpu.pipeline_mode<synchronous>, transform_indices = @transform_5, window_bounds = array<i64: 2, 4, 64, 16>}, {pipeline_mode = #tpu.pipeline_mode<synchronous>, transform_indices = @transform_6, window_bounds = array<i64: 2, 4, 16, 64>}, {pipeline_mode = #tpu.pipeline_mode<synchronous>, transform_indices = @transform_7, window_bounds = array<i64: 2, 1, 64>}, {pipeline_mode = #tpu.pipeline_mode<synchronous>, transform_indices = @transform_8, window_bounds = array<i64: 2, 1, 64>}, {pipeline_mode = #tpu.pipeline_mode<synchronous>, transform_indices = @transform_9, window_bounds = array<i64: 2, 1, 64>}, {pipeline_mode = #tpu.pipeline_mode<synchronous>, transform_indices = @transform_10, window_bounds = array<i64: 2, 64, 256>}, {pipeline_mode = #tpu.pipeline_mode<synchronous>, transform_indices = @transform_11, window_bounds = array<i64: 2, 1, 256>}, {pipeline_mode = #tpu.pipeline_mode<synchronous>, transform_indices = @transform_12, window_bounds = array<i64: 2, 256, 64>}, {pipeline_mode = #tpu.pipeline_mode<synchronous>, transform_indices = @transform_13, window_bounds = array<i64: 2, 1, 64>}, {pipeline_mode = #tpu.pipeline_mode<synchronous>, transform_indices = @transform_14, window_bounds = array<i64: 1, 64>}, {pipeline_mode = #tpu.pipeline_mode<synchronous>, transform_indices = @transform_15, window_bounds = array<i64: 1, 64>}, {pipeline_mode = #tpu.pipeline_mode<synchronous>, transform_indices = @transform_16, window_bounds = array<i64: 64, 128>}, {pipeline_mode = #tpu.pipeline_mode<synchronous>, transform_indices = @transform_17, window_bounds = array<i64: 1, 128>}, {pipeline_mode = #tpu.pipeline_mode<synchronous>, transform_indices = @transform_18, window_bounds = array<i64: 16, 128>}]} {
    %c0 = arith.constant 0 : index
    %c0_0 = arith.constant 0 : index
    %0 = vector.load %arg1[%c0, %c0_0] : memref<16x64xf32, #tpu.memory_space<vmem>>, vector<16x64xf32>
    %1 = tpu.iota {dimensions = array<i32: 1>} : vector<2x8x8xi32>
    %2 = tpu.iota {dimensions = array<i32: 2>} : vector<2x8x8xi32>
    %3 = arith.cmpi sgt, %2, %1 : vector<2x8x8xi32>
    %c0_1 = arith.constant 0 : index
    %c0_2 = arith.constant 0 : index
    %c0_3 = arith.constant 0 : index
    %4 = vector.load %arg2[%c0_1, %c0_2, %c0_3] : memref<2x1x64xf32, #tpu.memory_space<vmem>>, vector<1x1x64xf32>
    %5 = vector.shape_cast %4 : vector<1x1x64xf32> to vector<1x64xf32>
    %c0_4 = arith.constant 0 : index
    %c0_5 = arith.constant 0 : index
    %c0_6 = arith.constant 0 : index
    %6 = vector.load %arg3[%c0_4, %c0_5, %c0_6] : memref<2x1x64xf32, #tpu.memory_space<vmem>>, vector<1x1x64xf32>
    %7 = vector.shape_cast %6 : vector<1x1x64xf32> to vector<1x64xf32>
    %cst = arith.constant dense<0.000000e+00> : vector<16xf32>
    %8 = vector.multi_reduction <add>, %0, %cst [1] : vector<16x64xf32> to vector<16xf32>
    %9 = vector.shape_cast %8 : vector<16xf32> to vector<16x1xf32>
    %cst_7 = arith.constant 6.400000e+01 : f32
    %10 = vector.broadcast %cst_7 : f32 to vector<16x1xf32>
    %11 = arith.divf %9, %10 : vector<16x1xf32>
    %12 = vector.broadcast %11 : vector<16x1xf32> to vector<16x64xf32>
    %13 = arith.subf %0, %12 : vector<16x64xf32>
    %14 = arith.mulf %13, %13 : vector<16x64xf32>
    %cst_8 = arith.constant dense<0.000000e+00> : vector<16xf32>
    %15 = vector.multi_reduction <add>, %14, %cst_8 [1] : vector<16x64xf32> to vector<16xf32>
    %16 = vector.shape_cast %15 : vector<16xf32> to vector<16x1xf32>
    %cst_9 = arith.constant 6.400000e+01 : f32
    %17 = vector.broadcast %cst_9 : f32 to vector<16x1xf32>
    %18 = arith.divf %16, %17 : vector<16x1xf32>
    %19 = vector.broadcast %11 : vector<16x1xf32> to vector<16x64xf32>
    %20 = arith.subf %0, %19 : vector<16x64xf32>
    %cst_10 = arith.constant 9.99999974E-6 : f32
    %21 = vector.broadcast %cst_10 : f32 to vector<16x1xf32>
    %22 = arith.addf %18, %21 : vector<16x1xf32>
    %23 = math.rsqrt %22 : vector<16x1xf32>
    %24 = vector.broadcast %23 : vector<16x1xf32> to vector<16x64xf32>
    %25 = arith.mulf %20, %24 : vector<16x64xf32>
    %26 = vector.broadcast %5 : vector<1x64xf32> to vector<16x64xf32>
    %27 = arith.mulf %25, %26 : vector<16x64xf32>
    %28 = vector.broadcast %7 : vector<1x64xf32> to vector<16x64xf32>
    %29 = arith.addf %27, %28 : vector<16x64xf32>
    %30 = arith.truncf %29 : vector<16x64xf32> to vector<16x64xbf16>
    %cst_11 = arith.constant 0.000000e+00 : f32
    %31 = vector.broadcast %cst_11 : f32 to vector<16x64xf32>
    %c0_12 = arith.constant 0 : index
    %c0_13 = arith.constant 0 : index
    %c0_14 = arith.constant 0 : index
    %c0_15 = arith.constant 0 : index
    %32 = vector.load %arg4[%c0_12, %c0_13, %c0_14, %c0_15] : memref<2x4x64x16xf32, #tpu.memory_space<vmem>>, vector<1x1x64x16xf32>
    %33 = vector.shape_cast %32 : vector<1x1x64x16xf32> to vector<64x16xf32>
    %34 = arith.truncf %33 : vector<64x16xf32> to vector<64x16xbf16>
    %cst_16 = arith.constant dense<0.000000e+00> : vector<16x16xf32>
    %35 = tpu.matmul %30, %34, %cst_16 {dimension_numbers = #tpu.dot_dimension_numbers<[1], [0], [0], [1], [0, 0, 1, 1], [], []>} : vector<16x64xbf16>, vector<64x16xbf16>, vector<16x16xf32> -> vector<16x16xf32>
    %c0_17 = arith.constant 0 : index
    %c0_18 = arith.constant 0 : index
    %c0_19 = arith.constant 0 : index
    %c0_20 = arith.constant 0 : index
    %36 = vector.load %arg5[%c0_17, %c0_18, %c0_19, %c0_20] : memref<2x4x64x16xf32, #tpu.memory_space<vmem>>, vector<1x1x64x16xf32>
    %37 = vector.shape_cast %36 : vector<1x1x64x16xf32> to vector<64x16xf32>
    %38 = arith.truncf %37 : vector<64x16xf32> to vector<64x16xbf16>
    %cst_21 = arith.constant dense<0.000000e+00> : vector<16x16xf32>
    %39 = tpu.matmul %30, %38, %cst_21 {dimension_numbers = #tpu.dot_dimension_numbers<[1], [0], [0], [1], [0, 0, 1, 1], [], []>} : vector<16x64xbf16>, vector<64x16xbf16>, vector<16x16xf32> -> vector<16x16xf32>
    %c0_22 = arith.constant 0 : index
    %c0_23 = arith.constant 0 : index
    %c0_24 = arith.constant 0 : index
    %c0_25 = arith.constant 0 : index
    %40 = vector.load %arg6[%c0_22, %c0_23, %c0_24, %c0_25] : memref<2x4x64x16xf32, #tpu.memory_space<vmem>>, vector<1x1x64x16xf32>
    %41 = vector.shape_cast %40 : vector<1x1x64x16xf32> to vector<64x16xf32>
    %42 = arith.truncf %41 : vector<64x16xf32> to vector<64x16xbf16>
    %cst_26 = arith.constant dense<0.000000e+00> : vector<16x16xf32>
    %43 = tpu.matmul %30, %42, %cst_26 {dimension_numbers = #tpu.dot_dimension_numbers<[1], [0], [0], [1], [0, 0, 1, 1], [], []>} : vector<16x64xbf16>, vector<64x16xbf16>, vector<16x16xf32> -> vector<16x16xf32>
    %44 = vector.shape_cast %35 : vector<16x16xf32> to vector<2x8x16xf32>
    %45 = vector.shape_cast %39 : vector<16x16xf32> to vector<2x8x16xf32>
    %46 = vector.shape_cast %43 : vector<16x16xf32> to vector<2x8x16xf32>
    %47 = arith.truncf %44 : vector<2x8x16xf32> to vector<2x8x16xbf16>
    %48 = arith.truncf %45 : vector<2x8x16xf32> to vector<2x8x16xbf16>
    "tpu.trace_start"() <{level = 10 : i32, message = "bqd,bkd->bqk"}> : () -> ()
    %cst_27 = arith.constant dense<0.000000e+00> : vector<2x8x8xf32>
    %49 = tpu.matmul %47, %48, %cst_27 {dimension_numbers = #tpu.dot_dimension_numbers<[2], [2], [1], [1], [0, 0, 0, 1, 1, 1], [0], [0]>} : vector<2x8x16xbf16>, vector<2x8x16xbf16>, vector<2x8x8xf32> -> vector<2x8x8xf32>
    "tpu.trace_stop"() : () -> ()
    %cst_28 = arith.constant 4.000000e+00 : f32
    %50 = vector.broadcast %cst_28 : f32 to vector<2x8x8xf32>
    %51 = arith.mulf %49, %50 : vector<2x8x8xf32>
    %cst_29 = arith.constant 0xFF800000 : f32
    %52 = vector.broadcast %cst_29 : f32 to vector<2x8x8xf32>
    %53 = arith.select %3, %52, %51 : vector<2x8x8xi1>, vector<2x8x8xf32>
    %cst_30 = arith.constant dense<0xFF800000> : vector<2x8xf32>
    %54 = vector.multi_reduction <maximumf>, %53, %cst_30 [1] : vector<2x8x8xf32> to vector<2x8xf32>
    %55 = vector.shape_cast %54 : vector<2x8xf32> to vector<2x1x8xf32>
    %56 = vector.broadcast %55 : vector<2x1x8xf32> to vector<2x8x8xf32>
    %57 = arith.subf %53, %56 : vector<2x8x8xf32>
    %58 = math.exp %57 : vector<2x8x8xf32>
    %cst_31 = arith.constant dense<0.000000e+00> : vector<2x8xf32>
    %59 = vector.multi_reduction <add>, %58, %cst_31 [1] : vector<2x8x8xf32> to vector<2x8xf32>
    %60 = vector.shape_cast %59 : vector<2x8xf32> to vector<2x1x8xf32>
    %61 = tpu.reciprocal %60 {approx = true} : vector<2x1x8xf32> -> vector<2x1x8xf32>
    %62 = vector.broadcast %61 : vector<2x1x8xf32> to vector<2x8x8xf32>
    %63 = arith.mulf %58, %62 : vector<2x8x8xf32>
    %64 = arith.truncf %63 : vector<2x8x8xf32> to vector<2x8x8xbf16>
    %65 = arith.truncf %46 : vector<2x8x16xf32> to vector<2x8x16xbf16>
    "tpu.trace_start"() <{level = 10 : i32, message = "bqk,bkd->bqd"}> : () -> ()
    %cst_32 = arith.constant dense<0.000000e+00> : vector<2x8x16xf32>
    %66 = tpu.matmul %64, %65, %cst_32 {dimension_numbers = #tpu.dot_dimension_numbers<[2], [1], [1], [2], [0, 0, 0, 1, 1, 2], [0], [0]>} : vector<2x8x8xbf16>, vector<2x8x16xbf16>, vector<2x8x16xf32> -> vector<2x8x16xf32>
    "tpu.trace_stop"() : () -> ()
    %67 = vector.shape_cast %66 : vector<2x8x16xf32> to vector<16x16xf32>
    %68 = arith.truncf %67 : vector<16x16xf32> to vector<16x16xbf16>
    %c0_33 = arith.constant 0 : index
    %c0_34 = arith.constant 0 : index
    %c0_35 = arith.constant 0 : index
    %c0_36 = arith.constant 0 : index
    %69 = vector.load %arg7[%c0_33, %c0_34, %c0_35, %c0_36] : memref<2x4x16x64xf32, #tpu.memory_space<vmem>>, vector<1x1x16x64xf32>
    %70 = vector.shape_cast %69 : vector<1x1x16x64xf32> to vector<16x64xf32>
    %71 = arith.truncf %70 : vector<16x64xf32> to vector<16x64xbf16>
    %cst_37 = arith.constant dense<0.000000e+00> : vector<16x64xf32>
    %72 = tpu.matmul %68, %71, %cst_37 {dimension_numbers = #tpu.dot_dimension_numbers<[1], [0], [0], [1], [0, 0, 1, 1], [], []>} : vector<16x16xbf16>, vector<16x64xbf16>, vector<16x64xf32> -> vector<16x64xf32>
    %73 = arith.addf %31, %72 : vector<16x64xf32>
    %c0_38 = arith.constant 0 : index
    %c1 = arith.constant 1 : index
    %c0_39 = arith.constant 0 : index
    %c0_40 = arith.constant 0 : index
    %74 = vector.load %arg4[%c0_38, %c1, %c0_39, %c0_40] : memref<2x4x64x16xf32, #tpu.memory_space<vmem>>, vector<1x1x64x16xf32>
    %75 = vector.shape_cast %74 : vector<1x1x64x16xf32> to vector<64x16xf32>
    %76 = arith.truncf %75 : vector<64x16xf32> to vector<64x16xbf16>
    %cst_41 = arith.constant dense<0.000000e+00> : vector<16x16xf32>
    %77 = tpu.matmul %30, %76, %cst_41 {dimension_numbers = #tpu.dot_dimension_numbers<[1], [0], [0], [1], [0, 0, 1, 1], [], []>} : vector<16x64xbf16>, vector<64x16xbf16>, vector<16x16xf32> -> vector<16x16xf32>
    %c0_42 = arith.constant 0 : index
    %c1_43 = arith.constant 1 : index
    %c0_44 = arith.constant 0 : index
    %c0_45 = arith.constant 0 : index
    %78 = vector.load %arg5[%c0_42, %c1_43, %c0_44, %c0_45] : memref<2x4x64x16xf32, #tpu.memory_space<vmem>>, vector<1x1x64x16xf32>
    %79 = vector.shape_cast %78 : vector<1x1x64x16xf32> to vector<64x16xf32>
    %80 = arith.truncf %79 : vector<64x16xf32> to vector<64x16xbf16>
    %cst_46 = arith.constant dense<0.000000e+00> : vector<16x16xf32>
    %81 = tpu.matmul %30, %80, %cst_46 {dimension_numbers = #tpu.dot_dimension_numbers<[1], [0], [0], [1], [0, 0, 1, 1], [], []>} : vector<16x64xbf16>, vector<64x16xbf16>, vector<16x16xf32> -> vector<16x16xf32>
    %c0_47 = arith.constant 0 : index
    %c1_48 = arith.constant 1 : index
    %c0_49 = arith.constant 0 : index
    %c0_50 = arith.constant 0 : index
    %82 = vector.load %arg6[%c0_47, %c1_48, %c0_49, %c0_50] : memref<2x4x64x16xf32, #tpu.memory_space<vmem>>, vector<1x1x64x16xf32>
    %83 = vector.shape_cast %82 : vector<1x1x64x16xf32> to vector<64x16xf32>
    %84 = arith.truncf %83 : vector<64x16xf32> to vector<64x16xbf16>
    %cst_51 = arith.constant dense<0.000000e+00> : vector<16x16xf32>
    %85 = tpu.matmul %30, %84, %cst_51 {dimension_numbers = #tpu.dot_dimension_numbers<[1], [0], [0], [1], [0, 0, 1, 1], [], []>} : vector<16x64xbf16>, vector<64x16xbf16>, vector<16x16xf32> -> vector<16x16xf32>
    %86 = vector.shape_cast %77 : vector<16x16xf32> to vector<2x8x16xf32>
    %87 = vector.shape_cast %81 : vector<16x16xf32> to vector<2x8x16xf32>
    %88 = vector.shape_cast %85 : vector<16x16xf32> to vector<2x8x16xf32>
    %89 = arith.truncf %86 : vector<2x8x16xf32> to vector<2x8x16xbf16>
    %90 = arith.truncf %87 : vector<2x8x16xf32> to vector<2x8x16xbf16>
    "tpu.trace_start"() <{level = 10 : i32, message = "bqd,bkd->bqk"}> : () -> ()
    %cst_52 = arith.constant dense<0.000000e+00> : vector<2x8x8xf32>
    %91 = tpu.matmul %89, %90, %cst_52 {dimension_numbers = #tpu.dot_dimension_numbers<[2], [2], [1], [1], [0, 0, 0, 1, 1, 1], [0], [0]>} : vector<2x8x16xbf16>, vector<2x8x16xbf16>, vector<2x8x8xf32> -> vector<2x8x8xf32>
    "tpu.trace_stop"() : () -> ()
    %cst_53 = arith.constant 4.000000e+00 : f32
    %92 = vector.broadcast %cst_53 : f32 to vector<2x8x8xf32>
    %93 = arith.mulf %91, %92 : vector<2x8x8xf32>
    %cst_54 = arith.constant 0xFF800000 : f32
    %94 = vector.broadcast %cst_54 : f32 to vector<2x8x8xf32>
    %95 = arith.select %3, %94, %93 : vector<2x8x8xi1>, vector<2x8x8xf32>
    %cst_55 = arith.constant dense<0xFF800000> : vector<2x8xf32>
    %96 = vector.multi_reduction <maximumf>, %95, %cst_55 [1] : vector<2x8x8xf32> to vector<2x8xf32>
    %97 = vector.shape_cast %96 : vector<2x8xf32> to vector<2x1x8xf32>
    %98 = vector.broadcast %97 : vector<2x1x8xf32> to vector<2x8x8xf32>
    %99 = arith.subf %95, %98 : vector<2x8x8xf32>
    %100 = math.exp %99 : vector<2x8x8xf32>
    %cst_56 = arith.constant dense<0.000000e+00> : vector<2x8xf32>
    %101 = vector.multi_reduction <add>, %100, %cst_56 [1] : vector<2x8x8xf32> to vector<2x8xf32>
    %102 = vector.shape_cast %101 : vector<2x8xf32> to vector<2x1x8xf32>
    %103 = tpu.reciprocal %102 {approx = true} : vector<2x1x8xf32> -> vector<2x1x8xf32>
    %104 = vector.broadcast %103 : vector<2x1x8xf32> to vector<2x8x8xf32>
    %105 = arith.mulf %100, %104 : vector<2x8x8xf32>
    %106 = arith.truncf %105 : vector<2x8x8xf32> to vector<2x8x8xbf16>
    %107 = arith.truncf %88 : vector<2x8x16xf32> to vector<2x8x16xbf16>
    "tpu.trace_start"() <{level = 10 : i32, message = "bqk,bkd->bqd"}> : () -> ()
    %cst_57 = arith.constant dense<0.000000e+00> : vector<2x8x16xf32>
    %108 = tpu.matmul %106, %107, %cst_57 {dimension_numbers = #tpu.dot_dimension_numbers<[2], [1], [1], [2], [0, 0, 0, 1, 1, 2], [0], [0]>} : vector<2x8x8xbf16>, vector<2x8x16xbf16>, vector<2x8x16xf32> -> vector<2x8x16xf32>
    "tpu.trace_stop"() : () -> ()
    %109 = vector.shape_cast %108 : vector<2x8x16xf32> to vector<16x16xf32>
    %110 = arith.truncf %109 : vector<16x16xf32> to vector<16x16xbf16>
    %c0_58 = arith.constant 0 : index
    %c1_59 = arith.constant 1 : index
    %c0_60 = arith.constant 0 : index
    %c0_61 = arith.constant 0 : index
    %111 = vector.load %arg7[%c0_58, %c1_59, %c0_60, %c0_61] : memref<2x4x16x64xf32, #tpu.memory_space<vmem>>, vector<1x1x16x64xf32>
    %112 = vector.shape_cast %111 : vector<1x1x16x64xf32> to vector<16x64xf32>
    %113 = arith.truncf %112 : vector<16x64xf32> to vector<16x64xbf16>
    %cst_62 = arith.constant dense<0.000000e+00> : vector<16x64xf32>
    %114 = tpu.matmul %110, %113, %cst_62 {dimension_numbers = #tpu.dot_dimension_numbers<[1], [0], [0], [1], [0, 0, 1, 1], [], []>} : vector<16x16xbf16>, vector<16x64xbf16>, vector<16x64xf32> -> vector<16x64xf32>
    %115 = arith.addf %73, %114 : vector<16x64xf32>
    %c0_63 = arith.constant 0 : index
    %c2 = arith.constant 2 : index
    %c0_64 = arith.constant 0 : index
    %c0_65 = arith.constant 0 : index
    %116 = vector.load %arg4[%c0_63, %c2, %c0_64, %c0_65] : memref<2x4x64x16xf32, #tpu.memory_space<vmem>>, vector<1x1x64x16xf32>
    %117 = vector.shape_cast %116 : vector<1x1x64x16xf32> to vector<64x16xf32>
    %118 = arith.truncf %117 : vector<64x16xf32> to vector<64x16xbf16>
    %cst_66 = arith.constant dense<0.000000e+00> : vector<16x16xf32>
    %119 = tpu.matmul %30, %118, %cst_66 {dimension_numbers = #tpu.dot_dimension_numbers<[1], [0], [0], [1], [0, 0, 1, 1], [], []>} : vector<16x64xbf16>, vector<64x16xbf16>, vector<16x16xf32> -> vector<16x16xf32>
    %c0_67 = arith.constant 0 : index
    %c2_68 = arith.constant 2 : index
    %c0_69 = arith.constant 0 : index
    %c0_70 = arith.constant 0 : index
    %120 = vector.load %arg5[%c0_67, %c2_68, %c0_69, %c0_70] : memref<2x4x64x16xf32, #tpu.memory_space<vmem>>, vector<1x1x64x16xf32>
    %121 = vector.shape_cast %120 : vector<1x1x64x16xf32> to vector<64x16xf32>
    %122 = arith.truncf %121 : vector<64x16xf32> to vector<64x16xbf16>
    %cst_71 = arith.constant dense<0.000000e+00> : vector<16x16xf32>
    %123 = tpu.matmul %30, %122, %cst_71 {dimension_numbers = #tpu.dot_dimension_numbers<[1], [0], [0], [1], [0, 0, 1, 1], [], []>} : vector<16x64xbf16>, vector<64x16xbf16>, vector<16x16xf32> -> vector<16x16xf32>
    %c0_72 = arith.constant 0 : index
    %c2_73 = arith.constant 2 : index
    %c0_74 = arith.constant 0 : index
    %c0_75 = arith.constant 0 : index
    %124 = vector.load %arg6[%c0_72, %c2_73, %c0_74, %c0_75] : memref<2x4x64x16xf32, #tpu.memory_space<vmem>>, vector<1x1x64x16xf32>
    %125 = vector.shape_cast %124 : vector<1x1x64x16xf32> to vector<64x16xf32>
    %126 = arith.truncf %125 : vector<64x16xf32> to vector<64x16xbf16>
    %cst_76 = arith.constant dense<0.000000e+00> : vector<16x16xf32>
    %127 = tpu.matmul %30, %126, %cst_76 {dimension_numbers = #tpu.dot_dimension_numbers<[1], [0], [0], [1], [0, 0, 1, 1], [], []>} : vector<16x64xbf16>, vector<64x16xbf16>, vector<16x16xf32> -> vector<16x16xf32>
    %128 = vector.shape_cast %119 : vector<16x16xf32> to vector<2x8x16xf32>
    %129 = vector.shape_cast %123 : vector<16x16xf32> to vector<2x8x16xf32>
    %130 = vector.shape_cast %127 : vector<16x16xf32> to vector<2x8x16xf32>
    %131 = arith.truncf %128 : vector<2x8x16xf32> to vector<2x8x16xbf16>
    %132 = arith.truncf %129 : vector<2x8x16xf32> to vector<2x8x16xbf16>
    "tpu.trace_start"() <{level = 10 : i32, message = "bqd,bkd->bqk"}> : () -> ()
    %cst_77 = arith.constant dense<0.000000e+00> : vector<2x8x8xf32>
    %133 = tpu.matmul %131, %132, %cst_77 {dimension_numbers = #tpu.dot_dimension_numbers<[2], [2], [1], [1], [0, 0, 0, 1, 1, 1], [0], [0]>} : vector<2x8x16xbf16>, vector<2x8x16xbf16>, vector<2x8x8xf32> -> vector<2x8x8xf32>
    "tpu.trace_stop"() : () -> ()
    %cst_78 = arith.constant 4.000000e+00 : f32
    %134 = vector.broadcast %cst_78 : f32 to vector<2x8x8xf32>
    %135 = arith.mulf %133, %134 : vector<2x8x8xf32>
    %cst_79 = arith.constant 0xFF800000 : f32
    %136 = vector.broadcast %cst_79 : f32 to vector<2x8x8xf32>
    %137 = arith.select %3, %136, %135 : vector<2x8x8xi1>, vector<2x8x8xf32>
    %cst_80 = arith.constant dense<0xFF800000> : vector<2x8xf32>
    %138 = vector.multi_reduction <maximumf>, %137, %cst_80 [1] : vector<2x8x8xf32> to vector<2x8xf32>
    %139 = vector.shape_cast %138 : vector<2x8xf32> to vector<2x1x8xf32>
    %140 = vector.broadcast %139 : vector<2x1x8xf32> to vector<2x8x8xf32>
    %141 = arith.subf %137, %140 : vector<2x8x8xf32>
    %142 = math.exp %141 : vector<2x8x8xf32>
    %cst_81 = arith.constant dense<0.000000e+00> : vector<2x8xf32>
    %143 = vector.multi_reduction <add>, %142, %cst_81 [1] : vector<2x8x8xf32> to vector<2x8xf32>
    %144 = vector.shape_cast %143 : vector<2x8xf32> to vector<2x1x8xf32>
    %145 = tpu.reciprocal %144 {approx = true} : vector<2x1x8xf32> -> vector<2x1x8xf32>
    %146 = vector.broadcast %145 : vector<2x1x8xf32> to vector<2x8x8xf32>
    %147 = arith.mulf %142, %146 : vector<2x8x8xf32>
    %148 = arith.truncf %147 : vector<2x8x8xf32> to vector<2x8x8xbf16>
    %149 = arith.truncf %130 : vector<2x8x16xf32> to vector<2x8x16xbf16>
    "tpu.trace_start"() <{level = 10 : i32, message = "bqk,bkd->bqd"}> : () -> ()
    %cst_82 = arith.constant dense<0.000000e+00> : vector<2x8x16xf32>
    %150 = tpu.matmul %148, %149, %cst_82 {dimension_numbers = #tpu.dot_dimension_numbers<[2], [1], [1], [2], [0, 0, 0, 1, 1, 2], [0], [0]>} : vector<2x8x8xbf16>, vector<2x8x16xbf16>, vector<2x8x16xf32> -> vector<2x8x16xf32>
    "tpu.trace_stop"() : () -> ()
    %151 = vector.shape_cast %150 : vector<2x8x16xf32> to vector<16x16xf32>
    %152 = arith.truncf %151 : vector<16x16xf32> to vector<16x16xbf16>
    %c0_83 = arith.constant 0 : index
    %c2_84 = arith.constant 2 : index
    %c0_85 = arith.constant 0 : index
    %c0_86 = arith.constant 0 : index
    %153 = vector.load %arg7[%c0_83, %c2_84, %c0_85, %c0_86] : memref<2x4x16x64xf32, #tpu.memory_space<vmem>>, vector<1x1x16x64xf32>
    %154 = vector.shape_cast %153 : vector<1x1x16x64xf32> to vector<16x64xf32>
    %155 = arith.truncf %154 : vector<16x64xf32> to vector<16x64xbf16>
    %cst_87 = arith.constant dense<0.000000e+00> : vector<16x64xf32>
    %156 = tpu.matmul %152, %155, %cst_87 {dimension_numbers = #tpu.dot_dimension_numbers<[1], [0], [0], [1], [0, 0, 1, 1], [], []>} : vector<16x16xbf16>, vector<16x64xbf16>, vector<16x64xf32> -> vector<16x64xf32>
    %157 = arith.addf %115, %156 : vector<16x64xf32>
    %c0_88 = arith.constant 0 : index
    %c3 = arith.constant 3 : index
    %c0_89 = arith.constant 0 : index
    %c0_90 = arith.constant 0 : index
    %158 = vector.load %arg4[%c0_88, %c3, %c0_89, %c0_90] : memref<2x4x64x16xf32, #tpu.memory_space<vmem>>, vector<1x1x64x16xf32>
    %159 = vector.shape_cast %158 : vector<1x1x64x16xf32> to vector<64x16xf32>
    %160 = arith.truncf %159 : vector<64x16xf32> to vector<64x16xbf16>
    %cst_91 = arith.constant dense<0.000000e+00> : vector<16x16xf32>
    %161 = tpu.matmul %30, %160, %cst_91 {dimension_numbers = #tpu.dot_dimension_numbers<[1], [0], [0], [1], [0, 0, 1, 1], [], []>} : vector<16x64xbf16>, vector<64x16xbf16>, vector<16x16xf32> -> vector<16x16xf32>
    %c0_92 = arith.constant 0 : index
    %c3_93 = arith.constant 3 : index
    %c0_94 = arith.constant 0 : index
    %c0_95 = arith.constant 0 : index
    %162 = vector.load %arg5[%c0_92, %c3_93, %c0_94, %c0_95] : memref<2x4x64x16xf32, #tpu.memory_space<vmem>>, vector<1x1x64x16xf32>
    %163 = vector.shape_cast %162 : vector<1x1x64x16xf32> to vector<64x16xf32>
    %164 = arith.truncf %163 : vector<64x16xf32> to vector<64x16xbf16>
    %cst_96 = arith.constant dense<0.000000e+00> : vector<16x16xf32>
    %165 = tpu.matmul %30, %164, %cst_96 {dimension_numbers = #tpu.dot_dimension_numbers<[1], [0], [0], [1], [0, 0, 1, 1], [], []>} : vector<16x64xbf16>, vector<64x16xbf16>, vector<16x16xf32> -> vector<16x16xf32>
    %c0_97 = arith.constant 0 : index
    %c3_98 = arith.constant 3 : index
    %c0_99 = arith.constant 0 : index
    %c0_100 = arith.constant 0 : index
    %166 = vector.load %arg6[%c0_97, %c3_98, %c0_99, %c0_100] : memref<2x4x64x16xf32, #tpu.memory_space<vmem>>, vector<1x1x64x16xf32>
    %167 = vector.shape_cast %166 : vector<1x1x64x16xf32> to vector<64x16xf32>
    %168 = arith.truncf %167 : vector<64x16xf32> to vector<64x16xbf16>
    %cst_101 = arith.constant dense<0.000000e+00> : vector<16x16xf32>
    %169 = tpu.matmul %30, %168, %cst_101 {dimension_numbers = #tpu.dot_dimension_numbers<[1], [0], [0], [1], [0, 0, 1, 1], [], []>} : vector<16x64xbf16>, vector<64x16xbf16>, vector<16x16xf32> -> vector<16x16xf32>
    %170 = vector.shape_cast %161 : vector<16x16xf32> to vector<2x8x16xf32>
    %171 = vector.shape_cast %165 : vector<16x16xf32> to vector<2x8x16xf32>
    %172 = vector.shape_cast %169 : vector<16x16xf32> to vector<2x8x16xf32>
    %173 = arith.truncf %170 : vector<2x8x16xf32> to vector<2x8x16xbf16>
    %174 = arith.truncf %171 : vector<2x8x16xf32> to vector<2x8x16xbf16>
    "tpu.trace_start"() <{level = 10 : i32, message = "bqd,bkd->bqk"}> : () -> ()
    %cst_102 = arith.constant dense<0.000000e+00> : vector<2x8x8xf32>
    %175 = tpu.matmul %173, %174, %cst_102 {dimension_numbers = #tpu.dot_dimension_numbers<[2], [2], [1], [1], [0, 0, 0, 1, 1, 1], [0], [0]>} : vector<2x8x16xbf16>, vector<2x8x16xbf16>, vector<2x8x8xf32> -> vector<2x8x8xf32>
    "tpu.trace_stop"() : () -> ()
    %cst_103 = arith.constant 4.000000e+00 : f32
    %176 = vector.broadcast %cst_103 : f32 to vector<2x8x8xf32>
    %177 = arith.mulf %175, %176 : vector<2x8x8xf32>
    %cst_104 = arith.constant 0xFF800000 : f32
    %178 = vector.broadcast %cst_104 : f32 to vector<2x8x8xf32>
    %179 = arith.select %3, %178, %177 : vector<2x8x8xi1>, vector<2x8x8xf32>
    %cst_105 = arith.constant dense<0xFF800000> : vector<2x8xf32>
    %180 = vector.multi_reduction <maximumf>, %179, %cst_105 [1] : vector<2x8x8xf32> to vector<2x8xf32>
    %181 = vector.shape_cast %180 : vector<2x8xf32> to vector<2x1x8xf32>
    %182 = vector.broadcast %181 : vector<2x1x8xf32> to vector<2x8x8xf32>
    %183 = arith.subf %179, %182 : vector<2x8x8xf32>
    %184 = math.exp %183 : vector<2x8x8xf32>
    %cst_106 = arith.constant dense<0.000000e+00> : vector<2x8xf32>
    %185 = vector.multi_reduction <add>, %184, %cst_106 [1] : vector<2x8x8xf32> to vector<2x8xf32>
    %186 = vector.shape_cast %185 : vector<2x8xf32> to vector<2x1x8xf32>
    %187 = tpu.reciprocal %186 {approx = true} : vector<2x1x8xf32> -> vector<2x1x8xf32>
    %188 = vector.broadcast %187 : vector<2x1x8xf32> to vector<2x8x8xf32>
    %189 = arith.mulf %184, %188 : vector<2x8x8xf32>
    %190 = arith.truncf %189 : vector<2x8x8xf32> to vector<2x8x8xbf16>
    %191 = arith.truncf %172 : vector<2x8x16xf32> to vector<2x8x16xbf16>
    "tpu.trace_start"() <{level = 10 : i32, message = "bqk,bkd->bqd"}> : () -> ()
    %cst_107 = arith.constant dense<0.000000e+00> : vector<2x8x16xf32>
    %192 = tpu.matmul %190, %191, %cst_107 {dimension_numbers = #tpu.dot_dimension_numbers<[2], [1], [1], [2], [0, 0, 0, 1, 1, 2], [0], [0]>} : vector<2x8x8xbf16>, vector<2x8x16xbf16>, vector<2x8x16xf32> -> vector<2x8x16xf32>
    "tpu.trace_stop"() : () -> ()
    %193 = vector.shape_cast %192 : vector<2x8x16xf32> to vector<16x16xf32>
    %194 = arith.truncf %193 : vector<16x16xf32> to vector<16x16xbf16>
    %c0_108 = arith.constant 0 : index
    %c3_109 = arith.constant 3 : index
    %c0_110 = arith.constant 0 : index
    %c0_111 = arith.constant 0 : index
    %195 = vector.load %arg7[%c0_108, %c3_109, %c0_110, %c0_111] : memref<2x4x16x64xf32, #tpu.memory_space<vmem>>, vector<1x1x16x64xf32>
    %196 = vector.shape_cast %195 : vector<1x1x16x64xf32> to vector<16x64xf32>
    %197 = arith.truncf %196 : vector<16x64xf32> to vector<16x64xbf16>
    %cst_112 = arith.constant dense<0.000000e+00> : vector<16x64xf32>
    %198 = tpu.matmul %194, %197, %cst_112 {dimension_numbers = #tpu.dot_dimension_numbers<[1], [0], [0], [1], [0, 0, 1, 1], [], []>} : vector<16x16xbf16>, vector<16x64xbf16>, vector<16x64xf32> -> vector<16x64xf32>
    %199 = arith.addf %157, %198 : vector<16x64xf32>
    %200 = arith.addf %0, %199 : vector<16x64xf32>
    %c0_113 = arith.constant 0 : index
    %c0_114 = arith.constant 0 : index
    %c0_115 = arith.constant 0 : index
    %201 = vector.load %arg8[%c0_113, %c0_114, %c0_115] : memref<2x1x64xf32, #tpu.memory_space<vmem>>, vector<1x1x64xf32>
    %202 = vector.shape_cast %201 : vector<1x1x64xf32> to vector<1x64xf32>
    %203 = vector.broadcast %202 : vector<1x64xf32> to vector<16x64xf32>
    %204 = arith.addf %200, %203 : vector<16x64xf32>
    %c0_116 = arith.constant 0 : index
    %c0_117 = arith.constant 0 : index
    %c0_118 = arith.constant 0 : index
    %205 = vector.load %arg9[%c0_116, %c0_117, %c0_118] : memref<2x1x64xf32, #tpu.memory_space<vmem>>, vector<1x1x64xf32>
    %206 = vector.shape_cast %205 : vector<1x1x64xf32> to vector<1x64xf32>
    %c0_119 = arith.constant 0 : index
    %c0_120 = arith.constant 0 : index
    %c0_121 = arith.constant 0 : index
    %207 = vector.load %arg10[%c0_119, %c0_120, %c0_121] : memref<2x1x64xf32, #tpu.memory_space<vmem>>, vector<1x1x64xf32>
    %208 = vector.shape_cast %207 : vector<1x1x64xf32> to vector<1x64xf32>
    %cst_122 = arith.constant dense<0.000000e+00> : vector<16xf32>
    %209 = vector.multi_reduction <add>, %204, %cst_122 [1] : vector<16x64xf32> to vector<16xf32>
    %210 = vector.shape_cast %209 : vector<16xf32> to vector<16x1xf32>
    %cst_123 = arith.constant 6.400000e+01 : f32
    %211 = vector.broadcast %cst_123 : f32 to vector<16x1xf32>
    %212 = arith.divf %210, %211 : vector<16x1xf32>
    %213 = vector.broadcast %212 : vector<16x1xf32> to vector<16x64xf32>
    %214 = arith.subf %204, %213 : vector<16x64xf32>
    %215 = arith.mulf %214, %214 : vector<16x64xf32>
    %cst_124 = arith.constant dense<0.000000e+00> : vector<16xf32>
    %216 = vector.multi_reduction <add>, %215, %cst_124 [1] : vector<16x64xf32> to vector<16xf32>
    %217 = vector.shape_cast %216 : vector<16xf32> to vector<16x1xf32>
    %cst_125 = arith.constant 6.400000e+01 : f32
    %218 = vector.broadcast %cst_125 : f32 to vector<16x1xf32>
    %219 = arith.divf %217, %218 : vector<16x1xf32>
    %220 = vector.broadcast %212 : vector<16x1xf32> to vector<16x64xf32>
    %221 = arith.subf %204, %220 : vector<16x64xf32>
    %cst_126 = arith.constant 9.99999974E-6 : f32
    %222 = vector.broadcast %cst_126 : f32 to vector<16x1xf32>
    %223 = arith.addf %219, %222 : vector<16x1xf32>
    %224 = math.rsqrt %223 : vector<16x1xf32>
    %225 = vector.broadcast %224 : vector<16x1xf32> to vector<16x64xf32>
    %226 = arith.mulf %221, %225 : vector<16x64xf32>
    %227 = vector.broadcast %206 : vector<1x64xf32> to vector<16x64xf32>
    %228 = arith.mulf %226, %227 : vector<16x64xf32>
    %229 = vector.broadcast %208 : vector<1x64xf32> to vector<16x64xf32>
    %230 = arith.addf %228, %229 : vector<16x64xf32>
    %c0_127 = arith.constant 0 : index
    %c0_128 = arith.constant 0 : index
    %c0_129 = arith.constant 0 : index
    %231 = vector.load %arg11[%c0_127, %c0_128, %c0_129] : memref<2x64x256xf32, #tpu.memory_space<vmem>>, vector<1x64x256xf32>
    %232 = vector.shape_cast %231 : vector<1x64x256xf32> to vector<64x256xf32>
    %233 = arith.truncf %230 : vector<16x64xf32> to vector<16x64xbf16>
    %234 = arith.truncf %232 : vector<64x256xf32> to vector<64x256xbf16>
    %cst_130 = arith.constant dense<0.000000e+00> : vector<16x256xf32>
    %235 = tpu.matmul %233, %234, %cst_130 {dimension_numbers = #tpu.dot_dimension_numbers<[1], [0], [0], [1], [0, 0, 1, 1], [], []>} : vector<16x64xbf16>, vector<64x256xbf16>, vector<16x256xf32> -> vector<16x256xf32>
    %c0_131 = arith.constant 0 : index
    %c0_132 = arith.constant 0 : index
    %c0_133 = arith.constant 0 : index
    %236 = vector.load %arg12[%c0_131, %c0_132, %c0_133] : memref<2x1x256xf32, #tpu.memory_space<vmem>>, vector<1x1x256xf32>
    %237 = vector.shape_cast %236 : vector<1x1x256xf32> to vector<1x256xf32>
    %238 = vector.broadcast %237 : vector<1x256xf32> to vector<16x256xf32>
    %239 = arith.addf %235, %238 : vector<16x256xf32>
    %cst_134 = arith.constant 0.000000e+00 : f32
    %240 = vector.broadcast %cst_134 : f32 to vector<16x256xf32>
    %241 = arith.maximumf %239, %240 : vector<16x256xf32>
    %c0_135 = arith.constant 0 : index
    %c0_136 = arith.constant 0 : index
    %c0_137 = arith.constant 0 : index
    %242 = vector.load %arg13[%c0_135, %c0_136, %c0_137] : memref<2x256x64xf32, #tpu.memory_space<vmem>>, vector<1x256x64xf32>
    %243 = vector.shape_cast %242 : vector<1x256x64xf32> to vector<256x64xf32>
    %244 = arith.truncf %241 : vector<16x256xf32> to vector<16x256xbf16>
    %245 = arith.truncf %243 : vector<256x64xf32> to vector<256x64xbf16>
    %cst_138 = arith.constant dense<0.000000e+00> : vector<16x64xf32>
    %246 = tpu.matmul %244, %245, %cst_138 {dimension_numbers = #tpu.dot_dimension_numbers<[1], [0], [0], [1], [0, 0, 1, 1], [], []>} : vector<16x256xbf16>, vector<256x64xbf16>, vector<16x64xf32> -> vector<16x64xf32>
    %247 = arith.addf %204, %246 : vector<16x64xf32>
    %c0_139 = arith.constant 0 : index
    %c0_140 = arith.constant 0 : index
    %c0_141 = arith.constant 0 : index
    %248 = vector.load %arg14[%c0_139, %c0_140, %c0_141] : memref<2x1x64xf32, #tpu.memory_space<vmem>>, vector<1x1x64xf32>
    %249 = vector.shape_cast %248 : vector<1x1x64xf32> to vector<1x64xf32>
    %250 = vector.broadcast %249 : vector<1x64xf32> to vector<16x64xf32>
    %251 = arith.addf %247, %250 : vector<16x64xf32>
    %c1_142 = arith.constant 1 : index
    %c0_143 = arith.constant 0 : index
    %c0_144 = arith.constant 0 : index
    %252 = vector.load %arg2[%c1_142, %c0_143, %c0_144] : memref<2x1x64xf32, #tpu.memory_space<vmem>>, vector<1x1x64xf32>
    %253 = vector.shape_cast %252 : vector<1x1x64xf32> to vector<1x64xf32>
    %c1_145 = arith.constant 1 : index
    %c0_146 = arith.constant 0 : index
    %c0_147 = arith.constant 0 : index
    %254 = vector.load %arg3[%c1_145, %c0_146, %c0_147] : memref<2x1x64xf32, #tpu.memory_space<vmem>>, vector<1x1x64xf32>
    %255 = vector.shape_cast %254 : vector<1x1x64xf32> to vector<1x64xf32>
    %cst_148 = arith.constant dense<0.000000e+00> : vector<16xf32>
    %256 = vector.multi_reduction <add>, %251, %cst_148 [1] : vector<16x64xf32> to vector<16xf32>
    %257 = vector.shape_cast %256 : vector<16xf32> to vector<16x1xf32>
    %cst_149 = arith.constant 6.400000e+01 : f32
    %258 = vector.broadcast %cst_149 : f32 to vector<16x1xf32>
    %259 = arith.divf %257, %258 : vector<16x1xf32>
    %260 = vector.broadcast %259 : vector<16x1xf32> to vector<16x64xf32>
    %261 = arith.subf %251, %260 : vector<16x64xf32>
    %262 = arith.mulf %261, %261 : vector<16x64xf32>
    %cst_150 = arith.constant dense<0.000000e+00> : vector<16xf32>
    %263 = vector.multi_reduction <add>, %262, %cst_150 [1] : vector<16x64xf32> to vector<16xf32>
    %264 = vector.shape_cast %263 : vector<16xf32> to vector<16x1xf32>
    %cst_151 = arith.constant 6.400000e+01 : f32
    %265 = vector.broadcast %cst_151 : f32 to vector<16x1xf32>
    %266 = arith.divf %264, %265 : vector<16x1xf32>
    %267 = vector.broadcast %259 : vector<16x1xf32> to vector<16x64xf32>
    %268 = arith.subf %251, %267 : vector<16x64xf32>
    %cst_152 = arith.constant 9.99999974E-6 : f32
    %269 = vector.broadcast %cst_152 : f32 to vector<16x1xf32>
    %270 = arith.addf %266, %269 : vector<16x1xf32>
    %271 = math.rsqrt %270 : vector<16x1xf32>
    %272 = vector.broadcast %271 : vector<16x1xf32> to vector<16x64xf32>
    %273 = arith.mulf %268, %272 : vector<16x64xf32>
    %274 = vector.broadcast %253 : vector<1x64xf32> to vector<16x64xf32>
    %275 = arith.mulf %273, %274 : vector<16x64xf32>
    %276 = vector.broadcast %255 : vector<1x64xf32> to vector<16x64xf32>
    %277 = arith.addf %275, %276 : vector<16x64xf32>
    %278 = arith.truncf %277 : vector<16x64xf32> to vector<16x64xbf16>
    %cst_153 = arith.constant 0.000000e+00 : f32
    %279 = vector.broadcast %cst_153 : f32 to vector<16x64xf32>
    %c1_154 = arith.constant 1 : index
    %c0_155 = arith.constant 0 : index
    %c0_156 = arith.constant 0 : index
    %c0_157 = arith.constant 0 : index
    %280 = vector.load %arg4[%c1_154, %c0_155, %c0_156, %c0_157] : memref<2x4x64x16xf32, #tpu.memory_space<vmem>>, vector<1x1x64x16xf32>
    %281 = vector.shape_cast %280 : vector<1x1x64x16xf32> to vector<64x16xf32>
    %282 = arith.truncf %281 : vector<64x16xf32> to vector<64x16xbf16>
    %cst_158 = arith.constant dense<0.000000e+00> : vector<16x16xf32>
    %283 = tpu.matmul %278, %282, %cst_158 {dimension_numbers = #tpu.dot_dimension_numbers<[1], [0], [0], [1], [0, 0, 1, 1], [], []>} : vector<16x64xbf16>, vector<64x16xbf16>, vector<16x16xf32> -> vector<16x16xf32>
    %c1_159 = arith.constant 1 : index
    %c0_160 = arith.constant 0 : index
    %c0_161 = arith.constant 0 : index
    %c0_162 = arith.constant 0 : index
    %284 = vector.load %arg5[%c1_159, %c0_160, %c0_161, %c0_162] : memref<2x4x64x16xf32, #tpu.memory_space<vmem>>, vector<1x1x64x16xf32>
    %285 = vector.shape_cast %284 : vector<1x1x64x16xf32> to vector<64x16xf32>
    %286 = arith.truncf %285 : vector<64x16xf32> to vector<64x16xbf16>
    %cst_163 = arith.constant dense<0.000000e+00> : vector<16x16xf32>
    %287 = tpu.matmul %278, %286, %cst_163 {dimension_numbers = #tpu.dot_dimension_numbers<[1], [0], [0], [1], [0, 0, 1, 1], [], []>} : vector<16x64xbf16>, vector<64x16xbf16>, vector<16x16xf32> -> vector<16x16xf32>
    %c1_164 = arith.constant 1 : index
    %c0_165 = arith.constant 0 : index
    %c0_166 = arith.constant 0 : index
    %c0_167 = arith.constant 0 : index
    %288 = vector.load %arg6[%c1_164, %c0_165, %c0_166, %c0_167] : memref<2x4x64x16xf32, #tpu.memory_space<vmem>>, vector<1x1x64x16xf32>
    %289 = vector.shape_cast %288 : vector<1x1x64x16xf32> to vector<64x16xf32>
    %290 = arith.truncf %289 : vector<64x16xf32> to vector<64x16xbf16>
    %cst_168 = arith.constant dense<0.000000e+00> : vector<16x16xf32>
    %291 = tpu.matmul %278, %290, %cst_168 {dimension_numbers = #tpu.dot_dimension_numbers<[1], [0], [0], [1], [0, 0, 1, 1], [], []>} : vector<16x64xbf16>, vector<64x16xbf16>, vector<16x16xf32> -> vector<16x16xf32>
    %292 = vector.shape_cast %283 : vector<16x16xf32> to vector<2x8x16xf32>
    %293 = vector.shape_cast %287 : vector<16x16xf32> to vector<2x8x16xf32>
    %294 = vector.shape_cast %291 : vector<16x16xf32> to vector<2x8x16xf32>
    %295 = arith.truncf %292 : vector<2x8x16xf32> to vector<2x8x16xbf16>
    %296 = arith.truncf %293 : vector<2x8x16xf32> to vector<2x8x16xbf16>
    "tpu.trace_start"() <{level = 10 : i32, message = "bqd,bkd->bqk"}> : () -> ()
    %cst_169 = arith.constant dense<0.000000e+00> : vector<2x8x8xf32>
    %297 = tpu.matmul %295, %296, %cst_169 {dimension_numbers = #tpu.dot_dimension_numbers<[2], [2], [1], [1], [0, 0, 0, 1, 1, 1], [0], [0]>} : vector<2x8x16xbf16>, vector<2x8x16xbf16>, vector<2x8x8xf32> -> vector<2x8x8xf32>
    "tpu.trace_stop"() : () -> ()
    %cst_170 = arith.constant 4.000000e+00 : f32
    %298 = vector.broadcast %cst_170 : f32 to vector<2x8x8xf32>
    %299 = arith.mulf %297, %298 : vector<2x8x8xf32>
    %cst_171 = arith.constant 0xFF800000 : f32
    %300 = vector.broadcast %cst_171 : f32 to vector<2x8x8xf32>
    %301 = arith.select %3, %300, %299 : vector<2x8x8xi1>, vector<2x8x8xf32>
    %cst_172 = arith.constant dense<0xFF800000> : vector<2x8xf32>
    %302 = vector.multi_reduction <maximumf>, %301, %cst_172 [1] : vector<2x8x8xf32> to vector<2x8xf32>
    %303 = vector.shape_cast %302 : vector<2x8xf32> to vector<2x1x8xf32>
    %304 = vector.broadcast %303 : vector<2x1x8xf32> to vector<2x8x8xf32>
    %305 = arith.subf %301, %304 : vector<2x8x8xf32>
    %306 = math.exp %305 : vector<2x8x8xf32>
    %cst_173 = arith.constant dense<0.000000e+00> : vector<2x8xf32>
    %307 = vector.multi_reduction <add>, %306, %cst_173 [1] : vector<2x8x8xf32> to vector<2x8xf32>
    %308 = vector.shape_cast %307 : vector<2x8xf32> to vector<2x1x8xf32>
    %309 = tpu.reciprocal %308 {approx = true} : vector<2x1x8xf32> -> vector<2x1x8xf32>
    %310 = vector.broadcast %309 : vector<2x1x8xf32> to vector<2x8x8xf32>
    %311 = arith.mulf %306, %310 : vector<2x8x8xf32>
    %312 = arith.truncf %311 : vector<2x8x8xf32> to vector<2x8x8xbf16>
    %313 = arith.truncf %294 : vector<2x8x16xf32> to vector<2x8x16xbf16>
    "tpu.trace_start"() <{level = 10 : i32, message = "bqk,bkd->bqd"}> : () -> ()
    %cst_174 = arith.constant dense<0.000000e+00> : vector<2x8x16xf32>
    %314 = tpu.matmul %312, %313, %cst_174 {dimension_numbers = #tpu.dot_dimension_numbers<[2], [1], [1], [2], [0, 0, 0, 1, 1, 2], [0], [0]>} : vector<2x8x8xbf16>, vector<2x8x16xbf16>, vector<2x8x16xf32> -> vector<2x8x16xf32>
    "tpu.trace_stop"() : () -> ()
    %315 = vector.shape_cast %314 : vector<2x8x16xf32> to vector<16x16xf32>
    %316 = arith.truncf %315 : vector<16x16xf32> to vector<16x16xbf16>
    %c1_175 = arith.constant 1 : index
    %c0_176 = arith.constant 0 : index
    %c0_177 = arith.constant 0 : index
    %c0_178 = arith.constant 0 : index
    %317 = vector.load %arg7[%c1_175, %c0_176, %c0_177, %c0_178] : memref<2x4x16x64xf32, #tpu.memory_space<vmem>>, vector<1x1x16x64xf32>
    %318 = vector.shape_cast %317 : vector<1x1x16x64xf32> to vector<16x64xf32>
    %319 = arith.truncf %318 : vector<16x64xf32> to vector<16x64xbf16>
    %cst_179 = arith.constant dense<0.000000e+00> : vector<16x64xf32>
    %320 = tpu.matmul %316, %319, %cst_179 {dimension_numbers = #tpu.dot_dimension_numbers<[1], [0], [0], [1], [0, 0, 1, 1], [], []>} : vector<16x16xbf16>, vector<16x64xbf16>, vector<16x64xf32> -> vector<16x64xf32>
    %321 = arith.addf %279, %320 : vector<16x64xf32>
    %c1_180 = arith.constant 1 : index
    %c1_181 = arith.constant 1 : index
    %c0_182 = arith.constant 0 : index
    %c0_183 = arith.constant 0 : index
    %322 = vector.load %arg4[%c1_180, %c1_181, %c0_182, %c0_183] : memref<2x4x64x16xf32, #tpu.memory_space<vmem>>, vector<1x1x64x16xf32>
    %323 = vector.shape_cast %322 : vector<1x1x64x16xf32> to vector<64x16xf32>
    %324 = arith.truncf %323 : vector<64x16xf32> to vector<64x16xbf16>
    %cst_184 = arith.constant dense<0.000000e+00> : vector<16x16xf32>
    %325 = tpu.matmul %278, %324, %cst_184 {dimension_numbers = #tpu.dot_dimension_numbers<[1], [0], [0], [1], [0, 0, 1, 1], [], []>} : vector<16x64xbf16>, vector<64x16xbf16>, vector<16x16xf32> -> vector<16x16xf32>
    %c1_185 = arith.constant 1 : index
    %c1_186 = arith.constant 1 : index
    %c0_187 = arith.constant 0 : index
    %c0_188 = arith.constant 0 : index
    %326 = vector.load %arg5[%c1_185, %c1_186, %c0_187, %c0_188] : memref<2x4x64x16xf32, #tpu.memory_space<vmem>>, vector<1x1x64x16xf32>
    %327 = vector.shape_cast %326 : vector<1x1x64x16xf32> to vector<64x16xf32>
    %328 = arith.truncf %327 : vector<64x16xf32> to vector<64x16xbf16>
    %cst_189 = arith.constant dense<0.000000e+00> : vector<16x16xf32>
    %329 = tpu.matmul %278, %328, %cst_189 {dimension_numbers = #tpu.dot_dimension_numbers<[1], [0], [0], [1], [0, 0, 1, 1], [], []>} : vector<16x64xbf16>, vector<64x16xbf16>, vector<16x16xf32> -> vector<16x16xf32>
    %c1_190 = arith.constant 1 : index
    %c1_191 = arith.constant 1 : index
    %c0_192 = arith.constant 0 : index
    %c0_193 = arith.constant 0 : index
    %330 = vector.load %arg6[%c1_190, %c1_191, %c0_192, %c0_193] : memref<2x4x64x16xf32, #tpu.memory_space<vmem>>, vector<1x1x64x16xf32>
    %331 = vector.shape_cast %330 : vector<1x1x64x16xf32> to vector<64x16xf32>
    %332 = arith.truncf %331 : vector<64x16xf32> to vector<64x16xbf16>
    %cst_194 = arith.constant dense<0.000000e+00> : vector<16x16xf32>
    %333 = tpu.matmul %278, %332, %cst_194 {dimension_numbers = #tpu.dot_dimension_numbers<[1], [0], [0], [1], [0, 0, 1, 1], [], []>} : vector<16x64xbf16>, vector<64x16xbf16>, vector<16x16xf32> -> vector<16x16xf32>
    %334 = vector.shape_cast %325 : vector<16x16xf32> to vector<2x8x16xf32>
    %335 = vector.shape_cast %329 : vector<16x16xf32> to vector<2x8x16xf32>
    %336 = vector.shape_cast %333 : vector<16x16xf32> to vector<2x8x16xf32>
    %337 = arith.truncf %334 : vector<2x8x16xf32> to vector<2x8x16xbf16>
    %338 = arith.truncf %335 : vector<2x8x16xf32> to vector<2x8x16xbf16>
    "tpu.trace_start"() <{level = 10 : i32, message = "bqd,bkd->bqk"}> : () -> ()
    %cst_195 = arith.constant dense<0.000000e+00> : vector<2x8x8xf32>
    %339 = tpu.matmul %337, %338, %cst_195 {dimension_numbers = #tpu.dot_dimension_numbers<[2], [2], [1], [1], [0, 0, 0, 1, 1, 1], [0], [0]>} : vector<2x8x16xbf16>, vector<2x8x16xbf16>, vector<2x8x8xf32> -> vector<2x8x8xf32>
    "tpu.trace_stop"() : () -> ()
    %cst_196 = arith.constant 4.000000e+00 : f32
    %340 = vector.broadcast %cst_196 : f32 to vector<2x8x8xf32>
    %341 = arith.mulf %339, %340 : vector<2x8x8xf32>
    %cst_197 = arith.constant 0xFF800000 : f32
    %342 = vector.broadcast %cst_197 : f32 to vector<2x8x8xf32>
    %343 = arith.select %3, %342, %341 : vector<2x8x8xi1>, vector<2x8x8xf32>
    %cst_198 = arith.constant dense<0xFF800000> : vector<2x8xf32>
    %344 = vector.multi_reduction <maximumf>, %343, %cst_198 [1] : vector<2x8x8xf32> to vector<2x8xf32>
    %345 = vector.shape_cast %344 : vector<2x8xf32> to vector<2x1x8xf32>
    %346 = vector.broadcast %345 : vector<2x1x8xf32> to vector<2x8x8xf32>
    %347 = arith.subf %343, %346 : vector<2x8x8xf32>
    %348 = math.exp %347 : vector<2x8x8xf32>
    %cst_199 = arith.constant dense<0.000000e+00> : vector<2x8xf32>
    %349 = vector.multi_reduction <add>, %348, %cst_199 [1] : vector<2x8x8xf32> to vector<2x8xf32>
    %350 = vector.shape_cast %349 : vector<2x8xf32> to vector<2x1x8xf32>
    %351 = tpu.reciprocal %350 {approx = true} : vector<2x1x8xf32> -> vector<2x1x8xf32>
    %352 = vector.broadcast %351 : vector<2x1x8xf32> to vector<2x8x8xf32>
    %353 = arith.mulf %348, %352 : vector<2x8x8xf32>
    %354 = arith.truncf %353 : vector<2x8x8xf32> to vector<2x8x8xbf16>
    %355 = arith.truncf %336 : vector<2x8x16xf32> to vector<2x8x16xbf16>
    "tpu.trace_start"() <{level = 10 : i32, message = "bqk,bkd->bqd"}> : () -> ()
    %cst_200 = arith.constant dense<0.000000e+00> : vector<2x8x16xf32>
    %356 = tpu.matmul %354, %355, %cst_200 {dimension_numbers = #tpu.dot_dimension_numbers<[2], [1], [1], [2], [0, 0, 0, 1, 1, 2], [0], [0]>} : vector<2x8x8xbf16>, vector<2x8x16xbf16>, vector<2x8x16xf32> -> vector<2x8x16xf32>
    "tpu.trace_stop"() : () -> ()
    %357 = vector.shape_cast %356 : vector<2x8x16xf32> to vector<16x16xf32>
    %358 = arith.truncf %357 : vector<16x16xf32> to vector<16x16xbf16>
    %c1_201 = arith.constant 1 : index
    %c1_202 = arith.constant 1 : index
    %c0_203 = arith.constant 0 : index
    %c0_204 = arith.constant 0 : index
    %359 = vector.load %arg7[%c1_201, %c1_202, %c0_203, %c0_204] : memref<2x4x16x64xf32, #tpu.memory_space<vmem>>, vector<1x1x16x64xf32>
    %360 = vector.shape_cast %359 : vector<1x1x16x64xf32> to vector<16x64xf32>
    %361 = arith.truncf %360 : vector<16x64xf32> to vector<16x64xbf16>
    %cst_205 = arith.constant dense<0.000000e+00> : vector<16x64xf32>
    %362 = tpu.matmul %358, %361, %cst_205 {dimension_numbers = #tpu.dot_dimension_numbers<[1], [0], [0], [1], [0, 0, 1, 1], [], []>} : vector<16x16xbf16>, vector<16x64xbf16>, vector<16x64xf32> -> vector<16x64xf32>
    %363 = arith.addf %321, %362 : vector<16x64xf32>
    %c1_206 = arith.constant 1 : index
    %c2_207 = arith.constant 2 : index
    %c0_208 = arith.constant 0 : index
    %c0_209 = arith.constant 0 : index
    %364 = vector.load %arg4[%c1_206, %c2_207, %c0_208, %c0_209] : memref<2x4x64x16xf32, #tpu.memory_space<vmem>>, vector<1x1x64x16xf32>
    %365 = vector.shape_cast %364 : vector<1x1x64x16xf32> to vector<64x16xf32>
    %366 = arith.truncf %365 : vector<64x16xf32> to vector<64x16xbf16>
    %cst_210 = arith.constant dense<0.000000e+00> : vector<16x16xf32>
    %367 = tpu.matmul %278, %366, %cst_210 {dimension_numbers = #tpu.dot_dimension_numbers<[1], [0], [0], [1], [0, 0, 1, 1], [], []>} : vector<16x64xbf16>, vector<64x16xbf16>, vector<16x16xf32> -> vector<16x16xf32>
    %c1_211 = arith.constant 1 : index
    %c2_212 = arith.constant 2 : index
    %c0_213 = arith.constant 0 : index
    %c0_214 = arith.constant 0 : index
    %368 = vector.load %arg5[%c1_211, %c2_212, %c0_213, %c0_214] : memref<2x4x64x16xf32, #tpu.memory_space<vmem>>, vector<1x1x64x16xf32>
    %369 = vector.shape_cast %368 : vector<1x1x64x16xf32> to vector<64x16xf32>
    %370 = arith.truncf %369 : vector<64x16xf32> to vector<64x16xbf16>
    %cst_215 = arith.constant dense<0.000000e+00> : vector<16x16xf32>
    %371 = tpu.matmul %278, %370, %cst_215 {dimension_numbers = #tpu.dot_dimension_numbers<[1], [0], [0], [1], [0, 0, 1, 1], [], []>} : vector<16x64xbf16>, vector<64x16xbf16>, vector<16x16xf32> -> vector<16x16xf32>
    %c1_216 = arith.constant 1 : index
    %c2_217 = arith.constant 2 : index
    %c0_218 = arith.constant 0 : index
    %c0_219 = arith.constant 0 : index
    %372 = vector.load %arg6[%c1_216, %c2_217, %c0_218, %c0_219] : memref<2x4x64x16xf32, #tpu.memory_space<vmem>>, vector<1x1x64x16xf32>
    %373 = vector.shape_cast %372 : vector<1x1x64x16xf32> to vector<64x16xf32>
    %374 = arith.truncf %373 : vector<64x16xf32> to vector<64x16xbf16>
    %cst_220 = arith.constant dense<0.000000e+00> : vector<16x16xf32>
    %375 = tpu.matmul %278, %374, %cst_220 {dimension_numbers = #tpu.dot_dimension_numbers<[1], [0], [0], [1], [0, 0, 1, 1], [], []>} : vector<16x64xbf16>, vector<64x16xbf16>, vector<16x16xf32> -> vector<16x16xf32>
    %376 = vector.shape_cast %367 : vector<16x16xf32> to vector<2x8x16xf32>
    %377 = vector.shape_cast %371 : vector<16x16xf32> to vector<2x8x16xf32>
    %378 = vector.shape_cast %375 : vector<16x16xf32> to vector<2x8x16xf32>
    %379 = arith.truncf %376 : vector<2x8x16xf32> to vector<2x8x16xbf16>
    %380 = arith.truncf %377 : vector<2x8x16xf32> to vector<2x8x16xbf16>
    "tpu.trace_start"() <{level = 10 : i32, message = "bqd,bkd->bqk"}> : () -> ()
    %cst_221 = arith.constant dense<0.000000e+00> : vector<2x8x8xf32>
    %381 = tpu.matmul %379, %380, %cst_221 {dimension_numbers = #tpu.dot_dimension_numbers<[2], [2], [1], [1], [0, 0, 0, 1, 1, 1], [0], [0]>} : vector<2x8x16xbf16>, vector<2x8x16xbf16>, vector<2x8x8xf32> -> vector<2x8x8xf32>
    "tpu.trace_stop"() : () -> ()
    %cst_222 = arith.constant 4.000000e+00 : f32
    %382 = vector.broadcast %cst_222 : f32 to vector<2x8x8xf32>
    %383 = arith.mulf %381, %382 : vector<2x8x8xf32>
    %cst_223 = arith.constant 0xFF800000 : f32
    %384 = vector.broadcast %cst_223 : f32 to vector<2x8x8xf32>
    %385 = arith.select %3, %384, %383 : vector<2x8x8xi1>, vector<2x8x8xf32>
    %cst_224 = arith.constant dense<0xFF800000> : vector<2x8xf32>
    %386 = vector.multi_reduction <maximumf>, %385, %cst_224 [1] : vector<2x8x8xf32> to vector<2x8xf32>
    %387 = vector.shape_cast %386 : vector<2x8xf32> to vector<2x1x8xf32>
    %388 = vector.broadcast %387 : vector<2x1x8xf32> to vector<2x8x8xf32>
    %389 = arith.subf %385, %388 : vector<2x8x8xf32>
    %390 = math.exp %389 : vector<2x8x8xf32>
    %cst_225 = arith.constant dense<0.000000e+00> : vector<2x8xf32>
    %391 = vector.multi_reduction <add>, %390, %cst_225 [1] : vector<2x8x8xf32> to vector<2x8xf32>
    %392 = vector.shape_cast %391 : vector<2x8xf32> to vector<2x1x8xf32>
    %393 = tpu.reciprocal %392 {approx = true} : vector<2x1x8xf32> -> vector<2x1x8xf32>
    %394 = vector.broadcast %393 : vector<2x1x8xf32> to vector<2x8x8xf32>
    %395 = arith.mulf %390, %394 : vector<2x8x8xf32>
    %396 = arith.truncf %395 : vector<2x8x8xf32> to vector<2x8x8xbf16>
    %397 = arith.truncf %378 : vector<2x8x16xf32> to vector<2x8x16xbf16>
    "tpu.trace_start"() <{level = 10 : i32, message = "bqk,bkd->bqd"}> : () -> ()
    %cst_226 = arith.constant dense<0.000000e+00> : vector<2x8x16xf32>
    %398 = tpu.matmul %396, %397, %cst_226 {dimension_numbers = #tpu.dot_dimension_numbers<[2], [1], [1], [2], [0, 0, 0, 1, 1, 2], [0], [0]>} : vector<2x8x8xbf16>, vector<2x8x16xbf16>, vector<2x8x16xf32> -> vector<2x8x16xf32>
    "tpu.trace_stop"() : () -> ()
    %399 = vector.shape_cast %398 : vector<2x8x16xf32> to vector<16x16xf32>
    %400 = arith.truncf %399 : vector<16x16xf32> to vector<16x16xbf16>
    %c1_227 = arith.constant 1 : index
    %c2_228 = arith.constant 2 : index
    %c0_229 = arith.constant 0 : index
    %c0_230 = arith.constant 0 : index
    %401 = vector.load %arg7[%c1_227, %c2_228, %c0_229, %c0_230] : memref<2x4x16x64xf32, #tpu.memory_space<vmem>>, vector<1x1x16x64xf32>
    %402 = vector.shape_cast %401 : vector<1x1x16x64xf32> to vector<16x64xf32>
    %403 = arith.truncf %402 : vector<16x64xf32> to vector<16x64xbf16>
    %cst_231 = arith.constant dense<0.000000e+00> : vector<16x64xf32>
    %404 = tpu.matmul %400, %403, %cst_231 {dimension_numbers = #tpu.dot_dimension_numbers<[1], [0], [0], [1], [0, 0, 1, 1], [], []>} : vector<16x16xbf16>, vector<16x64xbf16>, vector<16x64xf32> -> vector<16x64xf32>
    %405 = arith.addf %363, %404 : vector<16x64xf32>
    %c1_232 = arith.constant 1 : index
    %c3_233 = arith.constant 3 : index
    %c0_234 = arith.constant 0 : index
    %c0_235 = arith.constant 0 : index
    %406 = vector.load %arg4[%c1_232, %c3_233, %c0_234, %c0_235] : memref<2x4x64x16xf32, #tpu.memory_space<vmem>>, vector<1x1x64x16xf32>
    %407 = vector.shape_cast %406 : vector<1x1x64x16xf32> to vector<64x16xf32>
    %408 = arith.truncf %407 : vector<64x16xf32> to vector<64x16xbf16>
    %cst_236 = arith.constant dense<0.000000e+00> : vector<16x16xf32>
    %409 = tpu.matmul %278, %408, %cst_236 {dimension_numbers = #tpu.dot_dimension_numbers<[1], [0], [0], [1], [0, 0, 1, 1], [], []>} : vector<16x64xbf16>, vector<64x16xbf16>, vector<16x16xf32> -> vector<16x16xf32>
    %c1_237 = arith.constant 1 : index
    %c3_238 = arith.constant 3 : index
    %c0_239 = arith.constant 0 : index
    %c0_240 = arith.constant 0 : index
    %410 = vector.load %arg5[%c1_237, %c3_238, %c0_239, %c0_240] : memref<2x4x64x16xf32, #tpu.memory_space<vmem>>, vector<1x1x64x16xf32>
    %411 = vector.shape_cast %410 : vector<1x1x64x16xf32> to vector<64x16xf32>
    %412 = arith.truncf %411 : vector<64x16xf32> to vector<64x16xbf16>
    %cst_241 = arith.constant dense<0.000000e+00> : vector<16x16xf32>
    %413 = tpu.matmul %278, %412, %cst_241 {dimension_numbers = #tpu.dot_dimension_numbers<[1], [0], [0], [1], [0, 0, 1, 1], [], []>} : vector<16x64xbf16>, vector<64x16xbf16>, vector<16x16xf32> -> vector<16x16xf32>
    %c1_242 = arith.constant 1 : index
    %c3_243 = arith.constant 3 : index
    %c0_244 = arith.constant 0 : index
    %c0_245 = arith.constant 0 : index
    %414 = vector.load %arg6[%c1_242, %c3_243, %c0_244, %c0_245] : memref<2x4x64x16xf32, #tpu.memory_space<vmem>>, vector<1x1x64x16xf32>
    %415 = vector.shape_cast %414 : vector<1x1x64x16xf32> to vector<64x16xf32>
    %416 = arith.truncf %415 : vector<64x16xf32> to vector<64x16xbf16>
    %cst_246 = arith.constant dense<0.000000e+00> : vector<16x16xf32>
    %417 = tpu.matmul %278, %416, %cst_246 {dimension_numbers = #tpu.dot_dimension_numbers<[1], [0], [0], [1], [0, 0, 1, 1], [], []>} : vector<16x64xbf16>, vector<64x16xbf16>, vector<16x16xf32> -> vector<16x16xf32>
    %418 = vector.shape_cast %409 : vector<16x16xf32> to vector<2x8x16xf32>
    %419 = vector.shape_cast %413 : vector<16x16xf32> to vector<2x8x16xf32>
    %420 = vector.shape_cast %417 : vector<16x16xf32> to vector<2x8x16xf32>
    %421 = arith.truncf %418 : vector<2x8x16xf32> to vector<2x8x16xbf16>
    %422 = arith.truncf %419 : vector<2x8x16xf32> to vector<2x8x16xbf16>
    "tpu.trace_start"() <{level = 10 : i32, message = "bqd,bkd->bqk"}> : () -> ()
    %cst_247 = arith.constant dense<0.000000e+00> : vector<2x8x8xf32>
    %423 = tpu.matmul %421, %422, %cst_247 {dimension_numbers = #tpu.dot_dimension_numbers<[2], [2], [1], [1], [0, 0, 0, 1, 1, 1], [0], [0]>} : vector<2x8x16xbf16>, vector<2x8x16xbf16>, vector<2x8x8xf32> -> vector<2x8x8xf32>
    "tpu.trace_stop"() : () -> ()
    %cst_248 = arith.constant 4.000000e+00 : f32
    %424 = vector.broadcast %cst_248 : f32 to vector<2x8x8xf32>
    %425 = arith.mulf %423, %424 : vector<2x8x8xf32>
    %cst_249 = arith.constant 0xFF800000 : f32
    %426 = vector.broadcast %cst_249 : f32 to vector<2x8x8xf32>
    %427 = arith.select %3, %426, %425 : vector<2x8x8xi1>, vector<2x8x8xf32>
    %cst_250 = arith.constant dense<0xFF800000> : vector<2x8xf32>
    %428 = vector.multi_reduction <maximumf>, %427, %cst_250 [1] : vector<2x8x8xf32> to vector<2x8xf32>
    %429 = vector.shape_cast %428 : vector<2x8xf32> to vector<2x1x8xf32>
    %430 = vector.broadcast %429 : vector<2x1x8xf32> to vector<2x8x8xf32>
    %431 = arith.subf %427, %430 : vector<2x8x8xf32>
    %432 = math.exp %431 : vector<2x8x8xf32>
    %cst_251 = arith.constant dense<0.000000e+00> : vector<2x8xf32>
    %433 = vector.multi_reduction <add>, %432, %cst_251 [1] : vector<2x8x8xf32> to vector<2x8xf32>
    %434 = vector.shape_cast %433 : vector<2x8xf32> to vector<2x1x8xf32>
    %435 = tpu.reciprocal %434 {approx = true} : vector<2x1x8xf32> -> vector<2x1x8xf32>
    %436 = vector.broadcast %435 : vector<2x1x8xf32> to vector<2x8x8xf32>
    %437 = arith.mulf %432, %436 : vector<2x8x8xf32>
    %438 = arith.truncf %437 : vector<2x8x8xf32> to vector<2x8x8xbf16>
    %439 = arith.truncf %420 : vector<2x8x16xf32> to vector<2x8x16xbf16>
    "tpu.trace_start"() <{level = 10 : i32, message = "bqk,bkd->bqd"}> : () -> ()
    %cst_252 = arith.constant dense<0.000000e+00> : vector<2x8x16xf32>
    %440 = tpu.matmul %438, %439, %cst_252 {dimension_numbers = #tpu.dot_dimension_numbers<[2], [1], [1], [2], [0, 0, 0, 1, 1, 2], [0], [0]>} : vector<2x8x8xbf16>, vector<2x8x16xbf16>, vector<2x8x16xf32> -> vector<2x8x16xf32>
    "tpu.trace_stop"() : () -> ()
    %441 = vector.shape_cast %440 : vector<2x8x16xf32> to vector<16x16xf32>
    %442 = arith.truncf %441 : vector<16x16xf32> to vector<16x16xbf16>
    %c1_253 = arith.constant 1 : index
    %c3_254 = arith.constant 3 : index
    %c0_255 = arith.constant 0 : index
    %c0_256 = arith.constant 0 : index
    %443 = vector.load %arg7[%c1_253, %c3_254, %c0_255, %c0_256] : memref<2x4x16x64xf32, #tpu.memory_space<vmem>>, vector<1x1x16x64xf32>
    %444 = vector.shape_cast %443 : vector<1x1x16x64xf32> to vector<16x64xf32>
    %445 = arith.truncf %444 : vector<16x64xf32> to vector<16x64xbf16>
    %cst_257 = arith.constant dense<0.000000e+00> : vector<16x64xf32>
    %446 = tpu.matmul %442, %445, %cst_257 {dimension_numbers = #tpu.dot_dimension_numbers<[1], [0], [0], [1], [0, 0, 1, 1], [], []>} : vector<16x16xbf16>, vector<16x64xbf16>, vector<16x64xf32> -> vector<16x64xf32>
    %447 = arith.addf %405, %446 : vector<16x64xf32>
    %448 = arith.addf %251, %447 : vector<16x64xf32>
    %c1_258 = arith.constant 1 : index
    %c0_259 = arith.constant 0 : index
    %c0_260 = arith.constant 0 : index
    %449 = vector.load %arg8[%c1_258, %c0_259, %c0_260] : memref<2x1x64xf32, #tpu.memory_space<vmem>>, vector<1x1x64xf32>
    %450 = vector.shape_cast %449 : vector<1x1x64xf32> to vector<1x64xf32>
    %451 = vector.broadcast %450 : vector<1x64xf32> to vector<16x64xf32>
    %452 = arith.addf %448, %451 : vector<16x64xf32>
    %c1_261 = arith.constant 1 : index
    %c0_262 = arith.constant 0 : index
    %c0_263 = arith.constant 0 : index
    %453 = vector.load %arg9[%c1_261, %c0_262, %c0_263] : memref<2x1x64xf32, #tpu.memory_space<vmem>>, vector<1x1x64xf32>
    %454 = vector.shape_cast %453 : vector<1x1x64xf32> to vector<1x64xf32>
    %c1_264 = arith.constant 1 : index
    %c0_265 = arith.constant 0 : index
    %c0_266 = arith.constant 0 : index
    %455 = vector.load %arg10[%c1_264, %c0_265, %c0_266] : memref<2x1x64xf32, #tpu.memory_space<vmem>>, vector<1x1x64xf32>
    %456 = vector.shape_cast %455 : vector<1x1x64xf32> to vector<1x64xf32>
    %cst_267 = arith.constant dense<0.000000e+00> : vector<16xf32>
    %457 = vector.multi_reduction <add>, %452, %cst_267 [1] : vector<16x64xf32> to vector<16xf32>
    %458 = vector.shape_cast %457 : vector<16xf32> to vector<16x1xf32>
    %cst_268 = arith.constant 6.400000e+01 : f32
    %459 = vector.broadcast %cst_268 : f32 to vector<16x1xf32>
    %460 = arith.divf %458, %459 : vector<16x1xf32>
    %461 = vector.broadcast %460 : vector<16x1xf32> to vector<16x64xf32>
    %462 = arith.subf %452, %461 : vector<16x64xf32>
    %463 = arith.mulf %462, %462 : vector<16x64xf32>
    %cst_269 = arith.constant dense<0.000000e+00> : vector<16xf32>
    %464 = vector.multi_reduction <add>, %463, %cst_269 [1] : vector<16x64xf32> to vector<16xf32>
    %465 = vector.shape_cast %464 : vector<16xf32> to vector<16x1xf32>
    %cst_270 = arith.constant 6.400000e+01 : f32
    %466 = vector.broadcast %cst_270 : f32 to vector<16x1xf32>
    %467 = arith.divf %465, %466 : vector<16x1xf32>
    %468 = vector.broadcast %460 : vector<16x1xf32> to vector<16x64xf32>
    %469 = arith.subf %452, %468 : vector<16x64xf32>
    %cst_271 = arith.constant 9.99999974E-6 : f32
    %470 = vector.broadcast %cst_271 : f32 to vector<16x1xf32>
    %471 = arith.addf %467, %470 : vector<16x1xf32>
    %472 = math.rsqrt %471 : vector<16x1xf32>
    %473 = vector.broadcast %472 : vector<16x1xf32> to vector<16x64xf32>
    %474 = arith.mulf %469, %473 : vector<16x64xf32>
    %475 = vector.broadcast %454 : vector<1x64xf32> to vector<16x64xf32>
    %476 = arith.mulf %474, %475 : vector<16x64xf32>
    %477 = vector.broadcast %456 : vector<1x64xf32> to vector<16x64xf32>
    %478 = arith.addf %476, %477 : vector<16x64xf32>
    %c1_272 = arith.constant 1 : index
    %c0_273 = arith.constant 0 : index
    %c0_274 = arith.constant 0 : index
    %479 = vector.load %arg11[%c1_272, %c0_273, %c0_274] : memref<2x64x256xf32, #tpu.memory_space<vmem>>, vector<1x64x256xf32>
    %480 = vector.shape_cast %479 : vector<1x64x256xf32> to vector<64x256xf32>
    %481 = arith.truncf %478 : vector<16x64xf32> to vector<16x64xbf16>
    %482 = arith.truncf %480 : vector<64x256xf32> to vector<64x256xbf16>
    %cst_275 = arith.constant dense<0.000000e+00> : vector<16x256xf32>
    %483 = tpu.matmul %481, %482, %cst_275 {dimension_numbers = #tpu.dot_dimension_numbers<[1], [0], [0], [1], [0, 0, 1, 1], [], []>} : vector<16x64xbf16>, vector<64x256xbf16>, vector<16x256xf32> -> vector<16x256xf32>
    %c1_276 = arith.constant 1 : index
    %c0_277 = arith.constant 0 : index
    %c0_278 = arith.constant 0 : index
    %484 = vector.load %arg12[%c1_276, %c0_277, %c0_278] : memref<2x1x256xf32, #tpu.memory_space<vmem>>, vector<1x1x256xf32>
    %485 = vector.shape_cast %484 : vector<1x1x256xf32> to vector<1x256xf32>
    %486 = vector.broadcast %485 : vector<1x256xf32> to vector<16x256xf32>
    %487 = arith.addf %483, %486 : vector<16x256xf32>
    %cst_279 = arith.constant 0.000000e+00 : f32
    %488 = vector.broadcast %cst_279 : f32 to vector<16x256xf32>
    %489 = arith.maximumf %487, %488 : vector<16x256xf32>
    %c1_280 = arith.constant 1 : index
    %c0_281 = arith.constant 0 : index
    %c0_282 = arith.constant 0 : index
    %490 = vector.load %arg13[%c1_280, %c0_281, %c0_282] : memref<2x256x64xf32, #tpu.memory_space<vmem>>, vector<1x256x64xf32>
    %491 = vector.shape_cast %490 : vector<1x256x64xf32> to vector<256x64xf32>
    %492 = arith.truncf %489 : vector<16x256xf32> to vector<16x256xbf16>
    %493 = arith.truncf %491 : vector<256x64xf32> to vector<256x64xbf16>
    %cst_283 = arith.constant dense<0.000000e+00> : vector<16x64xf32>
    %494 = tpu.matmul %492, %493, %cst_283 {dimension_numbers = #tpu.dot_dimension_numbers<[1], [0], [0], [1], [0, 0, 1, 1], [], []>} : vector<16x256xbf16>, vector<256x64xbf16>, vector<16x64xf32> -> vector<16x64xf32>
    %495 = arith.addf %452, %494 : vector<16x64xf32>
    %c1_284 = arith.constant 1 : index
    %c0_285 = arith.constant 0 : index
    %c0_286 = arith.constant 0 : index
    %496 = vector.load %arg14[%c1_284, %c0_285, %c0_286] : memref<2x1x64xf32, #tpu.memory_space<vmem>>, vector<1x1x64xf32>
    %497 = vector.shape_cast %496 : vector<1x1x64xf32> to vector<1x64xf32>
    %498 = vector.broadcast %497 : vector<1x64xf32> to vector<16x64xf32>
    %499 = arith.addf %495, %498 : vector<16x64xf32>
    %c0_287 = arith.constant 0 : index
    %c0_288 = arith.constant 0 : index
    %500 = vector.load %arg15[%c0_287, %c0_288] : memref<1x64xf32, #tpu.memory_space<vmem>>, vector<1x64xf32>
    %c0_289 = arith.constant 0 : index
    %c0_290 = arith.constant 0 : index
    %501 = vector.load %arg16[%c0_289, %c0_290] : memref<1x64xf32, #tpu.memory_space<vmem>>, vector<1x64xf32>
    %cst_291 = arith.constant dense<0.000000e+00> : vector<16xf32>
    %502 = vector.multi_reduction <add>, %499, %cst_291 [1] : vector<16x64xf32> to vector<16xf32>
    %503 = vector.shape_cast %502 : vector<16xf32> to vector<16x1xf32>
    %cst_292 = arith.constant 6.400000e+01 : f32
    %504 = vector.broadcast %cst_292 : f32 to vector<16x1xf32>
    %505 = arith.divf %503, %504 : vector<16x1xf32>
    %506 = vector.broadcast %505 : vector<16x1xf32> to vector<16x64xf32>
    %507 = arith.subf %499, %506 : vector<16x64xf32>
    %508 = arith.mulf %507, %507 : vector<16x64xf32>
    %cst_293 = arith.constant dense<0.000000e+00> : vector<16xf32>
    %509 = vector.multi_reduction <add>, %508, %cst_293 [1] : vector<16x64xf32> to vector<16xf32>
    %510 = vector.shape_cast %509 : vector<16xf32> to vector<16x1xf32>
    %cst_294 = arith.constant 6.400000e+01 : f32
    %511 = vector.broadcast %cst_294 : f32 to vector<16x1xf32>
    %512 = arith.divf %510, %511 : vector<16x1xf32>
    %513 = vector.broadcast %505 : vector<16x1xf32> to vector<16x64xf32>
    %514 = arith.subf %499, %513 : vector<16x64xf32>
    %cst_295 = arith.constant 9.99999974E-6 : f32
    %515 = vector.broadcast %cst_295 : f32 to vector<16x1xf32>
    %516 = arith.addf %512, %515 : vector<16x1xf32>
    %517 = math.rsqrt %516 : vector<16x1xf32>
    %518 = vector.broadcast %517 : vector<16x1xf32> to vector<16x64xf32>
    %519 = arith.mulf %514, %518 : vector<16x64xf32>
    %520 = vector.broadcast %500 : vector<1x64xf32> to vector<16x64xf32>
    %521 = arith.mulf %519, %520 : vector<16x64xf32>
    %522 = vector.broadcast %501 : vector<1x64xf32> to vector<16x64xf32>
    %523 = arith.addf %521, %522 : vector<16x64xf32>
    %c0_296 = arith.constant 0 : index
    %c0_297 = arith.constant 0 : index
    %524 = vector.load %arg17[%c0_296, %c0_297] : memref<64x128xf32, #tpu.memory_space<vmem>>, vector<64x128xf32>
    %525 = arith.truncf %523 : vector<16x64xf32> to vector<16x64xbf16>
    %526 = arith.truncf %524 : vector<64x128xf32> to vector<64x128xbf16>
    %cst_298 = arith.constant dense<0.000000e+00> : vector<16x128xf32>
    %527 = tpu.matmul %525, %526, %cst_298 {dimension_numbers = #tpu.dot_dimension_numbers<[1], [0], [0], [1], [0, 0, 1, 1], [], []>} : vector<16x64xbf16>, vector<64x128xbf16>, vector<16x128xf32> -> vector<16x128xf32>
    %c0_299 = arith.constant 0 : index
    %c0_300 = arith.constant 0 : index
    %528 = vector.load %arg18[%c0_299, %c0_300] : memref<1x128xf32, #tpu.memory_space<vmem>>, vector<1x128xf32>
    %529 = vector.broadcast %528 : vector<1x128xf32> to vector<16x128xf32>
    %530 = arith.addf %527, %529 : vector<16x128xf32>
    %c0_301 = arith.constant 0 : index
    %c0_302 = arith.constant 0 : index
    %531 = vector.load %arg19[%c0_301, %c0_302] : memref<16x128xf32, #tpu.memory_space<vmem>>, vector<16x128xf32>
    tpu.vector_store %arg19[%c0_301, %c0_302], %530 {strides = array<i32>} : memref<16x128xf32, #tpu.memory_space<vmem>>, vector<16x128xf32>,
    return
  }
  func.func @transform_0(%arg0: i32) -> (i32, i32) {
    %c0_i32 = arith.constant 0 : i32
    %c0_i32_0 = arith.constant 0 : i32
    %c0_i32_1 = arith.constant 0 : i32
    return %c0_i32, %c0_i32_0 : i32, i32
  }
  func.func @transform_1(%arg0: i32) -> (i32, i32, i32) {
    %c0_i32 = arith.constant 0 : i32
    %c0_i32_0 = arith.constant 0 : i32
    %c0_i32_1 = arith.constant 0 : i32
    %c0_i32_2 = arith.constant 0 : i32
    return %c0_i32, %c0_i32_0, %c0_i32_1 : i32, i32, i32
  }
  func.func @transform_2(%arg0: i32) -> (i32, i32, i32) {
    %c0_i32 = arith.constant 0 : i32
    %c0_i32_0 = arith.constant 0 : i32
    %c0_i32_1 = arith.constant 0 : i32
    %c0_i32_2 = arith.constant 0 : i32
    return %c0_i32, %c0_i32_0, %c0_i32_1 : i32, i32, i32
  }
  func.func @transform_3(%arg0: i32) -> (i32, i32, i32, i32) {
    %c0_i32 = arith.constant 0 : i32
    %c0_i32_0 = arith.constant 0 : i32
    %c0_i32_1 = arith.constant 0 : i32
    %c0_i32_2 = arith.constant 0 : i32
    %c0_i32_3 = arith.constant 0 : i32
    return %c0_i32, %c0_i32_0, %c0_i32_1, %c0_i32_2 : i32, i32, i32, i32
  }
  func.func @transform_4(%arg0: i32) -> (i32, i32, i32, i32) {
    %c0_i32 = arith.constant 0 : i32
    %c0_i32_0 = arith.constant 0 : i32
    %c0_i32_1 = arith.constant 0 : i32
    %c0_i32_2 = arith.constant 0 : i32
    %c0_i32_3 = arith.constant 0 : i32
    return %c0_i32, %c0_i32_0, %c0_i32_1, %c0_i32_2 : i32, i32, i32, i32
  }
  func.func @transform_5(%arg0: i32) -> (i32, i32, i32, i32) {
    %c0_i32 = arith.constant 0 : i32
    %c0_i32_0 = arith.constant 0 : i32
    %c0_i32_1 = arith.constant 0 : i32
    %c0_i32_2 = arith.constant 0 : i32
    %c0_i32_3 = arith.constant 0 : i32
    return %c0_i32, %c0_i32_0, %c0_i32_1, %c0_i32_2 : i32, i32, i32, i32
  }
  func.func @transform_6(%arg0: i32) -> (i32, i32, i32, i32) {
    %c0_i32 = arith.constant 0 : i32
    %c0_i32_0 = arith.constant 0 : i32
    %c0_i32_1 = arith.constant 0 : i32
    %c0_i32_2 = arith.constant 0 : i32
    %c0_i32_3 = arith.constant 0 : i32
    return %c0_i32, %c0_i32_0, %c0_i32_1, %c0_i32_2 : i32, i32, i32, i32
  }
  func.func @transform_7(%arg0: i32) -> (i32, i32, i32) {
    %c0_i32 = arith.constant 0 : i32
    %c0_i32_0 = arith.constant 0 : i32
    %c0_i32_1 = arith.constant 0 : i32
    %c0_i32_2 = arith.constant 0 : i32
    return %c0_i32, %c0_i32_0, %c0_i32_1 : i32, i32, i32
  }
  func.func @transform_8(%arg0: i32) -> (i32, i32, i32) {
    %c0_i32 = arith.constant 0 : i32
    %c0_i32_0 = arith.constant 0 : i32
    %c0_i32_1 = arith.constant 0 : i32
    %c0_i32_2 = arith.constant 0 : i32
    return %c0_i32, %c0_i32_0, %c0_i32_1 : i32, i32, i32
  }
  func.func @transform_9(%arg0: i32) -> (i32, i32, i32) {
    %c0_i32 = arith.constant 0 : i32
    %c0_i32_0 = arith.constant 0 : i32
    %c0_i32_1 = arith.constant 0 : i32
    %c0_i32_2 = arith.constant 0 : i32
    return %c0_i32, %c0_i32_0, %c0_i32_1 : i32, i32, i32
  }
  func.func @transform_10(%arg0: i32) -> (i32, i32, i32) {
    %c0_i32 = arith.constant 0 : i32
    %c0_i32_0 = arith.constant 0 : i32
    %c0_i32_1 = arith.constant 0 : i32
    %c0_i32_2 = arith.constant 0 : i32
    return %c0_i32, %c0_i32_0, %c0_i32_1 : i32, i32, i32
  }
  func.func @transform_11(%arg0: i32) -> (i32, i32, i32) {
    %c0_i32 = arith.constant 0 : i32
    %c0_i32_0 = arith.constant 0 : i32
    %c0_i32_1 = arith.constant 0 : i32
    %c0_i32_2 = arith.constant 0 : i32
    return %c0_i32, %c0_i32_0, %c0_i32_1 : i32, i32, i32
  }
  func.func @transform_12(%arg0: i32) -> (i32, i32, i32) {
    %c0_i32 = arith.constant 0 : i32
    %c0_i32_0 = arith.constant 0 : i32
    %c0_i32_1 = arith.constant 0 : i32
    %c0_i32_2 = arith.constant 0 : i32
    return %c0_i32, %c0_i32_0, %c0_i32_1 : i32, i32, i32
  }
  func.func @transform_13(%arg0: i32) -> (i32, i32, i32) {
    %c0_i32 = arith.constant 0 : i32
    %c0_i32_0 = arith.constant 0 : i32
    %c0_i32_1 = arith.constant 0 : i32
    %c0_i32_2 = arith.constant 0 : i32
    return %c0_i32, %c0_i32_0, %c0_i32_1 : i32, i32, i32
  }
  func.func @transform_14(%arg0: i32) -> (i32, i32) {
    %c0_i32 = arith.constant 0 : i32
    %c0_i32_0 = arith.constant 0 : i32
    %c0_i32_1 = arith.constant 0 : i32
    return %c0_i32, %c0_i32_0 : i32, i32
  }
  func.func @transform_15(%arg0: i32) -> (i32, i32) {
    %c0_i32 = arith.constant 0 : i32
    %c0_i32_0 = arith.constant 0 : i32
    %c0_i32_1 = arith.constant 0 : i32
    return %c0_i32, %c0_i32_0 : i32, i32
  }
  func.func @transform_16(%arg0: i32) -> (i32, i32) {
    %c0_i32 = arith.constant 0 : i32
    %c0_i32_0 = arith.constant 0 : i32
    %c0_i32_1 = arith.constant 0 : i32
    return %c0_i32, %c0_i32_0 : i32, i32
  }
  func.func @transform_17(%arg0: i32) -> (i32, i32) {
    %c0_i32 = arith.constant 0 : i32
    %c0_i32_0 = arith.constant 0 : i32
    %c0_i32_1 = arith.constant 0 : i32
    return %c0_i32, %c0_i32_0 : i32, i32
  }
  func.func @transform_18(%arg0: i32) -> (i32, i32) {
    %c0_i32 = arith.constant 0 : i32
    %c0_i32_0 = arith.constant 0 : i32
    %c0_i32_1 = arith.constant 0 : i32
    return %c0_i32, %c0_i32_0 : i32, i32
  }
}

</mosaic_0001>

<bundles_post_ra>
// kernel: bigram_lm_forward.1
= control target key start
LH: loop header
LB: loop body
LE: loop exit
PB: predicated region body
PF: predicated region fallthrough
CT: control target
= control target key end

     0   :  { %vm69_vm0 = vcmask 523264   ;;  %v5540_v19 = vmov 0.0   ;;  %vm5541_vm1 = vmmov 0   ;;  %vm280_vm2 = vcmask 130048   ;;  %s7245_s0 = inlined_call_operand.vmem [shape: f32[16,64], index: 0, kind: input, shape index: {}]   ;;  %s7246_s3 = inlined_call_operand.vmem [shape: f32[2,4,64,16], index: 3, kind: input, shape index: {}]   ;;  %s7247_s4 = inlined_call_operand.vmem [shape: f32[2,4,64,16], index: 4, kind: input, shape index: {}]   ;;  %s7248_s1 = inlined_call_operand.vmem [shape: f32[2,1,64], index: 1, kind: input, shape index: {}]   ;;  %s7249_s2 = inlined_call_operand.vmem [shape: f32[2,1,64], index: 2, kind: input, shape index: {}]   ;;  %s7250_s5 = inlined_call_operand.vmem [shape: f32[2,4,64,16], index: 5, kind: input, shape index: {}]   ;;  %s7251_s6 = inlined_call_operand.vmem [shape: f32[2,4,16,64], index: 6, kind: input, shape index: {}]   ;;  %s7252_s7 = inlined_call_operand.vmem [shape: f32[2,1,64], index: 7, kind: input, shape index: {}]   ;;  %s7253_s10 = inlined_call_operand.vmem [shape: f32[2,64,256], index: 10, kind: input, shape index: {}]   ;;  %s7254_s12 = inlined_call_operand.vmem [shape: f32[2,256,64], index: 12, kind: input, shape index: {}]   ;;  %s7255_s8 = inlined_call_operand.vmem [shape: f32[2,1,64], index: 8, kind: input, shape index: {}]   ;;  %s7256_s9 = inlined_call_operand.vmem [shape: f32[2,1,64], index: 9, kind: input, shape index: {}]   ;;  %s7257_s11 = inlined_call_operand.vmem [shape: f32[2,1,256], index: 11, kind: input, shape index: {}]   ;;  %s7258_s13 = inlined_call_operand.vmem [shape: f32[2,1,64], index: 13, kind: input, shape index: {}]   ;;  %s7259_s16 = inlined_call_operand.vmem [shape: f32[64,128], index: 16, kind: input, shape index: {}]   ;;  %s7260_s14 = inlined_call_operand.vmem [shape: f32[1,64], index: 14, kind: input, shape index: {}]   ;;  %s7261_s15 = inlined_call_operand.vmem [shape: f32[1,64], index: 15, kind: input, shape index: {}]   ;;  %s7262_s17 = inlined_call_operand.vmem [shape: f32[1,128], index: 17, kind: input, shape index: {}]   ;;  %s7263_s18 = inlined_call_operand.vmem [shape: f32[16,128], index: 18, kind: output, shape index: {}]  }
   0x1   :  { %7267 = sst [smem:[#allocation2_spill]] %s7245_s0  ;;  %4911 = vmatprep.subr.bf16.mxu0 %v5540_v19  ;;  %4923 = vmatprep.subr.bf16.mxu1 %v5540_v19  ;;  %v4343_v47 = vld [vmem:[%s7248_s1] ss:$0 sm:$0xff]  ;;  %v224_v54 = vld [vmem:[%s7250_s5 + $0x8] sm:$0xff]  ;;  %v225_v59 = vld [vmem:[%s7250_s5 + $0x10] sm:$0xff]  ;;  %vm423_vm3 = vcmask 1043456  }
   0x2   :  { %7268 = sst [smem:[#allocation3_spill]] %s7246_s3  ;;  %s7270_s29 = sld [smem:[#allocation2_spill]]  ;;  %4919 = vmatprep.mubr.msk.bf16.mxu0 %vm5541_vm1, %v5540_v19  ;;  %4931 = vmatprep.mubr.msk.bf16.mxu1 %vm5541_vm1, %v5540_v19  ;;  %v4344_v51 = vld [vmem:[%s7249_s2] ss:$0 sm:$0xff]  ;;  %v226_v60 = vld [vmem:[%s7250_s5 + $0x18] sm:$0xff]  ;;  %v228_v63 = vld [vmem:[%s7250_s5 + $0x28] sm:$0xff] }
   0x3   :  { %7269 = sst [smem:[#allocation4_spill]] %s7247_s4  ;;  %s7271_s20 = sld [smem:[#allocation3_spill]]  ;;  %v223_v53 = vld [vmem:[%s7250_s5] sm:$0xff]  ;;  %v232_v61 = vpack.c.bf16 %v226_v60, %v225_v59  ;;  %vm377_vm5 = vcmask 64512  }
   0x4   :  { %s7272_s24 = sld [smem:[#allocation4_spill]]  ;;  %v231_v57 = vpack.c.bf16 %v224_v54, %v223_v53  ;;  %v227_v62 = vld [vmem:[%s7250_s5 + $0x20] sm:$0xff] }
   0x8   :  { %v60_v0 = vld [vmem:[%s7270_s29] sm:$0xff]  ;;  %v61_v1 = vld [vmem:[%s7270_s29 + $0x8] sm:$0xff] }
   0x9   :  { %v70_v2 = vsel %vm69_vm0, %v60_v0, 0.0  ;;  %v73_v3 = vsel %vm69_vm0, %v61_v1, 0.0  ;;  %v114_v14 = vld [vmem:[%s7271_s20] sm:$0xff]  ;;  %v115_v15 = vld [vmem:[%s7271_s20 + $0x8] sm:$0xff]  ;;  %v116_v21 = vld [vmem:[%s7271_s20 + $0x10] sm:$0xff] }
   0xa   :  { %71 = vadd.xlane.f32.xlu0 %v70_v2  ;;  %v122_v16 = vpack.c.bf16 %v115_v15, %v114_v14  ;;  %v170_v17 = vld [vmem:[%s7272_s24] sm:$0xff]  ;;  %v171_v18 = vld [vmem:[%s7272_s24 + $0x8] sm:$0xff]  ;;  %v117_v22 = vld [vmem:[%s7271_s20 + $0x18] sm:$0xff] }
   0xb   :  { %v178_v20 = vpack.c.bf16 %v171_v18, %v170_v17  ;;  %v123_v23 = vpack.c.bf16 %v117_v22, %v116_v21  ;;  %v172_v24 = vld [vmem:[%s7272_s24 + $0x10] sm:$0xff]  ;;  %v173_v25 = vld [vmem:[%s7272_s24 + $0x18] sm:$0xff]  ;;  %v118_v27 = vld [vmem:[%s7271_s20 + $0x20] sm:$0xff] }
   0xc   :  { %4912 = vmatpush3.bf16.msra.mxu0 %v122_v16  ;;  %v179_v26 = vpack.c.bf16 %v173_v25, %v172_v24  ;;  %v119_v28 = vld [vmem:[%s7271_s20 + $0x28] sm:$0xff]  ;;  %v174_v30 = vld [vmem:[%s7272_s24 + $0x20] sm:$0xff]  ;;  %v120_v33 = vld [vmem:[%s7271_s20 + $0x30] sm:$0xff] }
   0xd   :  { %4924 = vmatpush3.bf16.msra.mxu1 %v178_v20  ;;  %4913 = vmatprep.subr.bf16.mxu0 %v5540_v19  ;;  %v124_v29 = vpack.c.bf16 %v119_v28, %v118_v27  ;;  %v175_v31 = vld [vmem:[%s7272_s24 + $0x28] sm:$0xff]  ;;  %v121_v34 = vld [vmem:[%s7271_s20 + $0x38] sm:$0xff]  ;;  %v176_v36 = vld [vmem:[%s7272_s24 + $0x30] sm:$0xff]  ;;  %v62_v27 = vlaneseq }
   0xe   :  { %74 = vadd.xlane.f32.xlu0 %v73_v3  ;;  %4925 = vmatprep.subr.bf16.mxu1 %v5540_v19  ;;  %v180_v32 = vpack.c.bf16 %v175_v31, %v174_v30  ;;  %v125_v35 = vpack.c.bf16 %v121_v34, %v120_v33  ;;  %v177_v37 = vld [vmem:[%s7272_s24 + $0x38] sm:$0xff] }
   0xf   :  { %v181_v38 = vpack.c.bf16 %v177_v37, %v176_v36  ;;  %v230_v2 = vld [vmem:[%s7250_s5 + $0x38] sm:$0xff]  ;;  %v5782_v28 = vshrl.u32 %v62_v27, 7 }
  0x10   :  { %4914 = vmatpush3.bf16.msra.mxu0 %v123_v23 }
  0x11   :  { %4926 = vmatpush3.bf16.msra.mxu1 %v179_v26  ;;  %4915 = vmatprep.subr.bf16.mxu0 %v5540_v19 }
  0x12   :  { %4927 = vmatprep.subr.bf16.mxu1 %v5540_v19 }
  0x14   :  { %4916 = vmatpush3.bf16.msra.mxu0 %v124_v29  ;;  %v65_v29 = vand.u32 127, %v62_v27  ;;  %v4362_v27 = vld [vmem:[%s7272_s24 + $0x48] sm:$0xff] }
  0x15   :  { %4928 = vmatpush3.bf16.msra.mxu1 %v180_v32  ;;  %4917 = vmatprep.subr.bf16.mxu0 %v5540_v19 }
  0x16   :  { %4929 = vmatprep.subr.bf16.mxu1 %v5540_v19  ;;  %vm5785_vm4 = vcmp.gt.s32.totalorder %v65_v29, %v5782_v28 }
  0x18   :  { %4918 = vmatpush3.bf16.msra.mxu0 %v125_v35 }
  0x19   :  { %4930 = vmatpush3.bf16.msra.mxu1 %v181_v38  ;;  %4935 = vmatprep.subr.bf16.mxu0 %v5540_v19 }
  0x1a   :  { %4947 = vmatprep.subr.bf16.mxu1 %v5540_v19 }
  0x97   :  { %v72_v4 = vpop.xlane.xlu0 %71 }
  0x98   :  { %v77_v5 = vmul.f32 0.015625, %v72_v4 }
  0x9a   :  { %v5646_v6 = vsub.f32 %v60_v0, %v77_v5  ;;  %v233_v0 = vpack.c.bf16 %v228_v63, %v227_v62 }
  0x9b   :  { %v75_v7 = vpop.xlane.xlu0 %74 }
  0x9c   :  { %v78_v8 = vmul.f32 0.015625, %v75_v7  ;;  %v81_v9 = vmul.f32 %v5646_v6, %v5646_v6 }
  0x9e   :  { %v5650_v10 = vsub.f32 %v61_v1, %v78_v8  ;;  %v83_v11 = vsel %vm69_vm0, %v81_v9, 0.0  ;;  %v229_v1 = vld [vmem:[%s7250_s5 + $0x30] sm:$0xff] }
  0x9f   :  { %84 = vadd.xlane.f32.xlu1 %v83_v11  ;;  %v234_v3 = vpack.c.bf16 %v230_v2, %v229_v1 }
  0xa0   :  { %v82_v12 = vmul.f32 %v5650_v10, %v5650_v10 }
  0xa2   :  { %v86_v13 = vsel %vm69_vm0, %v82_v12, 0.0 }
  0xa3   :  { %87 = vadd.xlane.f32.xlu1 %v86_v13 }
 0x12c   :  { %v85_v39 = vpop.xlane.xlu1 %84 }
 0x12d   :  { %v89_v40 = vmul.f32 0.015625, %v85_v39 }
 0x12f   :  { %v91_v41 = vadd.f32 1e-05, %v89_v40 }
 0x130   :  { %v88_v42 = vpop.xlane.xlu1 %87 }
 0x131   :  { %5454 = vrsqrt.f32 %v91_v41  ;;  %v90_v43 = vmul.f32 0.015625, %v88_v42 }
 0x133   :  { %v92_v44 = vadd.f32 1e-05, %v90_v43 }
 0x135   :  { %5456 = vrsqrt.f32 %v92_v44 }
 0x13b   :  { %v5455_v45 = vpop.eup %5454 }
 0x13c   :  { %v95_v46 = vmul.f32 %v5455_v45, %v5646_v6 }
 0x13e   :  { %v103_v49 = vmul.f32 %v4343_v47, %v95_v46 }
 0x13f   :  { %v5457_v48 = vpop.eup %5456 }
 0x140   :  { %v96_v50 = vmul.f32 %v5457_v48, %v5650_v10  ;;  %v111_v55 = vadd.f32 %v4344_v51, %v103_v49 }
 0x142   :  { %v104_v52 = vmul.f32 %v4343_v47, %v96_v50 }
 0x144   :  { %v112_v56 = vadd.f32 %v4344_v51, %v104_v52 }
 0x146   :  { %v5732_v58 = vpack.c.bf16 %v112_v56, %v111_v55 }
 0x148   :  { %4920 = vmatmul.mubr.msk.bf16.vlgmr.msra.gmra.mrb[0].mxu0 %vm69_vm0, %v5732_v58  ;;  %4932 = vmatmul.mubr.msk.bf16.vlgmr.msra.gmra.mrb[0].mxu1 %vm69_vm0, %v5732_v58 }
 0x149   :  { %4936 = vmatpush3.bf16.msra.mxu0 %v231_v57  ;;  %4943 = vmatprep.mubr.msk.bf16.mxu0 %vm5541_vm1, %v5540_v19 }
 0x14a   :  { %4937 = vmatprep.subr.bf16.mxu0 %v5540_v19  ;;  %4949 = vmatprep.mubr.msk.bf16.mxu1 %vm5541_vm1, %v5540_v19 }
 0x14d   :  { %4938 = vmatpush3.bf16.msra.mxu0 %v232_v61 }
 0x14e   :  { %4939 = vmatprep.subr.bf16.mxu0 %v5540_v19 }
 0x151   :  { %4940 = vmatpush3.bf16.msra.mxu0 %v233_v0 }
 0x152   :  { %4941 = vmatprep.subr.bf16.mxu0 %v5540_v19 }
 0x155   :  { %4942 = vmatpush3.bf16.msra.mxu0 %v234_v3 }
 0x156   :  { %4959 = vmatprep.subr.bf16.mxu0 %v5540_v19 }
 0x158   :  { %4944 = vmatmul.mubr.msk.bf16.vlgmr.msra.gmra.mrb[4].mxu0 %vm69_vm0, %v5732_v58 }
 0x159   :  { %4961 = vmatprep.mubr.msk.bf16.mxu0 %vm5541_vm1, %v5540_v19 }
 0x21b   :  { %v163_v4 = vpop.f32.mrb[0].mxu0  ;;  %v216_v5 = vpop.f32.mrb[0].mxu1 }
 0x21c   :  { %v278_v6 = vpack.c.bf16 %v216_v5, %v216_v5  ;;  %v4921_v7 = vpop.f32.mrb[1].mxu0  ;;  %v4933_v8 = vpop.f32.mrb[1].mxu1  ;;  %v276_v15 = vpack.c.bf16 %v163_v4, %v163_v4 }
 0x21d   :  { %v166_v9 = vpop.f32.mrb[2].mxu0  ;;  %v219_v10 = vpop.f32.mrb[2].mxu1 }
 0x21e   :  { %v285_v11 = vsel %vm280_vm2, %v278_v6, 0  ;;  %v4922_v12 = vpop.f32.mrb[3].mxu0  ;;  %v4934_v13 = vpop.f32.mrb[3].mxu1  ;;  %v279_v14 = vpack.c.bf16 %v219_v10, %v219_v10  ;;  %v277_v18 = vpack.c.bf16 %v166_v9, %v166_v9 }
 0x21f   :  { %4948 = vmatpush3.bf16.xpose.msra.mxu1 %v285_v11 }
 0x220   :  { %4953 = vmatprep.subr.bf16.mxu1 %v5540_v19  ;;  %v331_v16 = vsel %vm280_vm2, %v279_v14, 0  ;;  %v4352_v14 = vld [vmem:[%s7271_s20 + $0x40] sm:$0xff] }
 0x226   :  { %4950 = vmatmul.mubr.msk.bf16.vlgmr.msra.gmra.mrb[4].mxu1 %vm280_vm2, %v276_v15  ;;  %v4353_v15 = vld [vmem:[%s7271_s20 + $0x48] sm:$0xff] }
 0x227   :  { %4954 = vmatpush3.bf16.xpose.msra.mxu1 %v331_v16  ;;  %4955 = vmatprep.mubr.msk.bf16.mxu1 %vm5541_vm1, %v5540_v19 }
 0x228   :  { %4965 = vmatprep.subr.bf16.mxu1 %v5540_v19 }
 0x22b   :  { %v269_v17 = vpop.f32.mrb[4].mxu0 }
 0x22c   :  { %v418_v20 = vpack.c.bf16 %v269_v17, %v269_v17  ;;  %v4945_v21 = vpop.f32.mrb[5].mxu0 }
 0x22d   :  { %v272_v22 = vpop.f32.mrb[6].mxu0  ;;  %v4354_v21 = vld [vmem:[%s7271_s20 + $0x50] sm:$0xff] }
 0x22e   :  { %v425_v23 = vsel %vm423_vm3, %v418_v20, 0  ;;  %v419_v24 = vpack.c.bf16 %v272_v22, %v272_v22  ;;  %v4946_v25 = vpop.f32.mrb[7].mxu0  ;;  %4956 = vmatmul.mubr.msk.bf16.vlgmr.msra.gmra.mrb[8].mxu1 %vm280_vm2, %v277_v18  ;;  %v526_v18 = vpack.c.bf16 %v4353_v15, %v4352_v14  ;;  %v4355_v22 = vld [vmem:[%s7271_s20 + $0x58] sm:$0xff] }
 0x22f   :  { %4960 = vmatpush3.bf16.msra.mxu0 %v425_v23  ;;  %4967 = vmatprep.mubr.msk.bf16.mxu1 %vm5541_vm1, %v5540_v19  ;;  %v527_v23 = vpack.c.bf16 %v4355_v22, %v4354_v21  ;;  %v4357_v25 = vld [vmem:[%s7271_s20 + $0x68] sm:$0xff] }
 0x230   :  { %v471_v26 = vsel %vm423_vm3, %v419_v24, 0  ;;  %4971 = vmatprep.subr.bf16.mxu0 %v5540_v19  ;;  %v4356_v24 = vld [vmem:[%s7271_s20 + $0x60] sm:$0xff] }
 0x231   :  { %4966 = vmatpush3.bf16.msra.mxu1 %v471_v26  ;;  %v4361_v26 = vld [vmem:[%s7272_s24 + $0x40] sm:$0xff] }
 0x232   :  { %4983 = vmatprep.subr.bf16.mxu1 %v5540_v19 }
 0x2f9   :  { %v321_v31 = vpop.f32.mrb[4].mxu1 }
 0x2fa   :  { %v373_v32 = vmul.f32 4.0, %v321_v31  ;;  %v4951_v33 = vpop.f32.mrb[5].mxu1 }
 0x2fb   :  { %v324_v34 = vpop.f32.mrb[6].mxu1  ;;  %v580_v33 = vpack.c.bf16 %v4362_v27, %v4361_v26 }
 0x2fc   :  { %v375_v35 = vsel %vm5785_vm4, -inf, %v373_v32  ;;  %v4952_v36 = vpop.f32.mrb[7].mxu1  ;;  %v528_v32 = vpack.c.bf16 %v4357_v25, %v4356_v24  ;;  %v4358_v34 = vld [vmem:[%s7271_s20 + $0x70] sm:$0xff] }
 0x2fd   :  { %v378_v37 = vsel %vm377_vm5, %v375_v35, -inf  ;;  %v4359_v36 = vld [vmem:[%s7271_s20 + $0x78] sm:$0xff] }
 0x2fe   :  { %v379_v38 = vrot.slane %v378_v37, 4 }
 0x300   :  { %v380_v39 = vmax.f32 %v378_v37, %v379_v38  ;;  %v4363_v37 = vld [vmem:[%s7272_s24 + $0x50] sm:$0xff]  ;;  %v4364_v38 = vld [vmem:[%s7272_s24 + $0x58] sm:$0xff] }
 0x301   :  { %v367_v40 = vpop.f32.mrb[8].mxu1 }
 0x302   :  { %v381_v41 = vrot.slane %v380_v39, 2  ;;  %v374_v42 = vmul.f32 4.0, %v367_v40  ;;  %v4957_v43 = vpop.f32.mrb[9].mxu1  ;;  %v581_v40 = vpack.c.bf16 %v4364_v38, %v4363_v37 }
 0x303   :  { %v370_v44 = vpop.f32.mrb[10].mxu1  ;;  %v4370_v43 = vld [vmem:[%s7250_s5 + $0x40] sm:$0xff] }
 0x304   :  { %v382_v45 = vmax.f32 %v380_v39, %v381_v41  ;;  %v376_v46 = vsel %vm5785_vm4, -inf, %v374_v42  ;;  %v4958_v47 = vpop.f32.mrb[11].mxu1  ;;  %v529_v39 = vpack.c.bf16 %v4359_v36, %v4358_v34  ;;  %v4365_v41 = vld [vmem:[%s7272_s24 + $0x60] sm:$0xff]  ;;  %v4366_v42 = vld [vmem:[%s7272_s24 + $0x68] sm:$0xff] }
 0x305   :  { %v385_v48 = vsel %vm377_vm5, %v376_v46, -inf  ;;  %v4371_v44 = vld [vmem:[%s7250_s5 + $0x48] sm:$0xff]  ;;  %v4367_v47 = vld [vmem:[%s7272_s24 + $0x70] sm:$0xff] }
 0x306   :  { %v383_v49 = vrot.slane %v382_v45, 1  ;;  %v386_v50 = vrot.slane %v385_v48, 4 }
 0x308   :  { %v384_v51 = vmax.f32 %v382_v45, %v383_v49  ;;  %v387_v52 = vmax.f32 %v385_v48, %v386_v50  ;;  %v582_v45 = vpack.c.bf16 %v4366_v42, %v4365_v41  ;;  %v4368_v48 = vld [vmem:[%s7272_s24 + $0x78] sm:$0xff]  ;;  %v4372_v49 = vld [vmem:[%s7250_s5 + $0x50] sm:$0xff] }
 0x309   :  { %v4373_v50 = vld [vmem:[%s7250_s5 + $0x58] sm:$0xff] }
 0x30a   :  { %v392_v53 = vsub.f32 %v375_v35, %v384_v51  ;;  %v388_v54 = vrot.slane %v387_v52, 2  ;;  %v583_v51 = vpack.c.bf16 %v4368_v48, %v4367_v47 }
 0x30c   :  { %v394_v55 = vmul.f32 1.442695, %v392_v53  ;;  %v389_v56 = vmax.f32 %v387_v52, %v388_v54  ;;  %v635_v52 = vpack.c.bf16 %v4373_v50, %v4372_v49  ;;  %v4374_v53 = vld [vmem:[%s7250_s5 + $0x60] sm:$0xff]  ;;  %v4375_v54 = vld [vmem:[%s7250_s5 + $0x68] sm:$0xff] }
 0x30e   :  { %5458 = vpow2.f32 %v394_v55  ;;  %v390_v57 = vrot.slane %v389_v56, 1  ;;  %v636_v55 = vpack.c.bf16 %v4375_v54, %v4374_v53 }
 0x310   :  { %v391_v59 = vmax.f32 %v389_v56, %v390_v57  ;;  %v4376_v56 = vld [vmem:[%s7250_s5 + $0x70] sm:$0xff]  ;;  %v4377_v57 = vld [vmem:[%s7250_s5 + $0x78] sm:$0xff] }
 0x312   :  { %v393_v60 = vsub.f32 %v376_v46, %v391_v59  ;;  %v634_v46 = vpack.c.bf16 %v4371_v44, %v4370_v43  ;;  %v637_v59 = vpack.c.bf16 %v4377_v57, %v4376_v56 }
 0x314   :  { %v396_v61 = vmul.f32 1.442695, %v393_v60 }
 0x316   :  { %5460 = vpow2.f32 %v396_v61 }
 0x318   :  { %v5459_v62 = vpop.eup %5458 }
 0x319   :  { %v398_v63 = vsel %vm377_vm5, %v5459_v62, 0.0 }
 0x31a   :  { %v399_v0 = vrot.slane %v398_v63, 4 }
 0x31c   :  { %v400_v1 = vadd.f32 %v399_v0, %v398_v63 }
 0x31e   :  { %v401_v2 = vrot.slane %v400_v1, 2 }
 0x320   :  { %v5461_v3 = vpop.eup %5460  ;;  %v402_v4 = vadd.f32 %v401_v2, %v400_v1 }
 0x321   :  { %v405_v5 = vsel %vm377_vm5, %v5461_v3, 0.0 }
 0x322   :  { %v403_v6 = vrot.slane %v402_v4, 1  ;;  %v406_v7 = vrot.slane %v405_v5, 4 }
 0x324   :  { %v404_v8 = vadd.f32 %v403_v6, %v402_v4  ;;  %v407_v9 = vadd.f32 %v406_v7, %v405_v5 }
 0x326   :  { %5462 = vrcp.f32 %v404_v8  ;;  %v408_v10 = vrot.slane %v407_v9, 2 }
 0x328   :  { %v409_v11 = vadd.f32 %v408_v10, %v407_v9 }
 0x32a   :  { %v410_v12 = vrot.slane %v409_v11, 1 }
 0x32c   :  { %v411_v13 = vadd.f32 %v410_v12, %v409_v11 }
 0x32e   :  { %5464 = vrcp.f32 %v411_v13 }
 0x330   :  { %v5463_v16 = vpop.eup %5462 }
 0x331   :  { %v414_v17 = vmul.f32 %v5463_v16, %v5459_v62 }
 0x333   :  { %v416_v20 = vpack.c.bf16 %v414_v17, %v414_v17 }
 0x335   :  { %4962 = vmatmul.mubr.msk.bf16.vlgmr.msra.gmra.mrb[8].mxu0 %vm377_vm5, %v416_v20 }
 0x336   :  { %4972 = vmatpush3.bf16.msra.mxu0 %v526_v18  ;;  %4979 = vmatprep.mubr.msk.bf16.mxu0 %vm5541_vm1, %v5540_v19 }
 0x337   :  { %4973 = vmatprep.subr.bf16.mxu0 %v5540_v19 }
 0x338   :  { %v5465_v29 = vpop.eup %5464 }
 0x339   :  { %v415_v31 = vmul.f32 %v5465_v29, %v5461_v3 }
 0x33a   :  { %4974 = vmatpush3.bf16.msra.mxu0 %v527_v23 }
 0x33b   :  { %4975 = vmatprep.subr.bf16.mxu0 %v5540_v19  ;;  %v417_v35 = vpack.c.bf16 %v415_v31, %v415_v31 }
 0x33d   :  { %4968 = vmatmul.mubr.msk.bf16.vlgmr.msra.gmra.mrb[12].mxu1 %vm377_vm5, %v417_v35 }
 0x33e   :  { %4976 = vmatpush3.bf16.msra.mxu0 %v528_v32  ;;  %4984 = vmatpush3.bf16.msra.mxu1 %v580_v33 }
 0x33f   :  { %4977 = vmatprep.subr.bf16.mxu0 %v5540_v19  ;;  %4985 = vmatprep.subr.bf16.mxu1 %v5540_v19 }
 0x340   :  { %4991 = vmatprep.mubr.msk.bf16.mxu1 %vm5541_vm1, %v5540_v19 }
 0x342   :  { %4978 = vmatpush3.bf16.msra.mxu0 %v529_v39  ;;  %4986 = vmatpush3.bf16.msra.mxu1 %v581_v40 }
 0x343   :  { %4987 = vmatprep.subr.bf16.mxu1 %v5540_v19  ;;  %4995 = vmatprep.subr.bf16.mxu0 %v5540_v19 }
 0x345   :  { %4980 = vmatmul.mubr.msk.bf16.vlgmr.msra.gmra.mrb[12].mxu0 %vm69_vm0, %v5732_v58 }
 0x346   :  { %4988 = vmatpush3.bf16.msra.mxu1 %v582_v45  ;;  %4996 = vmatpush3.bf16.msra.mxu0 %v634_v46 }
 0x347   :  { %4989 = vmatprep.subr.bf16.mxu1 %v5540_v19  ;;  %4997 = vmatprep.subr.bf16.mxu0 %v5540_v19 }
 0x348   :  { %5003 = vmatprep.mubr.msk.bf16.mxu0 %vm5541_vm1, %v5540_v19 }
 0x34a   :  { %4990 = vmatpush3.bf16.msra.mxu1 %v583_v51  ;;  %4998 = vmatpush3.bf16.msra.mxu0 %v635_v52 }
 0x34b   :  { %4999 = vmatprep.subr.bf16.mxu0 %v5540_v19  ;;  %5007 = vmatprep.subr.bf16.mxu1 %v5540_v19 }
 0x34d   :  { %4992 = vmatmul.mubr.msk.bf16.vlgmr.msra.gmra.mrb[16].mxu1 %vm69_vm0, %v5732_v58 }
 0x34e   :  { %5000 = vmatpush3.bf16.msra.mxu0 %v636_v55  ;;  %5009 = vmatprep.mubr.msk.bf16.mxu1 %vm5541_vm1, %v5540_v19 }
 0x34f   :  { %5001 = vmatprep.subr.bf16.mxu0 %v5540_v19 }
 0x352   :  { %5002 = vmatpush3.bf16.msra.mxu0 %v637_v59 }
 0x353   :  { %5019 = vmatprep.subr.bf16.mxu0 %v5540_v19 }
 0x355   :  { %5004 = vmatmul.mubr.msk.bf16.vlgmr.msra.gmra.mrb[16].mxu0 %vm69_vm0, %v5732_v58 }
 0x356   :  { %5021 = vmatprep.mubr.msk.bf16.mxu0 %vm5541_vm1, %v5540_v19 }
 0x408   :  { %v5899_v60 = vpop.f32.mrb[8].mxu0 }
 0x409   :  { %v4963_v61 = vpop.f32.mrb[9].mxu0 }
 0x40a   :  { %v464_v62 = vpop.f32.mrb[10].mxu0 }
 0x40b   :  { %v4964_v63 = vpop.f32.mrb[11].mxu0 }
 0x410   :  { %v5901_v0 = vpop.f32.mrb[12].mxu1 }
 0x411   :  { %v513_v1 = vpack.c.bf16 %v5901_v0, %v5899_v60  ;;  %v4969_v2 = vpop.f32.mrb[13].mxu1  ;;  %v4402_v60 = vld [vmem:[%s7272_s24 + $0xb0] sm:$0xff]  ;;  %v4403_v0 = vld [vmem:[%s7272_s24 + $0xb8] sm:$0xff] }
 0x412   :  { %v510_v3 = vpop.f32.mrb[14].mxu1 }
 0x413   :  { %v4970_v4 = vpop.f32.mrb[15].mxu1 }
 0x418   :  { %v564_v5 = vpop.f32.mrb[12].mxu0 }
 0x419   :  { %v4981_v6 = vpop.f32.mrb[13].mxu0  ;;  %v679_v17 = vpack.c.bf16 %v564_v5, %v564_v5 }
 0x41a   :  { %v567_v7 = vpop.f32.mrb[14].mxu0 }
 0x41b   :  { %v4982_v8 = vpop.f32.mrb[15].mxu0  ;;  %v680_v26 = vpack.c.bf16 %v567_v7, %v567_v7 }
 0x420   :  { %v618_v9 = vpop.f32.mrb[16].mxu1 }
 0x421   :  { %v681_v10 = vpack.c.bf16 %v618_v9, %v618_v9  ;;  %v4993_v11 = vpop.f32.mrb[17].mxu1 }
 0x422   :  { %v621_v12 = vpop.f32.mrb[18].mxu1 }
 0x423   :  { %v687_v13 = vsel %vm280_vm2, %v681_v10, 0  ;;  %v4994_v14 = vpop.f32.mrb[19].mxu1  ;;  %v682_v15 = vpack.c.bf16 %v621_v12, %v621_v12 }
 0x424   :  { %5008 = vmatpush3.bf16.xpose.msra.mxu1 %v687_v13 }
 0x425   :  { %5013 = vmatprep.subr.bf16.mxu1 %v5540_v19  ;;  %v733_v22 = vsel %vm280_vm2, %v682_v15, 0 }
 0x428   :  { %v672_v16 = vpop.f32.mrb[16].mxu0 }
 0x429   :  { %v819_v18 = vpack.c.bf16 %v672_v16, %v672_v16  ;;  %v5005_v20 = vpop.f32.mrb[17].mxu0 }
 0x42a   :  { %v675_v21 = vpop.f32.mrb[18].mxu0  ;;  %v514_v20 = vld [vmem:[%s7251_s6] sm:$0xff] }
 0x42b   :  { %v825_v23 = vsel %vm423_vm3, %v819_v18, 0  ;;  %v5006_v24 = vpop.f32.mrb[19].mxu0  ;;  %5010 = vmatmul.mubr.msk.bf16.vlgmr.msra.gmra.mrb[20].mxu1 %vm280_vm2, %v679_v17  ;;  %v820_v25 = vpack.c.bf16 %v675_v21, %v675_v21  ;;  %v515_v21 = vld [vmem:[%s7251_s6 + $0x8] sm:$0xff] }
 0x42c   :  { %5014 = vmatpush3.bf16.xpose.msra.mxu1 %v733_v22  ;;  %5020 = vmatpush3.bf16.msra.mxu0 %v825_v23  ;;  %v516_v24 = vpack.c.bf16 %v515_v21, %v514_v20 }
 0x42d   :  { %5015 = vmatprep.mubr.msk.bf16.mxu1 %vm5541_vm1, %v5540_v19  ;;  %5025 = vmatprep.subr.bf16.mxu1 %v5540_v19  ;;  %v871_v27 = vsel %vm423_vm3, %v820_v25, 0 }
 0x42e   :  { %5031 = vmatprep.subr.bf16.mxu0 %v5540_v19 }
 0x433   :  { %5016 = vmatmul.mubr.msk.bf16.vlgmr.msra.gmra.mrb[24].mxu1 %vm280_vm2, %v680_v26  ;;  %v4396_v26 = vld [vmem:[%s7272_s24 + $0x80] sm:$0xff] }
 0x434   :  { %5026 = vmatpush3.bf16.msra.mxu1 %v871_v27  ;;  %5027 = vmatprep.mubr.msk.bf16.mxu1 %vm5541_vm1, %v5540_v19  ;;  %v4397_v27 = vld [vmem:[%s7272_s24 + $0x88] sm:$0xff] }
 0x435   :  { %5037 = vmatprep.subr.bf16.mxu1 %v5540_v19 }
 0x4fe   :  { %v723_v29 = vpop.f32.mrb[20].mxu1 }
 0x4ff   :  { %v775_v31 = vmul.f32 4.0, %v723_v29  ;;  %v5011_v32 = vpop.f32.mrb[21].mxu1  ;;  %v1069_v29 = vpack.c.bf16 %v4397_v27, %v4396_v26 }
 0x500   :  { %v726_v33 = vpop.f32.mrb[22].mxu1  ;;  %v4399_v32 = vld [vmem:[%s7272_s24 + $0x98] sm:$0xff] }
 0x501   :  { %v777_v34 = vsel %vm5785_vm4, -inf, %v775_v31  ;;  %v5012_v35 = vpop.f32.mrb[23].mxu1  ;;  %v4398_v31 = vld [vmem:[%s7272_s24 + $0x90] sm:$0xff] }
 0x502   :  { %v779_v36 = vsel %vm377_vm5, %v777_v34, -inf  ;;  %v1070_v33 = vpack.c.bf16 %v4399_v32, %v4398_v31  ;;  %v4401_v35 = vld [vmem:[%s7272_s24 + $0xa8] sm:$0xff] }
 0x503   :  { %v780_v37 = vrot.slane %v779_v36, 4 }
 0x505   :  { %v781_v38 = vmax.f32 %v779_v36, %v780_v37  ;;  %v4383_v37 = vld [vmem:[%s7251_s6 + $0x10] sm:$0xff] }
 0x506   :  { %v769_v39 = vpop.f32.mrb[24].mxu1 }
 0x507   :  { %v782_v40 = vrot.slane %v781_v38, 2  ;;  %v776_v41 = vmul.f32 4.0, %v769_v39  ;;  %v5017_v42 = vpop.f32.mrb[25].mxu1 }
 0x508   :  { %v772_v43 = vpop.f32.mrb[26].mxu1 }
 0x509   :  { %v783_v44 = vmax.f32 %v781_v38, %v782_v40  ;;  %v778_v45 = vsel %vm5785_vm4, -inf, %v776_v41  ;;  %v5018_v46 = vpop.f32.mrb[27].mxu1  ;;  %v4384_v38 = vld [vmem:[%s7251_s6 + $0x18] sm:$0xff] }
 0x50a   :  { %v786_v47 = vsel %vm377_vm5, %v778_v45, -inf  ;;  %v917_v39 = vpack.c.bf16 %v4384_v38, %v4383_v37 }
 0x50b   :  { %v784_v48 = vrot.slane %v783_v44, 1  ;;  %v787_v49 = vrot.slane %v786_v47, 4 }
 0x50d   :  { %v785_v50 = vmax.f32 %v783_v44, %v784_v48  ;;  %v788_v51 = vmax.f32 %v786_v47, %v787_v49  ;;  %v4387_v44 = vld [vmem:[%s7271_s20 + $0x80] sm:$0xff] }
 0x50f   :  { %v793_v52 = vsub.f32 %v777_v34, %v785_v50  ;;  %v789_v53 = vrot.slane %v788_v51, 2  ;;  %v4400_v34 = vld [vmem:[%s7272_s24 + $0xa0] sm:$0xff]  ;;  %v4389_v50 = vld [vmem:[%s7271_s20 + $0x90] sm:$0xff] }
 0x510   :  { %v1071_v36 = vpack.c.bf16 %v4401_v35, %v4400_v34 }
 0x511   :  { %v795_v54 = vmul.f32 1.442695, %v793_v52  ;;  %v790_v55 = vmax.f32 %v788_v51, %v789_v53  ;;  %v4390_v51 = vld [vmem:[%s7271_s20 + $0x98] sm:$0xff] }
 0x513   :  { %5466 = vpow2.f32 %v795_v54  ;;  %v791_v56 = vrot.slane %v790_v55, 1  ;;  %v1016_v54 = vpack.c.bf16 %v4390_v51, %v4389_v50 }
 0x515   :  { %v792_v57 = vmax.f32 %v790_v55, %v791_v56  ;;  %v4391_v55 = vld [vmem:[%s7271_s20 + $0xa0] sm:$0xff]  ;;  %v4392_v56 = vld [vmem:[%s7271_s20 + $0xa8] sm:$0xff] }
 0x517   :  { %v794_v59 = vsub.f32 %v778_v45, %v792_v57  ;;  %v4388_v45 = vld [vmem:[%s7271_s20 + $0x88] sm:$0xff] }
 0x518   :  { %v1015_v47 = vpack.c.bf16 %v4388_v45, %v4387_v44 }
 0x519   :  { %v797_v61 = vmul.f32 1.442695, %v794_v59  ;;  %v1017_v59 = vpack.c.bf16 %v4392_v56, %v4391_v55 }
 0x51b   :  { %5468 = vpow2.f32 %v797_v61 }
 0x51d   :  { %v5467_v62 = vpop.eup %5466 }
 0x51e   :  { %v799_v63 = vsel %vm377_vm5, %v5467_v62, 0.0 }
 0x51f   :  { %v800_v2 = vrot.slane %v799_v63, 4 }
 0x521   :  { %v801_v3 = vadd.f32 %v800_v2, %v799_v63  ;;  %v4394_v63 = vld [vmem:[%s7271_s20 + $0xb8] sm:$0xff] }
 0x523   :  { %v802_v4 = vrot.slane %v801_v3, 2 }
 0x525   :  { %v5469_v5 = vpop.eup %5468  ;;  %v803_v6 = vadd.f32 %v802_v4, %v801_v3 }
 0x526   :  { %v806_v7 = vsel %vm377_vm5, %v5469_v5, 0.0 }
 0x527   :  { %v804_v8 = vrot.slane %v803_v6, 1  ;;  %v807_v9 = vrot.slane %v806_v7, 4 }
 0x529   :  { %v805_v10 = vadd.f32 %v804_v8, %v803_v6  ;;  %v808_v11 = vadd.f32 %v807_v9, %v806_v7  ;;  %v4406_v6 = vld [vmem:[%s7250_s5 + $0x88] sm:$0xff]  ;;  %v4407_v8 = vld [vmem:[%s7250_s5 + $0x90] sm:$0xff]  ;;  %v4408_v9 = vld [vmem:[%s7250_s5 + $0x98] sm:$0xff] }
 0x52b   :  { %5470 = vrcp.f32 %v805_v10  ;;  %v809_v12 = vrot.slane %v808_v11, 2  ;;  %v1124_v10 = vpack.c.bf16 %v4408_v9, %v4407_v8 }
 0x52d   :  { %v810_v13 = vadd.f32 %v809_v12, %v808_v11  ;;  %v4409_v11 = vld [vmem:[%s7250_s5 + $0xa0] sm:$0xff]  ;;  %v4410_v12 = vld [vmem:[%s7250_s5 + $0xa8] sm:$0xff] }
 0x52f   :  { %v811_v14 = vrot.slane %v810_v13, 1 }
 0x531   :  { %v812_v15 = vadd.f32 %v811_v14, %v810_v13  ;;  %v1125_v14 = vpack.c.bf16 %v4410_v12, %v4409_v11 }
 0x533   :  { %5472 = vrcp.f32 %v812_v15 }
 0x535   :  { %v5471_v16 = vpop.eup %5470 }
 0x536   :  { %v815_v17 = vmul.f32 %v5471_v16, %v5467_v62  ;;  %v4393_v62 = vld [vmem:[%s7271_s20 + $0xb0] sm:$0xff] }
 0x537   :  { %v1018_v4 = vpack.c.bf16 %v4394_v63, %v4393_v62 }
 0x538   :  { %v817_v18 = vpack.c.bf16 %v815_v17, %v815_v17  ;;  %v4411_v17 = vld [vmem:[%s7250_s5 + $0xb0] sm:$0xff] }
 0x53a   :  { %5022 = vmatmul.mubr.msk.bf16.vlgmr.msra.gmra.mrb[20].mxu0 %vm377_vm5, %v817_v18  ;;  %v4412_v18 = vld [vmem:[%s7250_s5 + $0xb8] sm:$0xff] }
 0x53b   :  { %5033 = vmatprep.mubr.msk.bf16.mxu0 %vm5541_vm1, %v5540_v19  ;;  %5032 = vmatpush3.bf16.msra.mxu0 %v917_v39 }
 0x53c   :  { %5043 = vmatprep.subr.bf16.mxu0 %v5540_v19 }
 0x53d   :  { %v5473_v22 = vpop.eup %5472 }
 0x53e   :  { %v816_v23 = vmul.f32 %v5473_v22, %v5469_v5  ;;  %v4405_v5 = vld [vmem:[%s7250_s5 + $0x80] sm:$0xff] }
 0x53f   :  { %v1123_v7 = vpack.c.bf16 %v4406_v6, %v4405_v5 }
 0x540   :  { %v818_v25 = vpack.c.bf16 %v816_v23, %v816_v23  ;;  %v1126_v23 = vpack.c.bf16 %v4412_v18, %v4411_v17 }
 0x542   :  { %5028 = vmatmul.mubr.msk.bf16.vlgmr.msra.gmra.mrb[28].mxu1 %vm377_vm5, %v818_v25 }
 0x543   :  { %5038 = vmatpush3.bf16.msra.mxu1 %v516_v24  ;;  %5039 = vmatprep.mubr.msk.bf16.mxu1 %vm5541_vm1, %v5540_v19 }
 0x544   :  { %5055 = vmatprep.subr.bf16.mxu1 %v5540_v19 }
 0x54a   :  { %5040 = vmatmul.mubr.msk.bf16.vlgmr.msra.gmra.mrb[32].mxu1 %vm280_vm2, %v513_v1  ;;  %v1072_v1 = vpack.c.bf16 %v4403_v0, %v4402_v60 }
 0x54b   :  { %5056 = vmatpush3.bf16.msra.mxu1 %v1069_v29  ;;  %5063 = vmatprep.mubr.msk.bf16.mxu1 %vm5541_vm1, %v5540_v19 }
 0x54c   :  { %5057 = vmatprep.subr.bf16.mxu1 %v5540_v19 }
 0x54f   :  { %5058 = vmatpush3.bf16.msra.mxu1 %v1070_v33 }
 0x550   :  { %5059 = vmatprep.subr.bf16.mxu1 %v5540_v19 }
 0x553   :  { %5060 = vmatpush3.bf16.msra.mxu1 %v1071_v36 }
 0x554   :  { %5061 = vmatprep.subr.bf16.mxu1 %v5540_v19 }
 0x557   :  { %5062 = vmatpush3.bf16.msra.mxu1 %v1072_v1 }
 0x558   :  { %5079 = vmatprep.subr.bf16.mxu1 %v5540_v19 }
 0x55a   :  { %5064 = vmatmul.mubr.msk.bf16.vlgmr.msra.gmra.mrb[36].mxu1 %vm69_vm0, %v5732_v58 }
 0x55b   :  { %5081 = vmatprep.mubr.msk.bf16.mxu1 %vm5541_vm1, %v5540_v19 }
 0x60d   :  { %v861_v40 = vpop.f32.mrb[20].mxu0 }
 0x60e   :  { %v5023_v41 = vpop.f32.mrb[21].mxu0 }
 0x60f   :  { %v864_v42 = vpop.f32.mrb[22].mxu0 }
 0x610   :  { %v5024_v43 = vpop.f32.mrb[23].mxu0 }
 0x615   :  { %v907_v46 = vpop.f32.mrb[28].mxu1 }
 0x616   :  { %v913_v48 = vpack.c.bf16 %v907_v46, %v861_v40  ;;  %v5029_v49 = vpop.f32.mrb[29].mxu1 }
 0x617   :  { %v910_v52 = vpop.f32.mrb[30].mxu1 }
 0x618   :  { %v5030_v53 = vpop.f32.mrb[31].mxu1  ;;  %5034 = vmatmul.mubr.msk.bf16.vlgmr.msra.gmra.mrb[24].mxu0 %vm280_vm2, %v913_v48 }
 0x619   :  { %5044 = vmatpush3.bf16.msra.mxu0 %v1015_v47  ;;  %5051 = vmatprep.mubr.msk.bf16.mxu0 %vm5541_vm1, %v5540_v19 }
 0x61a   :  { %5045 = vmatprep.subr.bf16.mxu0 %v5540_v19 }
 0x61d   :  { %5046 = vmatpush3.bf16.msra.mxu0 %v1016_v54  ;;  %v999_v57 = vpop.f32.mrb[32].mxu1 }
 0x61e   :  { %v5041_v61 = vpop.f32.mrb[33].mxu1  ;;  %5047 = vmatprep.subr.bf16.mxu0 %v5540_v19 }
 0x61f   :  { %v1002_v2 = vpop.f32.mrb[34].mxu1 }
 0x620   :  { %v5042_v3 = vpop.f32.mrb[35].mxu1 }
 0x621   :  { %5048 = vmatpush3.bf16.msra.mxu0 %v1017_v59 }
 0x622   :  { %5049 = vmatprep.subr.bf16.mxu0 %v5540_v19 }
 0x625   :  { %5050 = vmatpush3.bf16.msra.mxu0 %v1018_v4 }
 0x626   :  { %5067 = vmatprep.subr.bf16.mxu0 %v5540_v19 }
 0x628   :  { %5052 = vmatmul.mubr.msk.bf16.vlgmr.msra.gmra.mrb[28].mxu0 %vm69_vm0, %v5732_v58 }
 0x629   :  { %5068 = vmatpush3.bf16.msra.mxu0 %v1123_v7  ;;  %5075 = vmatprep.mubr.msk.bf16.mxu0 %vm5541_vm1, %v5540_v19 }
 0x62a   :  { %5069 = vmatprep.subr.bf16.mxu0 %v5540_v19 }
 0x62d   :  { %v1107_v13 = vpop.f32.mrb[36].mxu1  ;;  %5070 = vmatpush3.bf16.msra.mxu0 %v1124_v10 }
 0x62e   :  { %v1170_v15 = vpack.c.bf16 %v1107_v13, %v1107_v13  ;;  %v5065_v16 = vpop.f32.mrb[37].mxu1  ;;  %5071 = vmatprep.subr.bf16.mxu0 %v5540_v19 }
 0x62f   :  { %v1110_v20 = vpop.f32.mrb[38].mxu1 }
 0x630   :  { %v1176_v21 = vsel %vm280_vm2, %v1170_v15, 0  ;;  %v5066_v22 = vpop.f32.mrb[39].mxu1  ;;  %v1171_v32 = vpack.c.bf16 %v1110_v20, %v1110_v20 }
 0x631   :  { %5072 = vmatpush3.bf16.msra.mxu0 %v1125_v14  ;;  %5080 = vmatpush3.bf16.xpose.msra.mxu1 %v1176_v21 }
 0x632   :  { %5073 = vmatprep.subr.bf16.mxu0 %v5540_v19  ;;  %5085 = vmatprep.subr.bf16.mxu1 %v5540_v19  ;;  %v1222_v60 = vsel %vm280_vm2, %v1171_v32, 0 }
 0x635   :  { %5074 = vmatpush3.bf16.msra.mxu0 %v1126_v23 }
 0x636   :  { %5091 = vmatprep.subr.bf16.mxu0 %v5540_v19 }
 0x638   :  { %5076 = vmatmul.mubr.msk.bf16.vlgmr.msra.gmra.mrb[32].mxu0 %vm69_vm0, %v5732_v58 }
 0x639   :  { %5093 = vmatprep.mubr.msk.bf16.mxu0 %vm5541_vm1, %v5540_v19 }
 0x6eb   :  { %v955_v24 = vpop.f32.mrb[24].mxu0 }
 0x6ec   :  { %v6054_v25 = vadd.f32 %v999_v57, %v955_v24  ;;  %v5035_v26 = vpop.f32.mrb[25].mxu0 }
 0x6ed   :  { %v958_v27 = vpop.f32.mrb[26].mxu0 }
 0x6ee   :  { %v6056_v29 = vadd.f32 %v1002_v2, %v958_v27  ;;  %v5036_v31 = vpop.f32.mrb[27].mxu0 }
 0x6fb   :  { %v1053_v33 = vpop.f32.mrb[28].mxu0 }
 0x6fc   :  { %v1168_v34 = vpack.c.bf16 %v1053_v33, %v1053_v33  ;;  %v5053_v35 = vpop.f32.mrb[29].mxu0 }
 0x6fd   :  { %v1056_v36 = vpop.f32.mrb[30].mxu0 }
 0x6fe   :  { %v5054_v0 = vpop.f32.mrb[31].mxu0  ;;  %5082 = vmatmul.mubr.msk.bf16.vlgmr.msra.gmra.mrb[40].mxu1 %vm280_vm2, %v1168_v34  ;;  %v1169_v1 = vpack.c.bf16 %v1056_v36, %v1056_v36 }
 0x6ff   :  { %5086 = vmatpush3.bf16.xpose.msra.mxu1 %v1222_v60  ;;  %5087 = vmatprep.mubr.msk.bf16.mxu1 %vm5541_vm1, %v5540_v19 }
 0x700   :  { %5097 = vmatprep.subr.bf16.mxu1 %v5540_v19 }
 0x706   :  { %5088 = vmatmul.mubr.msk.bf16.vlgmr.msra.gmra.mrb[44].mxu1 %vm280_vm2, %v1169_v1  ;;  %v4421_v1 = vld [vmem:[%s7271_s20 + $0xc0] sm:$0xff] }
 0x707   :  { %5099 = vmatprep.mubr.msk.bf16.mxu1 %vm5541_vm1, %v5540_v19 }
 0x70b   :  { %v1161_v37 = vpop.f32.mrb[32].mxu0 }
 0x70c   :  { %v1308_v38 = vpack.c.bf16 %v1161_v37, %v1161_v37  ;;  %v5077_v39 = vpop.f32.mrb[33].mxu0  ;;  %v4422_v37 = vld [vmem:[%s7271_s20 + $0xc8] sm:$0xff] }
 0x70d   :  { %v1164_v40 = vpop.f32.mrb[34].mxu0 }
 0x70e   :  { %v1314_v41 = vsel %vm423_vm3, %v1308_v38, 0  ;;  %v1309_v42 = vpack.c.bf16 %v1164_v40, %v1164_v40  ;;  %v5078_v43 = vpop.f32.mrb[35].mxu0  ;;  %v1462_v40 = vpack.c.bf16 %v4422_v37, %v4421_v1 }
 0x70f   :  { %5092 = vmatpush3.bf16.msra.mxu0 %v1314_v41  ;;  %v4424_v43 = vld [vmem:[%s7271_s20 + $0xd8] sm:$0xff] }
 0x710   :  { %v1360_v44 = vsel %vm423_vm3, %v1309_v42, 0  ;;  %5103 = vmatprep.subr.bf16.mxu0 %v5540_v19  ;;  %v4423_v42 = vld [vmem:[%s7271_s20 + $0xd0] sm:$0xff] }
 0x711   :  { %5098 = vmatpush3.bf16.msra.mxu1 %v1360_v44  ;;  %v1463_v44 = vpack.c.bf16 %v4424_v43, %v4423_v42 }
 0x712   :  { %5109 = vmatprep.subr.bf16.mxu1 %v5540_v19 }
 0x7d1   :  { %v1212_v45 = vpop.f32.mrb[40].mxu1 }
 0x7d2   :  { %v1264_v46 = vmul.f32 4.0, %v1212_v45  ;;  %v5083_v47 = vpop.f32.mrb[41].mxu1  ;;  %v4425_v45 = vld [vmem:[%s7271_s20 + $0xe0] sm:$0xff] }
 0x7d3   :  { %v1215_v48 = vpop.f32.mrb[42].mxu1 }
 0x7d4   :  { %v1266_v49 = vsel %vm5785_vm4, -inf, %v1264_v46  ;;  %v5084_v50 = vpop.f32.mrb[43].mxu1  ;;  %v4426_v46 = vld [vmem:[%s7271_s20 + $0xe8] sm:$0xff]  ;;  %v4427_v48 = vld [vmem:[%s7271_s20 + $0xf0] sm:$0xff] }
 0x7d5   :  { %v1268_v51 = vsel %vm377_vm5, %v1266_v49, -inf  ;;  %v1464_v47 = vpack.c.bf16 %v4426_v46, %v4425_v45 }
 0x7d6   :  { %v1269_v52 = vrot.slane %v1268_v51, 4 }
 0x7d8   :  { %v1270_v53 = vmax.f32 %v1268_v51, %v1269_v52  ;;  %v4439_v51 = vld [vmem:[%s7250_s5 + $0xc0] sm:$0xff]  ;;  %v4440_v52 = vld [vmem:[%s7250_s5 + $0xc8] sm:$0xff] }
 0x7d9   :  { %v1258_v54 = vpop.f32.mrb[44].mxu1 }
 0x7da   :  { %v1271_v55 = vrot.slane %v1270_v53, 2  ;;  %v1265_v56 = vmul.f32 4.0, %v1258_v54  ;;  %v5089_v57 = vpop.f32.mrb[45].mxu1  ;;  %v4441_v54 = vld [vmem:[%s7250_s5 + $0xd0] sm:$0xff] }
 0x7db   :  { %v1261_v59 = vpop.f32.mrb[46].mxu1  ;;  %v4443_v57 = vld [vmem:[%s7250_s5 + $0xe0] sm:$0xff] }
 0x7dc   :  { %v1272_v61 = vmax.f32 %v1270_v53, %v1271_v55  ;;  %v1267_v62 = vsel %vm5785_vm4, -inf, %v1265_v56  ;;  %v5090_v63 = vpop.f32.mrb[47].mxu1  ;;  %v1570_v53 = vpack.c.bf16 %v4440_v52, %v4439_v51  ;;  %v4442_v55 = vld [vmem:[%s7250_s5 + $0xd8] sm:$0xff]  ;;  %v4444_v59 = vld [vmem:[%s7250_s5 + $0xe8] sm:$0xff] }
 0x7dd   :  { %v1275_v2 = vsel %vm377_vm5, %v1267_v62, -inf  ;;  %v1571_v56 = vpack.c.bf16 %v4442_v55, %v4441_v54  ;;  %v4446_v63 = vld [vmem:[%s7250_s5 + $0xf8] sm:$0xff] }
 0x7de   :  { %v1273_v3 = vrot.slane %v1272_v61, 1  ;;  %v1276_v4 = vrot.slane %v1275_v2, 4 }
 0x7e0   :  { %v1274_v5 = vmax.f32 %v1272_v61, %v1273_v3  ;;  %v1277_v6 = vmax.f32 %v1275_v2, %v1276_v4  ;;  %v1572_v61 = vpack.c.bf16 %v4444_v59, %v4443_v57  ;;  %v4418_v3 = vld [vmem:[%s7251_s6 + $0x20] sm:$0xff]  ;;  %v4419_v4 = vld [vmem:[%s7251_s6 + $0x28] sm:$0xff] }
 0x7e2   :  { %v1282_v7 = vsub.f32 %v1266_v49, %v1274_v5  ;;  %v1278_v8 = vrot.slane %v1277_v6, 2  ;;  %v4428_v49 = vld [vmem:[%s7271_s20 + $0xf8] sm:$0xff]  ;;  %v1406_v5 = vpack.c.bf16 %v4419_v4, %v4418_v3 }
 0x7e3   :  { %v1465_v50 = vpack.c.bf16 %v4428_v49, %v4427_v48 }
 0x7e4   :  { %v1284_v9 = vmul.f32 1.442695, %v1282_v7  ;;  %v1279_v10 = vmax.f32 %v1277_v6, %v1278_v8 }
 0x7e6   :  { %5474 = vpow2.f32 %v1284_v9  ;;  %v1280_v11 = vrot.slane %v1279_v10, 1 }
 0x7e8   :  { %v1281_v12 = vmax.f32 %v1279_v10, %v1280_v11  ;;  %v4430_v10 = vld [vmem:[%s7272_s24 + $0xc0] sm:$0xff]  ;;  %v4431_v11 = vld [vmem:[%s7272_s24 + $0xc8] sm:$0xff] }
 0x7ea   :  { %v1283_v13 = vsub.f32 %v1267_v62, %v1281_v12  ;;  %v4445_v62 = vld [vmem:[%s7250_s5 + $0xf0] sm:$0xff] }
 0x7eb   :  { %v1573_v2 = vpack.c.bf16 %v4446_v63, %v4445_v62 }
 0x7ec   :  { %v1286_v14 = vmul.f32 1.442695, %v1283_v13  ;;  %v1516_v13 = vpack.c.bf16 %v4431_v11, %v4430_v10 }
 0x7ee   :  { %5476 = vpow2.f32 %v1286_v14 }
 0x7f0   :  { %v5475_v15 = vpop.eup %5474 }
 0x7f1   :  { %v1288_v16 = vsel %vm377_vm5, %v5475_v15, 0.0 }
 0x7f2   :  { %v1289_v17 = vrot.slane %v1288_v16, 4 }
 0x7f4   :  { %v1290_v18 = vadd.f32 %v1289_v17, %v1288_v16  ;;  %v4432_v16 = vld [vmem:[%s7272_s24 + $0xd0] sm:$0xff]  ;;  %v4433_v17 = vld [vmem:[%s7272_s24 + $0xd8] sm:$0xff] }
 0x7f6   :  { %v1291_v20 = vrot.slane %v1290_v18, 2 }
 0x7f8   :  { %v5477_v21 = vpop.eup %5476  ;;  %v1292_v22 = vadd.f32 %v1291_v20, %v1290_v18 }
 0x7f9   :  { %v1295_v23 = vsel %vm377_vm5, %v5477_v21, 0.0 }
 0x7fa   :  { %v1293_v24 = vrot.slane %v1292_v22, 1  ;;  %v1296_v26 = vrot.slane %v1295_v23, 4 }
 0x7fc   :  { %v1294_v27 = vadd.f32 %v1293_v24, %v1292_v22  ;;  %v1297_v31 = vadd.f32 %v1296_v26, %v1295_v23  ;;  %v4434_v22 = vld [vmem:[%s7272_s24 + $0xe0] sm:$0xff]  ;;  %v4435_v23 = vld [vmem:[%s7272_s24 + $0xe8] sm:$0xff]  ;;  %v4436_v26 = vld [vmem:[%s7272_s24 + $0xf0] sm:$0xff] }
 0x7fd   :  { %v1518_v24 = vpack.c.bf16 %v4435_v23, %v4434_v22 }
 0x7fe   :  { %5478 = vrcp.f32 %v1294_v27  ;;  %v1298_v32 = vrot.slane %v1297_v31, 2  ;;  %v4437_v27 = vld [vmem:[%s7272_s24 + $0xf8] sm:$0xff] }
 0x800   :  { %v1299_v33 = vadd.f32 %v1298_v32, %v1297_v31  ;;  %v1519_v31 = vpack.c.bf16 %v4437_v27, %v4436_v26 }
 0x802   :  { %v1300_v34 = vrot.slane %v1299_v33, 1 }
 0x804   :  { %v1301_v35 = vadd.f32 %v1300_v34, %v1299_v33 }
 0x806   :  { %5480 = vrcp.f32 %v1301_v35 }
 0x808   :  { %v5479_v36 = vpop.eup %5478 }
 0x809   :  { %v1304_v60 = vmul.f32 %v5479_v36, %v5475_v15 }
 0x80b   :  { %v1306_v0 = vpack.c.bf16 %v1304_v60, %v1304_v60 }
 0x80d   :  { %5094 = vmatmul.mubr.msk.bf16.vlgmr.msra.gmra.mrb[36].mxu0 %vm377_vm5, %v1306_v0 }
 0x80e   :  { %5105 = vmatprep.mubr.msk.bf16.mxu0 %vm5541_vm1, %v5540_v19  ;;  %5104 = vmatpush3.bf16.msra.mxu0 %v1406_v5 }
 0x80f   :  { %5121 = vmatprep.subr.bf16.mxu0 %v5540_v19 }
 0x810   :  { %v5481_v38 = vpop.eup %5480 }
 0x811   :  { %v1305_v39 = vmul.f32 %v5481_v38, %v5477_v21  ;;  %v1517_v21 = vpack.c.bf16 %v4433_v17, %v4432_v16 }
 0x813   :  { %v1307_v41 = vpack.c.bf16 %v1305_v39, %v1305_v39 }
 0x815   :  { %5100 = vmatmul.mubr.msk.bf16.vlgmr.msra.gmra.mrb[48].mxu1 %vm377_vm5, %v1307_v41 }
 0x816   :  { %5110 = vmatpush3.bf16.msra.mxu1 %v1462_v40  ;;  %5117 = vmatprep.mubr.msk.bf16.mxu1 %vm5541_vm1, %v5540_v19 }
 0x817   :  { %5111 = vmatprep.subr.bf16.mxu1 %v5540_v19 }
 0x81a   :  { %5112 = vmatpush3.bf16.msra.mxu1 %v1463_v44 }
 0x81b   :  { %5113 = vmatprep.subr.bf16.mxu1 %v5540_v19 }
 0x81e   :  { %5114 = vmatpush3.bf16.msra.mxu1 %v1464_v47 }
 0x81f   :  { %5115 = vmatprep.subr.bf16.mxu1 %v5540_v19 }
 0x822   :  { %5116 = vmatpush3.bf16.msra.mxu1 %v1465_v50 }
 0x823   :  { %5133 = vmatprep.subr.bf16.mxu1 %v5540_v19 }
 0x825   :  { %5118 = vmatmul.mubr.msk.bf16.vlgmr.msra.gmra.mrb[52].mxu1 %vm69_vm0, %v5732_v58 }
 0x826   :  { %5134 = vmatpush3.bf16.msra.mxu1 %v1570_v53  ;;  %5141 = vmatprep.mubr.msk.bf16.mxu1 %vm5541_vm1, %v5540_v19 }
 0x827   :  { %5135 = vmatprep.subr.bf16.mxu1 %v5540_v19 }
 0x82a   :  { %5136 = vmatpush3.bf16.msra.mxu1 %v1571_v56 }
 0x82b   :  { %5137 = vmatprep.subr.bf16.mxu1 %v5540_v19 }
 0x82e   :  { %5138 = vmatpush3.bf16.msra.mxu1 %v1572_v61 }
 0x82f   :  { %5139 = vmatprep.subr.bf16.mxu1 %v5540_v19 }
 0x832   :  { %5140 = vmatpush3.bf16.msra.mxu1 %v1573_v2 }
 0x833   :  { %5157 = vmatprep.subr.bf16.mxu1 %v5540_v19 }
 0x835   :  { %5142 = vmatmul.mubr.msk.bf16.vlgmr.msra.gmra.mrb[56].mxu1 %vm69_vm0, %v5732_v58 }
 0x836   :  { %5159 = vmatprep.mubr.msk.bf16.mxu1 %vm5541_vm1, %v5540_v19 }
 0x8e0   :  { %v1350_v6 = vpop.f32.mrb[36].mxu0 }
 0x8e1   :  { %v5095_v7 = vpop.f32.mrb[37].mxu0 }
 0x8e2   :  { %v1353_v8 = vpop.f32.mrb[38].mxu0 }
 0x8e3   :  { %v5096_v9 = vpop.f32.mrb[39].mxu0 }
 0x8e8   :  { %v1396_v12 = vpop.f32.mrb[48].mxu1 }
 0x8e9   :  { %v1402_v14 = vpack.c.bf16 %v1396_v12, %v1350_v6  ;;  %v5101_v15 = vpop.f32.mrb[49].mxu1 }
 0x8ea   :  { %v1399_v18 = vpop.f32.mrb[50].mxu1 }
 0x8eb   :  { %v5102_v20 = vpop.f32.mrb[51].mxu1  ;;  %5106 = vmatmul.mubr.msk.bf16.vlgmr.msra.gmra.mrb[40].mxu0 %vm280_vm2, %v1402_v14 }
 0x8ec   :  { %5122 = vmatpush3.bf16.msra.mxu0 %v1516_v13  ;;  %5129 = vmatprep.mubr.msk.bf16.mxu0 %vm5541_vm1, %v5540_v19 }
 0x8ed   :  { %5123 = vmatprep.subr.bf16.mxu0 %v5540_v19 }
 0x8f0   :  { %5124 = vmatpush3.bf16.msra.mxu0 %v1517_v21 }
 0x8f1   :  { %5125 = vmatprep.subr.bf16.mxu0 %v5540_v19 }
 0x8f4   :  { %5126 = vmatpush3.bf16.msra.mxu0 %v1518_v24 }
 0x8f5   :  { %5127 = vmatprep.subr.bf16.mxu0 %v5540_v19 }
 0x8f8   :  { %v1500_v32 = vpop.f32.mrb[52].mxu1  ;;  %5128 = vmatpush3.bf16.msra.mxu0 %v1519_v31 }
 0x8f9   :  { %v5119_v33 = vpop.f32.mrb[53].mxu1  ;;  %5145 = vmatprep.subr.bf16.mxu0 %v5540_v19  ;;  %v1615_v51 = vpack.c.bf16 %v1500_v32, %v1500_v32 }
 0x8fa   :  { %v1503_v34 = vpop.f32.mrb[54].mxu1 }
 0x8fb   :  { %v5120_v35 = vpop.f32.mrb[55].mxu1  ;;  %5130 = vmatmul.mubr.msk.bf16.vlgmr.msra.gmra.mrb[44].mxu0 %vm69_vm0, %v5732_v58  ;;  %v1616_v52 = vpack.c.bf16 %v1503_v34, %v1503_v34 }
 0x8fc   :  { %5147 = vmatprep.mubr.msk.bf16.mxu0 %vm5541_vm1, %v5540_v19 }
 0x908   :  { %v1608_v36 = vpop.f32.mrb[56].mxu1 }
 0x909   :  { %v1755_v60 = vpack.c.bf16 %v1608_v36, %v1608_v36  ;;  %v5143_v0 = vpop.f32.mrb[57].mxu1 }
 0x90a   :  { %v1611_v1 = vpop.f32.mrb[58].mxu1 }
 0x90b   :  { %v1761_v37 = vsel %vm423_vm3, %v1755_v60, 0  ;;  %v5144_v38 = vpop.f32.mrb[59].mxu1 }
 0x90c   :  { %5158 = vmatpush3.bf16.msra.mxu1 %v1761_v37 }
 0x90d   :  { %5169 = vmatprep.subr.bf16.mxu1 %v5540_v19 }
 0x9be   :  { %v1444_v39 = vpop.f32.mrb[40].mxu0 }
 0x9bf   :  { %v6193_v40 = vadd.f32 %v1444_v39, %v6054_v25  ;;  %v5107_v41 = vpop.f32.mrb[41].mxu0 }
 0x9c0   :  { %v1447_v42 = vpop.f32.mrb[42].mxu0 }
 0x9c1   :  { %v6196_v58 = vadd.f32 %v1447_v42, %v6056_v29  ;;  %v5108_v43 = vpop.f32.mrb[43].mxu0  ;;  %v1756_v29 = vpack.c.bf16 %v1611_v1, %v1611_v1 }
 0x9c3   :  { %v1807_v53 = vsel %vm423_vm3, %v1756_v29, 0 }
 0x9ce   :  { %v1554_v44 = vpop.f32.mrb[44].mxu0 }
 0x9cf   :  { %v1617_v45 = vpack.c.bf16 %v1554_v44, %v1554_v44  ;;  %v5131_v46 = vpop.f32.mrb[45].mxu0 }
 0x9d0   :  { %v1557_v47 = vpop.f32.mrb[46].mxu0 }
 0x9d1   :  { %v1623_v48 = vsel %vm280_vm2, %v1617_v45, 0  ;;  %v5132_v49 = vpop.f32.mrb[47].mxu0  ;;  %v1618_v50 = vpack.c.bf16 %v1557_v47, %v1557_v47 }
 0x9d2   :  { %5146 = vmatpush3.bf16.xpose.msra.mxu0 %v1623_v48  ;;  %v4452_v49 = vld [vmem:[%s7251_s6 + $0x30] sm:$0xff] }
 0x9d3   :  { %5151 = vmatprep.subr.bf16.mxu0 %v5540_v19  ;;  %v1669_v25 = vsel %vm280_vm2, %v1618_v50, 0  ;;  %v4453_v50 = vld [vmem:[%s7251_s6 + $0x38] sm:$0xff] }
 0x9d9   :  { %5148 = vmatmul.mubr.msk.bf16.vlgmr.msra.gmra.mrb[48].mxu0 %vm280_vm2, %v1615_v51  ;;  %v1853_v51 = vpack.c.bf16 %v4453_v50, %v4452_v49  ;;  %v5542_v49 = vmov 0   ;;  %v2058_v50 = vld [vmem:[%s7254_s12 + $0x80] sm:$0xff] }
 0x9da   :  { %5152 = vmatpush3.bf16.xpose.msra.mxu0 %v1669_v25  ;;  %5153 = vmatprep.mubr.msk.bf16.mxu0 %vm5541_vm1, %v5540_v19 }
 0x9db   :  { %5163 = vmatprep.subr.bf16.mxu0 %v5540_v19 }
 0x9e1   :  { %5154 = vmatmul.mubr.msk.bf16.vlgmr.msra.gmra.mrb[52].mxu0 %vm280_vm2, %v1616_v52 }
 0x9e2   :  { %5164 = vmatpush3.bf16.msra.mxu0 %v1807_v53  ;;  %5165 = vmatprep.mubr.msk.bf16.mxu0 %vm5541_vm1, %v5540_v19 }
 0xaac   :  { %v1659_v54 = vpop.f32.mrb[48].mxu0 }
 0xaad   :  { %v1711_v55 = vmul.f32 4.0, %v1659_v54  ;;  %v5149_v56 = vpop.f32.mrb[49].mxu0 }
 0xaae   :  { %v1662_v57 = vpop.f32.mrb[50].mxu0 }
 0xaaf   :  { %v1713_v59 = vsel %vm5785_vm4, -inf, %v1711_v55  ;;  %v5150_v61 = vpop.f32.mrb[51].mxu0 }
 0xab0   :  { %v1715_v62 = vsel %vm377_vm5, %v1713_v59, -inf }
 0xab1   :  { %v1716_v63 = vrot.slane %v1715_v62, 4 }
 0xab3   :  { %v1717_v2 = vmax.f32 %v1715_v62, %v1716_v63 }
 0xab4   :  { %v1705_v3 = vpop.f32.mrb[52].mxu0 }
 0xab5   :  { %v1718_v4 = vrot.slane %v1717_v2, 2  ;;  %v1712_v5 = vmul.f32 4.0, %v1705_v3  ;;  %v5155_v6 = vpop.f32.mrb[53].mxu0 }
 0xab6   :  { %v1708_v7 = vpop.f32.mrb[54].mxu0 }
 0xab7   :  { %v1719_v8 = vmax.f32 %v1717_v2, %v1718_v4  ;;  %v1714_v9 = vsel %vm5785_vm4, -inf, %v1712_v5  ;;  %v5156_v10 = vpop.f32.mrb[55].mxu0  ;;  %v4455_v2 = vld [vmem:[%s7252_s7] ss:$0 sm:$0xff] }
 0xab8   :  { %v1722_v11 = vsel %vm377_vm5, %v1714_v9, -inf  ;;  %v5538_v4 = vld [vmem:[%s7270_s29] sm:$0xff] }
 0xab9   :  { %v1720_v12 = vrot.slane %v1719_v8, 1  ;;  %v1723_v13 = vrot.slane %v1722_v11, 4 }
 0xabb   :  { %v1721_v14 = vmax.f32 %v1719_v8, %v1720_v12  ;;  %v1724_v15 = vmax.f32 %v1722_v11, %v1723_v13 }
 0xabd   :  { %v1729_v16 = vsub.f32 %v1713_v59, %v1721_v14  ;;  %v1725_v17 = vrot.slane %v1724_v15, 2 }
 0xabf   :  { %v1731_v18 = vmul.f32 1.442695, %v1729_v16  ;;  %v1726_v20 = vmax.f32 %v1724_v15, %v1725_v17 }
 0xac1   :  { %5482 = vpow2.f32 %v1731_v18  ;;  %v1727_v21 = vrot.slane %v1726_v20, 1 }
 0xac3   :  { %v1728_v22 = vmax.f32 %v1726_v20, %v1727_v21 }
 0xac5   :  { %v1730_v23 = vsub.f32 %v1714_v9, %v1728_v22 }
 0xac7   :  { %v1733_v24 = vmul.f32 1.442695, %v1730_v23  ;;  %v1956_v23 = vld [vmem:[%s7253_s10 + $0x8] sm:$0xff] }
 0xac9   :  { %5484 = vpow2.f32 %v1733_v24  ;;  %v1958_v24 = vld [vmem:[%s7253_s10 + $0x18] sm:$0xff] }
 0xacb   :  { %v5483_v26 = vpop.eup %5482 }
 0xacc   :  { %v1735_v27 = vsel %vm377_vm5, %v5483_v26, 0.0 }
 0xacd   :  { %v1736_v31 = vrot.slane %v1735_v27, 4 }
 0xacf   :  { %v1737_v32 = vadd.f32 %v1736_v31, %v1735_v27  ;;  %v1955_v27 = vld [vmem:[%s7253_s10] sm:$0xff]  ;;  %v1957_v31 = vld [vmem:[%s7253_s10 + $0x10] sm:$0xff] }
 0xad1   :  { %v1738_v33 = vrot.slane %v1737_v32, 2 }
 0xad3   :  { %v5485_v34 = vpop.eup %5484  ;;  %v1739_v35 = vadd.f32 %v1738_v33, %v1737_v32  ;;  %v1972_v32 = vpack.c.bf16 %v1957_v31, %v1955_v27  ;;  %v1960_v33 = vld [vmem:[%s7253_s10 + $0x28] sm:$0xff] }
 0xad4   :  { %v1742_v36 = vsel %vm377_vm5, %v5485_v34, 0.0 }
 0xad5   :  { %v1740_v60 = vrot.slane %v1739_v35, 1  ;;  %v1743_v0 = vrot.slane %v1742_v36, 4 }
 0xad7   :  { %v1741_v1 = vadd.f32 %v1740_v60, %v1739_v35  ;;  %v1744_v37 = vadd.f32 %v1743_v0, %v1742_v36  ;;  %v1959_v36 = vld [vmem:[%s7253_s10 + $0x20] sm:$0xff]  ;;  %v1961_v60 = vld [vmem:[%s7253_s10 + $0x30] sm:$0xff] }
 0xad8   :  { %v1974_v0 = vpack.c.bf16 %v1961_v60, %v1959_v36 }
 0xad9   :  { %5486 = vrcp.f32 %v1741_v1  ;;  %v1745_v38 = vrot.slane %v1744_v37, 2  ;;  %v1964_v1 = vld [vmem:[%s7253_s10 + $0x48] sm:$0xff] }
 0xadb   :  { %v1746_v39 = vadd.f32 %v1745_v38, %v1744_v37  ;;  %v1966_v37 = vld [vmem:[%s7253_s10 + $0x58] sm:$0xff] }
 0xadc   :  { %v1977_v38 = vpack.c.bf16 %v1966_v37, %v1964_v1  ;;  %v4457_v37 = vld [vmem:[%s7256_s9] ss:$0 sm:$0xff] }
 0xadd   :  { %v1747_v41 = vrot.slane %v1746_v39, 1 }
 0xadf   :  { %v1748_v42 = vadd.f32 %v1747_v41, %v1746_v39  ;;  %v1963_v39 = vld [vmem:[%s7253_s10 + $0x40] sm:$0xff]  ;;  %v1965_v41 = vld [vmem:[%s7253_s10 + $0x50] sm:$0xff] }
 0xae1   :  { %5488 = vrcp.f32 %v1748_v42  ;;  %v1976_v42 = vpack.c.bf16 %v1965_v41, %v1963_v39 }
 0xae3   :  { %v5487_v43 = vpop.eup %5486 }
 0xae4   :  { %v1751_v44 = vmul.f32 %v5487_v43, %v5483_v26  ;;  %v1973_v26 = vpack.c.bf16 %v1958_v24, %v1956_v23  ;;  %v1968_v43 = vld [vmem:[%s7253_s10 + $0x68] sm:$0xff] }
 0xae6   :  { %v1753_v45 = vpack.c.bf16 %v1751_v44, %v1751_v44  ;;  %1995 = vmatprep.subr.bf16.mxu0 %v1973_v26  ;;  %v1970_v44 = vld [vmem:[%s7253_s10 + $0x78] sm:$0xff] }
 0xae8   :  { %5160 = vmatmul.mubr.msk.bf16.vlgmr.msra.gmra.mrb[60].mxu1 %vm377_vm5, %v1753_v45  ;;  %v1979_v45 = vpack.c.bf16 %v1970_v44, %v1968_v43  ;;  %v2070_v44 = vld [vmem:[%s7254_s12 + $0xe0] sm:$0xff] }
 0xae9   :  { %5171 = vmatprep.mubr.msk.bf16.mxu1 %vm5541_vm1, %v5540_v19  ;;  %5170 = vmatpush3.bf16.msra.mxu1 %v1853_v51  ;;  %v2059_v51 = vld [vmem:[%s7254_s12 + $0x88] sm:$0xff] }
 0xaeb   :  { %v5489_v46 = vpop.eup %5488 }
 0xaec   :  { %v1752_v47 = vmul.f32 %v5489_v46, %v5485_v34  ;;  %v1962_v34 = vld [vmem:[%s7253_s10 + $0x38] sm:$0xff]  ;;  %v1967_v46 = vld [vmem:[%s7253_s10 + $0x60] sm:$0xff] }
 0xaed   :  { %v1975_v35 = vpack.c.bf16 %v1962_v34, %v1960_v33 }
 0xaee   :  { %v1754_v48 = vpack.c.bf16 %v1752_v47, %v1752_v47  ;;  %v1969_v47 = vld [vmem:[%s7253_s10 + $0x70] sm:$0xff] }
 0xaf0   :  { %5166 = vmatmul.mubr.msk.bf16.vlgmr.msra.gmra.mrb[56].mxu0 %vm377_vm5, %v1754_v48  ;;  %v1978_v48 = vpack.c.bf16 %v1969_v47, %v1967_v46  ;;  %v2054_v47 = vld [vmem:[%s7254_s12 + $0x60] sm:$0xff] }
 0xaf1   :  { %1996 = vmatpush1.bf16.msra.mxu0 %v1972_v32  ;;  %2027 = vmatprep.mubr.bf16.mxu0 %v5542_v49 }
 0xaf2   :  { %1997 = vmatprep.subr.bf16.mxu0 %v1975_v35  ;;  %v4456_v35 = vld [vmem:[%s7255_s8] ss:$0 sm:$0xff] }
 0xaf5   :  { %1998 = vmatpush1.bf16.msra.mxu0 %v1974_v0 }
 0xaf6   :  { %1999 = vmatprep.subr.bf16.mxu0 %v1977_v38 }
 0xaf9   :  { %2000 = vmatpush1.bf16.msra.mxu0 %v1976_v42 }
 0xafa   :  { %2001 = vmatprep.subr.bf16.mxu0 %v1979_v45  ;;  %v2071_v45 = vld [vmem:[%s7254_s12 + $0xe8] sm:$0xff] }
 0xafb   :  { %v2090_v46 = vpack.c.bf16 %v2071_v45, %v2070_v44  ;;  %v4466_v44 = vld [vmem:[%s7271_s20 + $0x110] sm:$0xff]  ;;  %v4467_v45 = vld [vmem:[%s7271_s20 + $0x118] sm:$0xff] }
 0xafd   :  { %2002 = vmatpush1.bf16.msra.mxu0 %v1978_v48  ;;  %v2055_v48 = vld [vmem:[%s7254_s12 + $0x68] sm:$0xff] }
 0xafe   :  { %5175 = vmatprep.subr.bf16.mxu0 %v5540_v19 }
 0xbbb   :  { %v1797_v25 = vpop.f32.mrb[60].mxu1 }
 0xbbc   :  { %v5161_v29 = vpop.f32.mrb[61].mxu1 }
 0xbbd   :  { %v1800_v52 = vpop.f32.mrb[62].mxu1  ;;  %v2084_v29 = vpack.c.bf16 %v2059_v51, %v2058_v50  ;;  %v2082_v50 = vpack.c.bf16 %v2055_v48, %v2054_v47  ;;  %v2072_v51 = vld [vmem:[%s7254_s12 + $0xf0] sm:$0xff]  ;;  %v4485_v48 = vld [vmem:[%s7250_s5 + $0x118] sm:$0xff] }
 0xbbe   :  { %v5162_v53 = vpop.f32.mrb[63].mxu1  ;;  %v2043_v52 = vld [vmem:[%s7254_s12 + $0x8] sm:$0xff]  ;;  %v4484_v47 = vld [vmem:[%s7250_s5 + $0x110] sm:$0xff] }
 0xbbf   :  { %v2060_v53 = vld [vmem:[%s7254_s12 + $0x90] sm:$0xff]  ;;  %4762 = vmatprep.subr.bf16.mxu1 %v2084_v29 }
 0xbc3   :  { %v1843_v54 = vpop.f32.mrb[56].mxu0 }
 0xbc4   :  { %v1849_v55 = vpack.c.bf16 %v1843_v54, %v1797_v25  ;;  %v5167_v56 = vpop.f32.mrb[57].mxu0  ;;  %v2042_v25 = vld [vmem:[%s7254_s12] sm:$0xff]  ;;  %v2061_v54 = vld [vmem:[%s7254_s12 + $0x98] sm:$0xff] }
 0xbc5   :  { %v1846_v57 = vpop.f32.mrb[58].mxu0  ;;  %v2085_v56 = vpack.c.bf16 %v2061_v54, %v2060_v53  ;;  %v2057_v53 = vld [vmem:[%s7254_s12 + $0x78] sm:$0xff] }
 0xbc6   :  { %v5168_v59 = vpop.f32.mrb[59].mxu0  ;;  %5172 = vmatmul.mubr.msk.bf16.vlgmr.msra.gmra.mrb[64].mxu1 %vm280_vm2, %v1849_v55  ;;  %v2076_v55 = vpack.c.bf16 %v2043_v52, %v2042_v25  ;;  %v2044_v57 = vld [vmem:[%s7254_s12 + $0x10] sm:$0xff]  ;;  %v2073_v25 = vld [vmem:[%s7254_s12 + $0xf8] sm:$0xff] }
 0xbc7   :  { %v2045_v59 = vld [vmem:[%s7254_s12 + $0x18] sm:$0xff]  ;;  %v2091_v29 = vpack.c.bf16 %v2073_v25, %v2072_v51  ;;  %v2056_v52 = vld [vmem:[%s7254_s12 + $0x70] sm:$0xff]  ;;  %v4468_v51 = vld [vmem:[%s7271_s20 + $0x120] sm:$0xff] }
 0xbc8   :  { %4763 = vmatpush3.bf16.msra.mxu1 %v2076_v55  ;;  %v2083_v54 = vpack.c.bf16 %v2057_v53, %v2056_v52  ;;  %v1984_v55 = vsub.s32 0, %v5782_v28  ;;  %v4469_v25 = vld [vmem:[%s7271_s20 + $0x128] sm:$0xff]  ;;  %v4486_v52 = vld [vmem:[%s7250_s5 + $0x120] sm:$0xff] }
 0xbc9   :  { %4764 = vmatprep.subr.bf16.mxu1 %v2085_v56  ;;  %v1980_v56 = vld [vmem:[%s7257_s11] sm:$0x3]  ;;  %v4487_v53 = vld [vmem:[%s7250_s5 + $0x128] sm:$0xff] }
 0xc99   :  { %v1891_v61 = vpop.f32.mrb[64].mxu1 }
 0xc9a   :  { %v1898_v62 = vadd.f32 %v1891_v61, %v6193_v40  ;;  %v5173_v63 = vpop.f32.mrb[65].mxu1  ;;  %v5539_v40 = vld [vmem:[%s7270_s29 + $0x8] sm:$0xff]  ;;  %v2062_v61 = vld [vmem:[%s7254_s12 + $0xa0] sm:$0xff] }
 0xc9b   :  { %v1894_v3 = vpop.f32.mrb[66].mxu1  ;;  %v2077_v63 = vpack.c.bf16 %v2045_v59, %v2044_v57  ;;  %v1988_v57 = vsub.s32 1, %v5782_v28  ;;  %v1985_v59 = vrot.slane %v1980_v56, %v1984_v55 }
 0xc9c   :  { %v1900_v5 = vadd.f32 %v5538_v4, %v1898_v62  ;;  %v1899_v6 = vadd.f32 %v1894_v3, %v6196_v58  ;;  %v5174_v7 = vpop.f32.mrb[67].mxu1  ;;  %v2063_v62 = vld [vmem:[%s7254_s12 + $0xa8] sm:$0xff]  ;;  %v2046_v3 = vld [vmem:[%s7254_s12 + $0x20] sm:$0xff] }
 0xc9d   :  { %v2047_v4 = vld [vmem:[%s7254_s12 + $0x28] sm:$0xff]  ;;  %4765 = vmatpush3.bf16.msra.mxu1 %v2077_v63 }
 0xc9e   :  { %v6236_v8 = vadd.f32 %v4455_v2, %v1900_v5  ;;  %v1901_v9 = vadd.f32 %v5539_v40, %v1899_v6  ;;  %v2064_v5 = vld [vmem:[%s7254_s12 + $0xb0] sm:$0xff]  ;;  %v2065_v6 = vld [vmem:[%s7254_s12 + $0xb8] sm:$0xff]  ;;  %v2078_v7 = vpack.c.bf16 %v2047_v4, %v2046_v3 }
 0xc9f   :  { %v2087_v40 = vpack.c.bf16 %v2065_v6, %v2064_v5 }
 0xca0   :  { %v6241_v10 = vadd.f32 %v4455_v2, %v1901_v9  ;;  %v1913_v11 = vsel %vm69_vm0, %v6236_v8, 0.0  ;;  %v2086_v2 = vpack.c.bf16 %v2063_v62, %v2062_v61  ;;  %v2048_v9 = vld [vmem:[%s7254_s12 + $0x30] sm:$0xff]  ;;  %v1989_v61 = vrot.slane %v1980_v56, %v1988_v57 }
 0xca1   :  { %1914 = vadd.xlane.f32.xlu0 %v1913_v11  ;;  %v2049_v11 = vld [vmem:[%s7254_s12 + $0x38] sm:$0xff]  ;;  %v4470_v56 = vld [vmem:[%s7271_s20 + $0x130] sm:$0xff] }
 0xca2   :  { %v1916_v12 = vsel %vm69_vm0, %v6241_v10, 0.0  ;;  %4766 = vmatprep.subr.bf16.mxu1 %v2086_v2 }
 0xca3   :  { %1917 = vadd.xlane.f32.xlu1 %v1916_v12  ;;  %v2066_v12 = vld [vmem:[%s7254_s12 + $0xc0] sm:$0xff]  ;;  %4767 = vmatpush3.bf16.msra.mxu1 %v2078_v7 }
 0xca4   :  { %4768 = vmatprep.subr.bf16.mxu1 %v2087_v40 }
 0xd2e   :  { %v1915_v13 = vpop.xlane.xlu0 %1914 }
 0xd2f   :  { %v1919_v58 = vmul.f32 0.015625, %v1915_v13  ;;  %v2067_v13 = vld [vmem:[%s7254_s12 + $0xc8] sm:$0xff] }
 0xd30   :  { %v1918_v14 = vpop.xlane.xlu1 %1917 }
 0xd31   :  { %v6248_v15 = vsub.f32 %v6236_v8, %v1919_v58  ;;  %v1920_v16 = vmul.f32 0.015625, %v1918_v14  ;;  %v2079_v58 = vpack.c.bf16 %v2049_v11, %v2048_v9  ;;  %v2088_v14 = vpack.c.bf16 %v2067_v13, %v2066_v12 }
 0xd33   :  { %v6251_v17 = vsub.f32 %v6241_v10, %v1920_v16  ;;  %v1923_v18 = vmul.f32 %v6248_v15, %v6248_v15  ;;  %v2050_v16 = vld [vmem:[%s7254_s12 + $0x40] sm:$0xff]  ;;  %4769 = vmatpush3.bf16.msra.mxu1 %v2079_v58 }
 0xd34   :  { %4770 = vmatprep.subr.bf16.mxu1 %v2088_v14 }
 0xd35   :  { %v1925_v20 = vsel %vm69_vm0, %v1923_v18, 0.0  ;;  %v1924_v21 = vmul.f32 %v6251_v17, %v6251_v17  ;;  %v2051_v18 = vld [vmem:[%s7254_s12 + $0x48] sm:$0xff] }
 0xd36   :  { %1926 = vadd.xlane.f32.xlu0 %v1925_v20  ;;  %v2068_v20 = vld [vmem:[%s7254_s12 + $0xd0] sm:$0xff] }
 0xd37   :  { %v1928_v22 = vsel %vm69_vm0, %v1924_v21, 0.0  ;;  %v2069_v21 = vld [vmem:[%s7254_s12 + $0xd8] sm:$0xff] }
 0xd38   :  { %1929 = vadd.xlane.f32.xlu1 %v1928_v22  ;;  %v2080_v22 = vpack.c.bf16 %v2051_v18, %v2050_v16  ;;  %v2089_v23 = vpack.c.bf16 %v2069_v21, %v2068_v20  ;;  %v4459_v21 = vld [vmem:[%s7258_s13] ss:$0 sm:$0xff] }
 0xd3a   :  { %4771 = vmatpush3.bf16.msra.mxu1 %v2080_v22 }
 0xd3b   :  { %4772 = vmatprep.subr.bf16.mxu1 %v2089_v23 }
 0xdc3   :  { %v1927_v24 = vpop.xlane.xlu0 %1926 }
 0xdc4   :  { %v1931_v26 = vmul.f32 0.015625, %v1927_v24 }
 0xdc5   :  { %v1930_v27 = vpop.xlane.xlu1 %1929 }
 0xdc6   :  { %v1933_v31 = vadd.f32 1e-05, %v1931_v26  ;;  %v1932_v32 = vmul.f32 0.015625, %v1930_v27 }
 0xdc8   :  { %5490 = vrsqrt.f32 %v1933_v31  ;;  %v1934_v33 = vadd.f32 1e-05, %v1932_v32 }
 0xdca   :  { %5492 = vrsqrt.f32 %v1934_v33 }
 0xdd2   :  { %v5491_v34 = vpop.eup %5490 }
 0xdd3   :  { %v1937_v36 = vmul.f32 %v5491_v34, %v6248_v15  ;;  %v2052_v15 = vld [vmem:[%s7254_s12 + $0x50] sm:$0xff] }
 0xdd4   :  { %v5493_v60 = vpop.eup %5492 }
 0xdd5   :  { %v1945_v0 = vmul.f32 %v4456_v35, %v1937_v36  ;;  %v1938_v1 = vmul.f32 %v5493_v60, %v6251_v17  ;;  %v2053_v17 = vld [vmem:[%s7254_s12 + $0x58] sm:$0xff] }
 0xdd6   :  { %v2081_v43 = vpack.c.bf16 %v2053_v17, %v2052_v15  ;;  %v4482_v15 = vld [vmem:[%s7250_s5 + $0x100] sm:$0xff]  ;;  %v4483_v17 = vld [vmem:[%s7250_s5 + $0x108] sm:$0xff] }
 0xdd7   :  { %v1946_v38 = vmul.f32 %v4456_v35, %v1938_v1  ;;  %v1953_v39 = vadd.f32 %v4457_v37, %v1945_v0 }
 0xdd8   :  { %4773 = vmatpush3.bf16.msra.mxu1 %v2081_v43  ;;  %v2311_v43 = vpack.c.bf16 %v4483_v17, %v4482_v15 }
 0xdd9   :  { %v1954_v41 = vadd.f32 %v4457_v37, %v1946_v38  ;;  %4774 = vmatprep.subr.bf16.mxu1 %v2090_v46  ;;  %v2201_v46 = vpack.c.bf16 %v4467_v45, %v4466_v44 }
 0xddb   :  { %v1971_v42 = vpack.c.bf16 %v1954_v41, %v1953_v39  ;;  %v4464_v39 = vld [vmem:[%s7271_s20 + $0x100] sm:$0xff]  ;;  %v4465_v41 = vld [vmem:[%s7271_s20 + $0x108] sm:$0xff] }
 0xddc   :  { %4775 = vmatpush3.bf16.msra.mxu1 %v2082_v50  ;;  %v2312_v50 = vpack.c.bf16 %v4485_v48, %v4484_v47 }
 0xddd   :  { %4458 = vmatmul.mubr.msk.bf16.vlgmr.msra.gmra.mrb[60].mxu0 %vm69_vm0, %v1971_v42  ;;  %4776 = vmatprep.subr.bf16.mxu1 %v2091_v29  ;;  %v2200_v42 = vpack.c.bf16 %v4465_v41, %v4464_v39  ;;  %v2202_v29 = vpack.c.bf16 %v4469_v25, %v4468_v51 }
 0xdde   :  { %5183 = vmatprep.mubr.msk.bf16.mxu0 %vm5541_vm1, %v5540_v19 }
 0xddf   :  { %5176 = vmatpush3.bf16.msra.mxu0 %v2200_v42 }
 0xde0   :  { %4777 = vmatpush3.bf16.msra.mxu1 %v2083_v54  ;;  %5177 = vmatprep.subr.bf16.mxu0 %v5540_v19  ;;  %v2313_v54 = vpack.c.bf16 %v4487_v53, %v4486_v52 }
 0xde1   :  { %5199 = vmatprep.subr.bf16.mxu1 %v5540_v19 }
 0xde3   :  { %5178 = vmatpush3.bf16.msra.mxu0 %v2201_v46 }
 0xde4   :  { %5179 = vmatprep.subr.bf16.mxu0 %v5540_v19 }
 0xde7   :  { %5180 = vmatpush3.bf16.msra.mxu0 %v2202_v29 }
 0xde8   :  { %5181 = vmatprep.subr.bf16.mxu0 %v5540_v19 }
 0xeb0   :  { %v2029_v62 = vpop.f32.mrb[60].mxu0 }
 0xeb1   :  { %v2030_v63 = vadd.f32 %v2029_v62, %v1985_v59  ;;  %v2031_v2 = vpop.f32.mrb[61].mxu0  ;;  %v4488_v62 = vld [vmem:[%s7250_s5 + $0x130] sm:$0xff] }
 0xeb2   :  { %v2032_v3 = vadd.f32 %v2031_v2, %v1989_v61  ;;  %v2033_v4 = vpop.f32.mrb[62].mxu0 }
 0xeb3   :  { %v2034_v5 = vadd.f32 %v2033_v4, %v1985_v59  ;;  %v2035_v6 = vpop.f32.mrb[63].mxu0  ;;  %v2038_v40 = vmax.f32 %v2030_v63, 0.0  ;;  %v4471_v59 = vld [vmem:[%s7271_s20 + $0x138] sm:$0xff] }
 0xeb4   :  { %v2036_v7 = vadd.f32 %v2035_v6, %v1989_v61  ;;  %v2039_v11 = vmax.f32 %v2032_v3, 0.0  ;;  %v2203_v61 = vpack.c.bf16 %v4471_v59, %v4470_v56  ;;  %v4489_v63 = vld [vmem:[%s7250_s5 + $0x138] sm:$0xff] }
 0xeb5   :  { %v2040_v9 = vmax.f32 %v2034_v5, 0.0  ;;  %v2314_v2 = vpack.c.bf16 %v4489_v63, %v4488_v62 }
 0xeb6   :  { %v2041_v12 = vmax.f32 %v2036_v7, 0.0  ;;  %5182 = vmatpush3.bf16.msra.mxu0 %v2203_v61 }
 0xeb7   :  { %v2074_v13 = vpack.c.bf16 %v2040_v9, %v2038_v40  ;;  %5187 = vmatprep.subr.bf16.mxu0 %v5540_v19 }
 0xeb8   :  { %v2075_v58 = vpack.c.bf16 %v2041_v12, %v2039_v11  ;;  %v4462_v11 = vld [vmem:[%s7248_s1 + $0x1] ss:$0 sm:$0xff] }
 0xeba   :  { %2124 = vmatprep.mubr.bf16.mxu1 %v2075_v58 }
 0xebb   :  { %2125 = vmatmul.mubr.bf16.vlgmr.msra.gmra.mrb[68].mxu1 %v2074_v13 }
 0xebc   :  { %5207 = vmatprep.mubr.msk.bf16.mxu1 %vm5541_vm1, %v5540_v19  ;;  %5200 = vmatpush3.bf16.msra.mxu1 %v2311_v43 }
 0xebd   :  { %5201 = vmatprep.subr.bf16.mxu1 %v5540_v19 }
 0xec0   :  { %5202 = vmatpush3.bf16.msra.mxu1 %v2312_v50 }
 0xec1   :  { %5203 = vmatprep.subr.bf16.mxu1 %v5540_v19 }
 0xec4   :  { %5204 = vmatpush3.bf16.msra.mxu1 %v2313_v54 }
 0xec5   :  { %5205 = vmatprep.subr.bf16.mxu1 %v5540_v19 }
 0xec8   :  { %5206 = vmatpush3.bf16.msra.mxu1 %v2314_v2 }
 0xec9   :  { %5217 = vmatprep.subr.bf16.mxu1 %v5540_v19 }
 0xf8e   :  { %v4778_v14 = vpop.f32.mrb[68].mxu1 }
 0xf8f   :  { %v4779_v16 = vpop.f32.mrb[69].mxu1 }
 0xf90   :  { %v4780_v18 = vadd.f32 %v4779_v16, %v4778_v14  ;;  %v4781_v20 = vpop.f32.mrb[70].mxu1  ;;  %v4463_v16 = vld [vmem:[%s7249_s2 + $0x1] ss:$0 sm:$0xff] }
 0xf91   :  { %v4782_v22 = vpop.f32.mrb[71].mxu1 }
 0xf92   :  { %v2133_v23 = vadd.f32 %v4780_v18, %v6236_v8  ;;  %v4783_v24 = vadd.f32 %v4782_v22, %v4781_v20  ;;  %v4473_v20 = vld [vmem:[%s7272_s24 + $0x100] sm:$0xff] }
 0xf94   :  { %v6432_v26 = vadd.f32 %v4459_v21, %v2133_v23  ;;  %v2134_v27 = vadd.f32 %v4783_v24, %v6241_v10 }
 0xf96   :  { %v6435_v31 = vadd.f32 %v4459_v21, %v2134_v27  ;;  %v2148_v32 = vsel %vm69_vm0, %v6432_v26, 0.0  ;;  %v4474_v21 = vld [vmem:[%s7272_s24 + $0x108] sm:$0xff] }
 0xf97   :  { %2149 = vadd.xlane.f32.xlu0 %v2148_v32  ;;  %v2257_v24 = vpack.c.bf16 %v4474_v21, %v4473_v20  ;;  %v4475_v32 = vld [vmem:[%s7272_s24 + $0x110] sm:$0xff] }
 0xf98   :  { %v2151_v33 = vsel %vm69_vm0, %v6435_v31, 0.0 }
 0xf99   :  { %2152 = vadd.xlane.f32.xlu1 %v2151_v33  ;;  %v4476_v33 = vld [vmem:[%s7272_s24 + $0x118] sm:$0xff] }
0x1024   :  { %v2150_v34 = vpop.xlane.xlu0 %2149 }
0x1025   :  { %v2154_v35 = vmul.f32 0.015625, %v2150_v34  ;;  %v2258_v34 = vpack.c.bf16 %v4476_v33, %v4475_v32 }
0x1026   :  { %v2153_v36 = vpop.xlane.xlu1 %2152 }
0x1027   :  { %v2156_v8 = vsub.f32 %v6432_v26, %v2154_v35  ;;  %v2155_v60 = vmul.f32 0.015625, %v2153_v36  ;;  %v4477_v35 = vld [vmem:[%s7272_s24 + $0x120] sm:$0xff]  ;;  %v4478_v36 = vld [vmem:[%s7272_s24 + $0x128] sm:$0xff] }
0x1029   :  { %v2157_v0 = vsub.f32 %v6435_v31, %v2155_v60  ;;  %v2158_v1 = vmul.f32 %v2156_v8, %v2156_v8  ;;  %v4479_v60 = vld [vmem:[%s7272_s24 + $0x130] sm:$0xff] }
0x102b   :  { %v2160_v10 = vsel %vm69_vm0, %v2158_v1, 0.0  ;;  %v2159_v37 = vmul.f32 %v2157_v0, %v2157_v0 }
0x102c   :  { %2161 = vadd.xlane.f32.xlu0 %v2160_v10 }
0x102d   :  { %v2163_v38 = vsel %vm69_vm0, %v2159_v37, 0.0 }
0x102e   :  { %2164 = vadd.xlane.f32.xlu1 %v2163_v38 }
0x10b9   :  { %v2162_v3 = vpop.xlane.xlu0 %2161 }
0x10ba   :  { %v2166_v4 = vmul.f32 0.015625, %v2162_v3 }
0x10bb   :  { %v2165_v5 = vpop.xlane.xlu1 %2164 }
0x10bc   :  { %v2168_v6 = vadd.f32 1e-05, %v2166_v4  ;;  %v2167_v7 = vmul.f32 0.015625, %v2165_v5 }
0x10be   :  { %5494 = vrsqrt.f32 %v2168_v6  ;;  %v2169_v40 = vadd.f32 1e-05, %v2167_v7 }
0x10c0   :  { %5496 = vrsqrt.f32 %v2169_v40 }
0x10c8   :  { %v5495_v9 = vpop.eup %5494 }
0x10c9   :  { %v2172_v12 = vmul.f32 %v5495_v9, %v2156_v8  ;;  %v2259_v8 = vpack.c.bf16 %v4478_v36, %v4477_v35 }
0x10ca   :  { %v5497_v13 = vpop.eup %5496 }
0x10cb   :  { %v2180_v58 = vmul.f32 %v4462_v11, %v2172_v12  ;;  %v2173_v14 = vmul.f32 %v5497_v13, %v2157_v0  ;;  %v4480_v0 = vld [vmem:[%s7272_s24 + $0x138] sm:$0xff] }
0x10cc   :  { %v2260_v1 = vpack.c.bf16 %v4480_v0, %v4479_v60 }
0x10cd   :  { %v2181_v18 = vmul.f32 %v4462_v11, %v2173_v14  ;;  %v2188_v22 = vadd.f32 %v4463_v16, %v2180_v58 }
0x10cf   :  { %v2189_v23 = vadd.f32 %v4463_v16, %v2181_v18 }
0x10d1   :  { %v6513_v27 = vpack.c.bf16 %v2189_v23, %v2188_v22 }
0x10d3   :  { %5184 = vmatmul.mubr.msk.bf16.vlgmr.msra.gmra.mrb[64].mxu0 %vm69_vm0, %v6513_v27  ;;  %5208 = vmatmul.mubr.msk.bf16.vlgmr.msra.gmra.mrb[72].mxu1 %vm69_vm0, %v6513_v27 }
0x10d4   :  { %5188 = vmatpush3.bf16.msra.mxu0 %v2257_v24  ;;  %5195 = vmatprep.mubr.msk.bf16.mxu0 %vm5541_vm1, %v5540_v19 }
0x10d5   :  { %5189 = vmatprep.subr.bf16.mxu0 %v5540_v19  ;;  %5219 = vmatprep.mubr.msk.bf16.mxu1 %vm5541_vm1, %v5540_v19 }
0x10d8   :  { %5190 = vmatpush3.bf16.msra.mxu0 %v2258_v34 }
0x10d9   :  { %5191 = vmatprep.subr.bf16.mxu0 %v5540_v19 }
0x10dc   :  { %5192 = vmatpush3.bf16.msra.mxu0 %v2259_v8 }
0x10dd   :  { %5193 = vmatprep.subr.bf16.mxu0 %v5540_v19 }
0x10e0   :  { %5194 = vmatpush3.bf16.msra.mxu0 %v2260_v1 }
0x10e1   :  { %5211 = vmatprep.subr.bf16.mxu0 %v5540_v19 }
0x10e3   :  { %5196 = vmatmul.mubr.msk.bf16.vlgmr.msra.gmra.mrb[68].mxu0 %vm69_vm0, %v6513_v27 }
0x10e4   :  { %5213 = vmatprep.mubr.msk.bf16.mxu0 %vm5541_vm1, %v5540_v19 }
0x11a6   :  { %v2241_v10 = vpop.f32.mrb[64].mxu0  ;;  %v2349_v37 = vpop.f32.mrb[72].mxu1 }
0x11a7   :  { %v5185_v38 = vpop.f32.mrb[65].mxu0  ;;  %v5209_v39 = vpop.f32.mrb[73].mxu1  ;;  %v2496_v25 = vpack.c.bf16 %v2349_v37, %v2349_v37  ;;  %v2356_v29 = vpack.c.bf16 %v2241_v10, %v2241_v10 }
0x11a8   :  { %v2244_v41 = vpop.f32.mrb[66].mxu0  ;;  %v2352_v42 = vpop.f32.mrb[74].mxu1 }
0x11a9   :  { %v5186_v15 = vpop.f32.mrb[67].mxu0  ;;  %v5210_v17 = vpop.f32.mrb[75].mxu1  ;;  %v2497_v52 = vpack.c.bf16 %v2352_v42, %v2352_v42  ;;  %v2502_v53 = vsel %vm423_vm3, %v2496_v25, 0  ;;  %v2357_v54 = vpack.c.bf16 %v2244_v41, %v2244_v41 }
0x11ab   :  { %v2548_v56 = vsel %vm423_vm3, %v2497_v52, 0  ;;  %v4507_v52 = vld [vmem:[%s7272_s24 + $0x148] sm:$0xff] }
0x11b6   :  { %v2295_v43 = vpop.f32.mrb[68].mxu0 }
0x11b7   :  { %v2358_v44 = vpack.c.bf16 %v2295_v43, %v2295_v43  ;;  %v5197_v45 = vpop.f32.mrb[69].mxu0 }
0x11b8   :  { %v2298_v46 = vpop.f32.mrb[70].mxu0 }
0x11b9   :  { %v2364_v47 = vsel %vm280_vm2, %v2358_v44, 0  ;;  %v2359_v48 = vpack.c.bf16 %v2298_v46, %v2298_v46  ;;  %v5198_v50 = vpop.f32.mrb[71].mxu0 }
0x11ba   :  { %5212 = vmatpush3.bf16.xpose.msra.mxu0 %v2364_v47  ;;  %v4498_v50 = vld [vmem:[%s7271_s20 + $0x148] sm:$0xff] }
0x11bb   :  { %v2410_v51 = vsel %vm280_vm2, %v2359_v48, 0  ;;  %5223 = vmatprep.subr.bf16.mxu0 %v5540_v19  ;;  %v4497_v48 = vld [vmem:[%s7271_s20 + $0x140] sm:$0xff] }
0x11bc   :  { %5218 = vmatpush3.bf16.xpose.msra.mxu1 %v2410_v51 }
0x11bd   :  { %5229 = vmatprep.subr.bf16.mxu1 %v5540_v19 }
0x11c1   :  { %5214 = vmatmul.mubr.msk.bf16.vlgmr.msra.gmra.mrb[72].mxu0 %vm280_vm2, %v2356_v29  ;;  %v4506_v29 = vld [vmem:[%s7272_s24 + $0x140] sm:$0xff] }
0x11c2   :  { %5224 = vmatpush3.bf16.msra.mxu0 %v2502_v53  ;;  %5225 = vmatprep.mubr.msk.bf16.mxu0 %vm5541_vm1, %v5540_v19 }
0x11c3   :  { %5220 = vmatmul.mubr.msk.bf16.vlgmr.msra.gmra.mrb[76].mxu1 %vm280_vm2, %v2357_v54  ;;  %5235 = vmatprep.subr.bf16.mxu0 %v5540_v19  ;;  %v2604_v54 = vpack.c.bf16 %v4498_v50, %v4497_v48 }
0x11c4   :  { %5230 = vmatpush3.bf16.msra.mxu1 %v2548_v56  ;;  %5231 = vmatprep.mubr.msk.bf16.mxu1 %vm5541_vm1, %v5540_v19 }
0x11c5   :  { %5247 = vmatprep.subr.bf16.mxu1 %v5540_v19 }
0x1294   :  { %v2400_v59 = vpop.f32.mrb[72].mxu0 }
0x1295   :  { %v2452_v61 = vmul.f32 4.0, %v2400_v59  ;;  %v5215_v62 = vpop.f32.mrb[73].mxu0 }
0x1296   :  { %v2403_v63 = vpop.f32.mrb[74].mxu0  ;;  %v2446_v2 = vpop.f32.mrb[76].mxu1  ;;  %v4500_v62 = vld [vmem:[%s7271_s20 + $0x158] sm:$0xff] }
0x1297   :  { %v2454_v3 = vsel %vm5785_vm4, -inf, %v2452_v61  ;;  %v2453_v4 = vmul.f32 4.0, %v2446_v2  ;;  %v5216_v5 = vpop.f32.mrb[75].mxu0  ;;  %v5221_v6 = vpop.f32.mrb[77].mxu1  ;;  %v4499_v61 = vld [vmem:[%s7271_s20 + $0x150] sm:$0xff]  ;;  %v2658_v63 = vpack.c.bf16 %v4507_v52, %v4506_v29 }
0x1298   :  { %v2456_v7 = vsel %vm377_vm5, %v2454_v3, -inf  ;;  %v2449_v40 = vpop.f32.mrb[78].mxu1  ;;  %v2605_v5 = vpack.c.bf16 %v4500_v62, %v4499_v61  ;;  %v4501_v6 = vld [vmem:[%s7271_s20 + $0x160] sm:$0xff] }
0x1299   :  { %v2457_v9 = vrot.slane %v2456_v7, 4  ;;  %v2455_v11 = vsel %vm5785_vm4, -inf, %v2453_v4  ;;  %v5222_v12 = vpop.f32.mrb[79].mxu1  ;;  %v4509_v4 = vld [vmem:[%s7272_s24 + $0x158] sm:$0xff] }
0x129a   :  { %v2463_v13 = vsel %vm377_vm5, %v2455_v11, -inf }
0x129b   :  { %v2458_v58 = vmax.f32 %v2456_v7, %v2457_v9  ;;  %v2464_v14 = vrot.slane %v2463_v13, 4  ;;  %v4502_v7 = vld [vmem:[%s7271_s20 + $0x168] sm:$0xff]  ;;  %v4510_v9 = vld [vmem:[%s7272_s24 + $0x160] sm:$0xff] }
0x129c   :  { %v2606_v12 = vpack.c.bf16 %v4502_v7, %v4501_v6 }
0x129d   :  { %v2459_v16 = vrot.slane %v2458_v58, 2  ;;  %v2465_v18 = vmax.f32 %v2463_v13, %v2464_v14  ;;  %v4503_v13 = vld [vmem:[%s7271_s20 + $0x170] sm:$0xff] }
0x129f   :  { %v2460_v20 = vmax.f32 %v2458_v58, %v2459_v16  ;;  %v2466_v21 = vrot.slane %v2465_v18, 2  ;;  %v4504_v58 = vld [vmem:[%s7271_s20 + $0x178] sm:$0xff]  ;;  %v4512_v16 = vld [vmem:[%s7272_s24 + $0x170] sm:$0xff] }
0x12a1   :  { %v2461_v22 = vrot.slane %v2460_v20, 1  ;;  %v2467_v23 = vmax.f32 %v2465_v18, %v2466_v21  ;;  %v4513_v18 = vld [vmem:[%s7272_s24 + $0x178] sm:$0xff]  ;;  %v4515_v21 = vld [vmem:[%s7250_s5 + $0x140] sm:$0xff] }
0x12a3   :  { %v2462_v24 = vmax.f32 %v2460_v20, %v2461_v22  ;;  %v2468_v32 = vrot.slane %v2467_v23, 1  ;;  %v2607_v20 = vpack.c.bf16 %v4504_v58, %v4503_v13  ;;  %v4516_v22 = vld [vmem:[%s7250_s5 + $0x148] sm:$0xff] }
0x12a5   :  { %v2470_v33 = vsub.f32 %v2454_v3, %v2462_v24  ;;  %v2469_v34 = vmax.f32 %v2467_v23, %v2468_v32  ;;  %v4508_v3 = vld [vmem:[%s7272_s24 + $0x150] sm:$0xff]  ;;  %v2661_v23 = vpack.c.bf16 %v4513_v18, %v4512_v16  ;;  %v2712_v24 = vpack.c.bf16 %v4516_v22, %v4515_v21 }
0x12a6   :  { %v2659_v40 = vpack.c.bf16 %v4509_v4, %v4508_v3  ;;  %v4517_v32 = vld [vmem:[%s7250_s5 + $0x150] sm:$0xff] }
0x12a7   :  { %v2472_v35 = vmul.f32 1.442695, %v2470_v33  ;;  %v2471_v36 = vsub.f32 %v2455_v11, %v2469_v34  ;;  %v4511_v11 = vld [vmem:[%s7272_s24 + $0x168] sm:$0xff]  ;;  %v4518_v33 = vld [vmem:[%s7250_s5 + $0x158] sm:$0xff] }
0x12a8   :  { %v2660_v14 = vpack.c.bf16 %v4511_v11, %v4510_v9  ;;  %v2713_v34 = vpack.c.bf16 %v4518_v33, %v4517_v32 }
0x12a9   :  { %5498 = vpow2.f32 %v2472_v35  ;;  %v2474_v8 = vmul.f32 1.442695, %v2471_v36  ;;  %v4519_v35 = vld [vmem:[%s7250_s5 + $0x160] sm:$0xff]  ;;  %v4520_v36 = vld [vmem:[%s7250_s5 + $0x168] sm:$0xff] }
0x12ab   :  { %5500 = vpow2.f32 %v2474_v8  ;;  %v2714_v8 = vpack.c.bf16 %v4520_v36, %v4519_v35 }
0x12b3   :  { %v5499_v60 = vpop.eup %5498 }
0x12b4   :  { %v2476_v0 = vsel %vm377_vm5, %v5499_v60, 0.0 }
0x12b5   :  { %v5501_v1 = vpop.eup %5500  ;;  %v2477_v10 = vrot.slane %v2476_v0, 4 }
0x12b6   :  { %v2483_v37 = vsel %vm377_vm5, %v5501_v1, 0.0 }
0x12b7   :  { %v2478_v38 = vadd.f32 %v2477_v10, %v2476_v0  ;;  %v2484_v39 = vrot.slane %v2483_v37, 4  ;;  %v4522_v0 = vld [vmem:[%s7250_s5 + $0x178] sm:$0xff] }
0x12b9   :  { %v2479_v41 = vrot.slane %v2478_v38, 2  ;;  %v2485_v42 = vadd.f32 %v2484_v39, %v2483_v37 }
0x12bb   :  { %v2480_v15 = vadd.f32 %v2479_v41, %v2478_v38  ;;  %v2486_v17 = vrot.slane %v2485_v42, 2 }
0x12bd   :  { %v2481_v43 = vrot.slane %v2480_v15, 1  ;;  %v2487_v44 = vadd.f32 %v2486_v17, %v2485_v42 }
0x12bf   :  { %v2482_v45 = vadd.f32 %v2481_v43, %v2480_v15  ;;  %v2488_v46 = vrot.slane %v2487_v44, 1 }
0x12c1   :  { %5502 = vrcp.f32 %v2482_v45  ;;  %v2489_v47 = vadd.f32 %v2488_v46, %v2487_v44 }
0x12c3   :  { %5504 = vrcp.f32 %v2489_v47 }
0x12cb   :  { %v5503_v51 = vpop.eup %5502 }
0x12cc   :  { %v2492_v25 = vmul.f32 %v5503_v51, %v5499_v60  ;;  %v4521_v60 = vld [vmem:[%s7250_s5 + $0x170] sm:$0xff] }
0x12cd   :  { %v5505_v53 = vpop.eup %5504 }
0x12ce   :  { %v2494_v56 = vpack.c.bf16 %v2492_v25, %v2492_v25  ;;  %v2493_v59 = vmul.f32 %v5505_v53, %v5501_v1  ;;  %v2715_v1 = vpack.c.bf16 %v4522_v0, %v4521_v60 }
0x12d0   :  { %5226 = vmatmul.mubr.msk.bf16.vlgmr.msra.gmra.mrb[76].mxu0 %vm377_vm5, %v2494_v56  ;;  %v2495_v2 = vpack.c.bf16 %v2493_v59, %v2493_v59 }
0x12d1   :  { %5236 = vmatpush3.bf16.msra.mxu0 %v2604_v54  ;;  %5243 = vmatprep.mubr.msk.bf16.mxu0 %vm5541_vm1, %v5540_v19 }
0x12d2   :  { %5232 = vmatmul.mubr.msk.bf16.vlgmr.msra.gmra.mrb[80].mxu1 %vm377_vm5, %v2495_v2  ;;  %5237 = vmatprep.subr.bf16.mxu0 %v5540_v19 }
0x12d3   :  { %5248 = vmatpush3.bf16.msra.mxu1 %v2658_v63  ;;  %5255 = vmatprep.mubr.msk.bf16.mxu1 %vm5541_vm1, %v5540_v19 }
0x12d4   :  { %5249 = vmatprep.subr.bf16.mxu1 %v5540_v19 }
0x12d5   :  { %5238 = vmatpush3.bf16.msra.mxu0 %v2605_v5 }
0x12d6   :  { %5239 = vmatprep.subr.bf16.mxu0 %v5540_v19 }
0x12d7   :  { %5250 = vmatpush3.bf16.msra.mxu1 %v2659_v40 }
0x12d8   :  { %5251 = vmatprep.subr.bf16.mxu1 %v5540_v19 }
0x12d9   :  { %5240 = vmatpush3.bf16.msra.mxu0 %v2606_v12 }
0x12da   :  { %5241 = vmatprep.subr.bf16.mxu0 %v5540_v19 }
0x12db   :  { %5252 = vmatpush3.bf16.msra.mxu1 %v2660_v14 }
0x12dc   :  { %5253 = vmatprep.subr.bf16.mxu1 %v5540_v19 }
0x12dd   :  { %5242 = vmatpush3.bf16.msra.mxu0 %v2607_v20 }
0x12de   :  { %5259 = vmatprep.subr.bf16.mxu0 %v5540_v19 }
0x12df   :  { %5254 = vmatpush3.bf16.msra.mxu1 %v2661_v23 }
0x12e0   :  { %5244 = vmatmul.mubr.msk.bf16.vlgmr.msra.gmra.mrb[80].mxu0 %vm69_vm0, %v6513_v27  ;;  %5271 = vmatprep.subr.bf16.mxu1 %v5540_v19 }
0x12e1   :  { %5260 = vmatpush3.bf16.msra.mxu0 %v2712_v24  ;;  %5267 = vmatprep.mubr.msk.bf16.mxu0 %vm5541_vm1, %v5540_v19 }
0x12e2   :  { %5256 = vmatmul.mubr.msk.bf16.vlgmr.msra.gmra.mrb[84].mxu1 %vm69_vm0, %v6513_v27  ;;  %5261 = vmatprep.subr.bf16.mxu0 %v5540_v19 }
0x12e3   :  { %5273 = vmatprep.mubr.msk.bf16.mxu1 %vm5541_vm1, %v5540_v19 }
0x12e5   :  { %5262 = vmatpush3.bf16.msra.mxu0 %v2713_v34 }
0x12e6   :  { %5263 = vmatprep.subr.bf16.mxu0 %v5540_v19 }
0x12e9   :  { %5264 = vmatpush3.bf16.msra.mxu0 %v2714_v8 }
0x12ea   :  { %5265 = vmatprep.subr.bf16.mxu0 %v5540_v19 }
0x12ed   :  { %5266 = vmatpush3.bf16.msra.mxu0 %v2715_v1 }
0x12ee   :  { %5283 = vmatprep.subr.bf16.mxu0 %v5540_v19 }
0x12f0   :  { %5268 = vmatmul.mubr.msk.bf16.vlgmr.msra.gmra.mrb[84].mxu0 %vm69_vm0, %v6513_v27 }
0x12f1   :  { %5285 = vmatprep.mubr.msk.bf16.mxu0 %vm5541_vm1, %v5540_v19 }
0x13a3   :  { %v6673_v10 = vpop.f32.mrb[76].mxu0 }
0x13a4   :  { %v5227_v37 = vpop.f32.mrb[77].mxu0 }
0x13a5   :  { %v2541_v38 = vpop.f32.mrb[78].mxu0  ;;  %v6675_v39 = vpop.f32.mrb[80].mxu1 }
0x13a6   :  { %v2590_v41 = vpack.c.bf16 %v6675_v39, %v6673_v10  ;;  %v5228_v42 = vpop.f32.mrb[79].mxu0  ;;  %v5233_v15 = vpop.f32.mrb[81].mxu1  ;;  %v4547_v10 = vld [vmem:[%s7272_s24 + $0x1b0] sm:$0xff]  ;;  %v4548_v39 = vld [vmem:[%s7272_s24 + $0x1b8] sm:$0xff] }
0x13a7   :  { %v2587_v17 = vpop.f32.mrb[82].mxu1 }
0x13a8   :  { %v5234_v43 = vpop.f32.mrb[83].mxu1 }
0x13b3   :  { %v2642_v44 = vpop.f32.mrb[80].mxu0 }
0x13b4   :  { %v5245_v45 = vpop.f32.mrb[81].mxu0  ;;  %v2757_v54 = vpack.c.bf16 %v2642_v44, %v2642_v44 }
0x13b5   :  { %v2645_v46 = vpop.f32.mrb[82].mxu0  ;;  %v2696_v47 = vpop.f32.mrb[84].mxu1 }
0x13b6   :  { %v2759_v48 = vpack.c.bf16 %v2696_v47, %v2696_v47  ;;  %v5246_v50 = vpop.f32.mrb[83].mxu0  ;;  %v5257_v51 = vpop.f32.mrb[85].mxu1  ;;  %v2758_v2 = vpack.c.bf16 %v2645_v46, %v2645_v46 }
0x13b7   :  { %v2699_v25 = vpop.f32.mrb[86].mxu1 }
0x13b8   :  { %v2765_v29 = vsel %vm280_vm2, %v2759_v48, 0  ;;  %v5258_v52 = vpop.f32.mrb[87].mxu1  ;;  %v2760_v53 = vpack.c.bf16 %v2699_v25, %v2699_v25 }
0x13b9   :  { %5272 = vmatpush3.bf16.xpose.msra.mxu1 %v2765_v29 }
0x13ba   :  { %5277 = vmatprep.subr.bf16.mxu1 %v5540_v19  ;;  %v2811_v56 = vsel %vm280_vm2, %v2760_v53, 0 }
0x13c0   :  { %5274 = vmatmul.mubr.msk.bf16.vlgmr.msra.gmra.mrb[88].mxu1 %vm280_vm2, %v2757_v54 }
0x13c1   :  { %5278 = vmatpush3.bf16.xpose.msra.mxu1 %v2811_v56  ;;  %5279 = vmatprep.mubr.msk.bf16.mxu1 %vm5541_vm1, %v5540_v19 }
0x13c2   :  { %5289 = vmatprep.subr.bf16.mxu1 %v5540_v19 }
0x13c3   :  { %v2750_v59 = vpop.f32.mrb[84].mxu0 }
0x13c4   :  { %v2897_v61 = vpack.c.bf16 %v2750_v59, %v2750_v59  ;;  %v5269_v62 = vpop.f32.mrb[85].mxu0 }
0x13c5   :  { %v2753_v63 = vpop.f32.mrb[86].mxu0 }
0x13c6   :  { %v2903_v3 = vsel %vm423_vm3, %v2897_v61, 0  ;;  %v2898_v4 = vpack.c.bf16 %v2753_v63, %v2753_v63  ;;  %v5270_v5 = vpop.f32.mrb[87].mxu0 }
0x13c7   :  { %5284 = vmatpush3.bf16.msra.mxu0 %v2903_v3  ;;  %v4496_v5 = vld [vmem:[%s7251_s6 + $0x48] sm:$0xff] }
0x13c8   :  { %v2949_v6 = vsel %vm423_vm3, %v2898_v4, 0  ;;  %5280 = vmatmul.mubr.msk.bf16.vlgmr.msra.gmra.mrb[92].mxu1 %vm280_vm2, %v2758_v2  ;;  %5295 = vmatprep.subr.bf16.mxu0 %v5540_v19  ;;  %v4495_v4 = vld [vmem:[%s7251_s6 + $0x40] sm:$0xff] }
0x13c9   :  { %5290 = vmatpush3.bf16.msra.mxu1 %v2949_v6  ;;  %5291 = vmatprep.mubr.msk.bf16.mxu1 %vm5541_vm1, %v5540_v19 }
0x13ca   :  { %5301 = vmatprep.subr.bf16.mxu1 %v5540_v19 }
0x1493   :  { %v2801_v7 = vpop.f32.mrb[88].mxu1 }
0x1494   :  { %v2853_v40 = vmul.f32 4.0, %v2801_v7  ;;  %v5275_v9 = vpop.f32.mrb[89].mxu1 }
0x1495   :  { %v2804_v11 = vpop.f32.mrb[90].mxu1 }
0x1496   :  { %v2855_v12 = vsel %vm5785_vm4, -inf, %v2853_v40  ;;  %v5276_v13 = vpop.f32.mrb[91].mxu1  ;;  %v2594_v40 = vpack.c.bf16 %v4496_v5, %v4495_v4  ;;  %v4541_v11 = vld [vmem:[%s7272_s24 + $0x180] sm:$0xff] }
0x1497   :  { %v2857_v58 = vsel %vm377_vm5, %v2855_v12, -inf }
0x1498   :  { %v2858_v14 = vrot.slane %v2857_v58, 4 }
0x149a   :  { %v2859_v16 = vmax.f32 %v2857_v58, %v2858_v14  ;;  %v4543_v58 = vld [vmem:[%s7272_s24 + $0x190] sm:$0xff]  ;;  %v4544_v14 = vld [vmem:[%s7272_s24 + $0x198] sm:$0xff] }
0x149b   :  { %v2847_v18 = vpop.f32.mrb[92].mxu1 }
0x149c   :  { %v2860_v20 = vrot.slane %v2859_v16, 2  ;;  %v2854_v21 = vmul.f32 4.0, %v2847_v18  ;;  %v5281_v22 = vpop.f32.mrb[93].mxu1  ;;  %v4545_v18 = vld [vmem:[%s7272_s24 + $0x1a0] sm:$0xff] }
0x149d   :  { %v2850_v23 = vpop.f32.mrb[94].mxu1  ;;  %v4528_v22 = vld [vmem:[%s7251_s6 + $0x50] sm:$0xff] }
0x149e   :  { %v2861_v24 = vmax.f32 %v2859_v16, %v2860_v20  ;;  %v2856_v32 = vsel %vm5785_vm4, -inf, %v2854_v21  ;;  %v5282_v33 = vpop.f32.mrb[95].mxu1  ;;  %v3148_v16 = vpack.c.bf16 %v4544_v14, %v4543_v58  ;;  %v4546_v20 = vld [vmem:[%s7272_s24 + $0x1a8] sm:$0xff]  ;;  %v4529_v23 = vld [vmem:[%s7251_s6 + $0x58] sm:$0xff] }
0x149f   :  { %v2864_v34 = vsel %vm377_vm5, %v2856_v32, -inf  ;;  %v3149_v21 = vpack.c.bf16 %v4546_v20, %v4545_v18 }
0x14a0   :  { %v2862_v35 = vrot.slane %v2861_v24, 1  ;;  %v2865_v36 = vrot.slane %v2864_v34, 4 }
0x14a2   :  { %v2863_v8 = vmax.f32 %v2861_v24, %v2862_v35  ;;  %v2866_v60 = vmax.f32 %v2864_v34, %v2865_v36  ;;  %v2995_v24 = vpack.c.bf16 %v4529_v23, %v4528_v22  ;;  %v4532_v36 = vld [vmem:[%s7271_s20 + $0x180] sm:$0xff] }
0x14a4   :  { %v2871_v0 = vsub.f32 %v2855_v12, %v2863_v8  ;;  %v2867_v1 = vrot.slane %v2866_v60, 2  ;;  %v4542_v12 = vld [vmem:[%s7272_s24 + $0x188] sm:$0xff] }
0x14a5   :  { %v3147_v13 = vpack.c.bf16 %v4542_v12, %v4541_v11  ;;  %v4533_v8 = vld [vmem:[%s7271_s20 + $0x188] sm:$0xff] }
0x14a6   :  { %v2873_v37 = vmul.f32 1.442695, %v2871_v0  ;;  %v2868_v38 = vmax.f32 %v2866_v60, %v2867_v1  ;;  %v3093_v0 = vpack.c.bf16 %v4533_v8, %v4532_v36 }
0x14a8   :  { %5506 = vpow2.f32 %v2873_v37  ;;  %v2869_v42 = vrot.slane %v2868_v38, 1 }
0x14aa   :  { %v2870_v15 = vmax.f32 %v2868_v38, %v2869_v42  ;;  %v4534_v38 = vld [vmem:[%s7271_s20 + $0x190] sm:$0xff]  ;;  %v4535_v42 = vld [vmem:[%s7271_s20 + $0x198] sm:$0xff] }
0x14ac   :  { %v2872_v17 = vsub.f32 %v2856_v32, %v2870_v15 }
0x14ae   :  { %v2875_v43 = vmul.f32 1.442695, %v2872_v17 }
0x14b0   :  { %5508 = vpow2.f32 %v2875_v43  ;;  %v3094_v43 = vpack.c.bf16 %v4535_v42, %v4534_v38 }
0x14b2   :  { %v5507_v44 = vpop.eup %5506 }
0x14b3   :  { %v2877_v45 = vsel %vm377_vm5, %v5507_v44, 0.0 }
0x14b4   :  { %v2878_v46 = vrot.slane %v2877_v45, 4 }
0x14b6   :  { %v2879_v47 = vadd.f32 %v2878_v46, %v2877_v45  ;;  %v4537_v45 = vld [vmem:[%s7271_s20 + $0x1a8] sm:$0xff] }
0x14b8   :  { %v2880_v48 = vrot.slane %v2879_v47, 2 }
0x14ba   :  { %v5509_v50 = vpop.eup %5508  ;;  %v2881_v51 = vadd.f32 %v2880_v48, %v2879_v47 }
0x14bb   :  { %v2884_v25 = vsel %vm377_vm5, %v5509_v50, 0.0 }
0x14bc   :  { %v2882_v29 = vrot.slane %v2881_v51, 1  ;;  %v2885_v52 = vrot.slane %v2884_v25, 4 }
0x14be   :  { %v2883_v53 = vadd.f32 %v2882_v29, %v2881_v51  ;;  %v2886_v54 = vadd.f32 %v2885_v52, %v2884_v25  ;;  %v4539_v51 = vld [vmem:[%s7271_s20 + $0x1b8] sm:$0xff] }
0x14c0   :  { %5510 = vrcp.f32 %v2883_v53  ;;  %v2887_v56 = vrot.slane %v2886_v54, 2  ;;  %v4550_v53 = vld [vmem:[%s7250_s5 + $0x180] sm:$0xff] }
0x14c2   :  { %v2888_v59 = vadd.f32 %v2887_v56, %v2886_v54  ;;  %v4551_v54 = vld [vmem:[%s7250_s5 + $0x188] sm:$0xff] }
0x14c3   :  { %v3201_v56 = vpack.c.bf16 %v4551_v54, %v4550_v53 }
0x14c4   :  { %v2889_v61 = vrot.slane %v2888_v59, 1 }
0x14c6   :  { %v2890_v62 = vadd.f32 %v2889_v61, %v2888_v59  ;;  %v4552_v59 = vld [vmem:[%s7250_s5 + $0x190] sm:$0xff]  ;;  %v4553_v61 = vld [vmem:[%s7250_s5 + $0x198] sm:$0xff] }
0x14c8   :  { %5512 = vrcp.f32 %v2890_v62  ;;  %v3202_v62 = vpack.c.bf16 %v4553_v61, %v4552_v59 }
0x14ca   :  { %v5511_v63 = vpop.eup %5510 }
0x14cb   :  { %v2893_v2 = vmul.f32 %v5511_v63, %v5507_v44  ;;  %v4536_v44 = vld [vmem:[%s7271_s20 + $0x1a0] sm:$0xff] }
0x14cc   :  { %v3095_v47 = vpack.c.bf16 %v4537_v45, %v4536_v44  ;;  %v4554_v63 = vld [vmem:[%s7250_s5 + $0x1a0] sm:$0xff] }
0x14cd   :  { %v2895_v3 = vpack.c.bf16 %v2893_v2, %v2893_v2  ;;  %v4555_v2 = vld [vmem:[%s7250_s5 + $0x1a8] sm:$0xff] }
0x14ce   :  { %v3203_v4 = vpack.c.bf16 %v4555_v2, %v4554_v63 }
0x14cf   :  { %5286 = vmatmul.mubr.msk.bf16.vlgmr.msra.gmra.mrb[88].mxu0 %vm377_vm5, %v2895_v3 }
0x14d0   :  { %5297 = vmatprep.mubr.msk.bf16.mxu0 %vm5541_vm1, %v5540_v19  ;;  %5296 = vmatpush3.bf16.msra.mxu0 %v2995_v24 }
0x14d1   :  { %5307 = vmatprep.subr.bf16.mxu0 %v5540_v19 }
0x14d2   :  { %v5513_v6 = vpop.eup %5512 }
0x14d3   :  { %v2894_v7 = vmul.f32 %v5513_v6, %v5509_v50  ;;  %v4538_v50 = vld [vmem:[%s7271_s20 + $0x1b0] sm:$0xff] }
0x14d4   :  { %v3096_v52 = vpack.c.bf16 %v4539_v51, %v4538_v50 }
0x14d5   :  { %v2896_v9 = vpack.c.bf16 %v2894_v7, %v2894_v7  ;;  %v4556_v7 = vld [vmem:[%s7250_s5 + $0x1b0] sm:$0xff] }
0x14d7   :  { %5292 = vmatmul.mubr.msk.bf16.vlgmr.msra.gmra.mrb[96].mxu1 %vm377_vm5, %v2896_v9 }
0x14d8   :  { %5302 = vmatpush3.bf16.msra.mxu1 %v2594_v40  ;;  %5303 = vmatprep.mubr.msk.bf16.mxu1 %vm5541_vm1, %v5540_v19  ;;  %v4557_v40 = vld [vmem:[%s7250_s5 + $0x1b8] sm:$0xff] }
0x14d9   :  { %5319 = vmatprep.subr.bf16.mxu1 %v5540_v19 }
0x14df   :  { %5304 = vmatmul.mubr.msk.bf16.vlgmr.msra.gmra.mrb[100].mxu1 %vm280_vm2, %v2590_v41  ;;  %v3150_v41 = vpack.c.bf16 %v4548_v39, %v4547_v10 }
0x14e0   :  { %5320 = vmatpush3.bf16.msra.mxu1 %v3147_v13  ;;  %5327 = vmatprep.mubr.msk.bf16.mxu1 %vm5541_vm1, %v5540_v19  ;;  %v3204_v13 = vpack.c.bf16 %v4557_v40, %v4556_v7 }
0x14e1   :  { %5321 = vmatprep.subr.bf16.mxu1 %v5540_v19 }
0x14e4   :  { %5322 = vmatpush3.bf16.msra.mxu1 %v3148_v16 }
0x14e5   :  { %5323 = vmatprep.subr.bf16.mxu1 %v5540_v19 }
0x14e8   :  { %5324 = vmatpush3.bf16.msra.mxu1 %v3149_v21 }
0x14e9   :  { %5325 = vmatprep.subr.bf16.mxu1 %v5540_v19 }
0x14ec   :  { %5326 = vmatpush3.bf16.msra.mxu1 %v3150_v41 }
0x14ed   :  { %5343 = vmatprep.subr.bf16.mxu1 %v5540_v19 }
0x14ef   :  { %5328 = vmatmul.mubr.msk.bf16.vlgmr.msra.gmra.mrb[104].mxu1 %vm69_vm0, %v6513_v27 }
0x14f0   :  { %5345 = vmatprep.mubr.msk.bf16.mxu1 %vm5541_vm1, %v5540_v19 }
0x15a2   :  { %v2939_v32 = vpop.f32.mrb[88].mxu0 }
0x15a3   :  { %v5287_v33 = vpop.f32.mrb[89].mxu0 }
0x15a4   :  { %v2942_v34 = vpop.f32.mrb[90].mxu0 }
0x15a5   :  { %v5288_v35 = vpop.f32.mrb[91].mxu0 }
0x15aa   :  { %v2985_v60 = vpop.f32.mrb[96].mxu1 }
0x15ab   :  { %v2991_v1 = vpack.c.bf16 %v2985_v60, %v2939_v32  ;;  %v5293_v37 = vpop.f32.mrb[97].mxu1 }
0x15ac   :  { %v2988_v15 = vpop.f32.mrb[98].mxu1 }
0x15ad   :  { %v5294_v17 = vpop.f32.mrb[99].mxu1  ;;  %5298 = vmatmul.mubr.msk.bf16.vlgmr.msra.gmra.mrb[92].mxu0 %vm280_vm2, %v2991_v1 }
0x15ae   :  { %5308 = vmatpush3.bf16.msra.mxu0 %v3093_v0  ;;  %5315 = vmatprep.mubr.msk.bf16.mxu0 %vm5541_vm1, %v5540_v19 }
0x15af   :  { %5309 = vmatprep.subr.bf16.mxu0 %v5540_v19 }
0x15b2   :  { %5310 = vmatpush3.bf16.msra.mxu0 %v3094_v43  ;;  %v3077_v46 = vpop.f32.mrb[100].mxu1 }
0x15b3   :  { %v5305_v48 = vpop.f32.mrb[101].mxu1  ;;  %5311 = vmatprep.subr.bf16.mxu0 %v5540_v19 }
0x15b4   :  { %v3080_v25 = vpop.f32.mrb[102].mxu1 }
0x15b5   :  { %v5306_v29 = vpop.f32.mrb[103].mxu1 }
0x15b6   :  { %5312 = vmatpush3.bf16.msra.mxu0 %v3095_v47 }
0x15b7   :  { %5313 = vmatprep.subr.bf16.mxu0 %v5540_v19 }
0x15ba   :  { %5314 = vmatpush3.bf16.msra.mxu0 %v3096_v52 }
0x15bb   :  { %5331 = vmatprep.subr.bf16.mxu0 %v5540_v19 }
0x15bd   :  { %5316 = vmatmul.mubr.msk.bf16.vlgmr.msra.gmra.mrb[96].mxu0 %vm69_vm0, %v6513_v27 }
0x15be   :  { %5332 = vmatpush3.bf16.msra.mxu0 %v3201_v56  ;;  %5339 = vmatprep.mubr.msk.bf16.mxu0 %vm5541_vm1, %v5540_v19 }
0x15bf   :  { %5333 = vmatprep.subr.bf16.mxu0 %v5540_v19 }
0x15c2   :  { %v3185_v3 = vpop.f32.mrb[104].mxu1  ;;  %5334 = vmatpush3.bf16.msra.mxu0 %v3202_v62 }
0x15c3   :  { %v3248_v5 = vpack.c.bf16 %v3185_v3, %v3185_v3  ;;  %v5329_v6 = vpop.f32.mrb[105].mxu1  ;;  %5335 = vmatprep.subr.bf16.mxu0 %v5540_v19 }
0x15c4   :  { %v3188_v9 = vpop.f32.mrb[106].mxu1 }
0x15c5   :  { %v3254_v11 = vsel %vm280_vm2, %v3248_v5, 0  ;;  %v5330_v12 = vpop.f32.mrb[107].mxu1  ;;  %v3249_v10 = vpack.c.bf16 %v3188_v9, %v3188_v9 }
0x15c6   :  { %5336 = vmatpush3.bf16.msra.mxu0 %v3203_v4  ;;  %5344 = vmatpush3.bf16.xpose.msra.mxu1 %v3254_v11 }
0x15c7   :  { %5337 = vmatprep.subr.bf16.mxu0 %v5540_v19  ;;  %5349 = vmatprep.subr.bf16.mxu1 %v5540_v19  ;;  %v3300_v24 = vsel %vm280_vm2, %v3249_v10, 0 }
0x15ca   :  { %5338 = vmatpush3.bf16.msra.mxu0 %v3204_v13 }
0x15cb   :  { %5355 = vmatprep.subr.bf16.mxu0 %v5540_v19 }
0x15cd   :  { %5340 = vmatmul.mubr.msk.bf16.vlgmr.msra.gmra.mrb[100].mxu0 %vm69_vm0, %v6513_v27 }
0x15ce   :  { %5357 = vmatprep.mubr.msk.bf16.mxu0 %vm5541_vm1, %v5540_v19 }
0x1680   :  { %v3033_v58 = vpop.f32.mrb[92].mxu0 }
0x1681   :  { %v6828_v14 = vadd.f32 %v3077_v46, %v3033_v58  ;;  %v5299_v16 = vpop.f32.mrb[93].mxu0 }
0x1682   :  { %v3036_v18 = vpop.f32.mrb[94].mxu0 }
0x1683   :  { %v6830_v20 = vadd.f32 %v3080_v25, %v3036_v18  ;;  %v5300_v21 = vpop.f32.mrb[95].mxu0 }
0x1690   :  { %v3131_v39 = vpop.f32.mrb[96].mxu0 }
0x1691   :  { %v3246_v41 = vpack.c.bf16 %v3131_v39, %v3131_v39  ;;  %v5317_v22 = vpop.f32.mrb[97].mxu0 }
0x1692   :  { %v3134_v23 = vpop.f32.mrb[98].mxu0 }
0x1693   :  { %v5318_v32 = vpop.f32.mrb[99].mxu0  ;;  %5346 = vmatmul.mubr.msk.bf16.vlgmr.msra.gmra.mrb[108].mxu1 %vm280_vm2, %v3246_v41  ;;  %v3247_v33 = vpack.c.bf16 %v3134_v23, %v3134_v23 }
0x1694   :  { %5350 = vmatpush3.bf16.xpose.msra.mxu1 %v3300_v24  ;;  %5351 = vmatprep.mubr.msk.bf16.mxu1 %vm5541_vm1, %v5540_v19 }
0x1695   :  { %5361 = vmatprep.subr.bf16.mxu1 %v5540_v19 }
0x169b   :  { %5352 = vmatmul.mubr.msk.bf16.vlgmr.msra.gmra.mrb[112].mxu1 %vm280_vm2, %v3247_v33 }
0x169c   :  { %5363 = vmatprep.mubr.msk.bf16.mxu1 %vm5541_vm1, %v5540_v19 }
0x16a0   :  { %v3239_v34 = vpop.f32.mrb[100].mxu0 }
0x16a1   :  { %v3386_v35 = vpack.c.bf16 %v3239_v34, %v3239_v34  ;;  %v5341_v36 = vpop.f32.mrb[101].mxu0 }
0x16a2   :  { %v3242_v8 = vpop.f32.mrb[102].mxu0 }
0x16a3   :  { %v3392_v60 = vsel %vm423_vm3, %v3386_v35, 0  ;;  %v3387_v0 = vpack.c.bf16 %v3242_v8, %v3242_v8  ;;  %v5342_v1 = vpop.f32.mrb[103].mxu0 }
0x16a4   :  { %5356 = vmatpush3.bf16.msra.mxu0 %v3392_v60  ;;  %v4566_v60 = vld [vmem:[%s7271_s20 + $0x1c0] sm:$0xff] }
0x16a5   :  { %v3438_v37 = vsel %vm423_vm3, %v3387_v0, 0  ;;  %5367 = vmatprep.subr.bf16.mxu0 %v5540_v19  ;;  %v4567_v0 = vld [vmem:[%s7271_s20 + $0x1c8] sm:$0xff] }
0x16a6   :  { %5362 = vmatpush3.bf16.msra.mxu1 %v3438_v37 }
0x16a7   :  { %5373 = vmatprep.subr.bf16.mxu1 %v5540_v19 }
0x1766   :  { %v3290_v38 = vpop.f32.mrb[108].mxu1 }
0x1767   :  { %v3342_v42 = vmul.f32 4.0, %v3290_v38  ;;  %v5347_v15 = vpop.f32.mrb[109].mxu1  ;;  %v3540_v38 = vpack.c.bf16 %v4567_v0, %v4566_v60 }
0x1768   :  { %v3293_v17 = vpop.f32.mrb[110].mxu1  ;;  %v4568_v15 = vld [vmem:[%s7271_s20 + $0x1d0] sm:$0xff] }
0x1769   :  { %v3344_v43 = vsel %vm5785_vm4, -inf, %v3342_v42  ;;  %v5348_v44 = vpop.f32.mrb[111].mxu1  ;;  %v4569_v17 = vld [vmem:[%s7271_s20 + $0x1d8] sm:$0xff] }
0x176a   :  { %v3346_v45 = vsel %vm377_vm5, %v3344_v43, -inf  ;;  %v4570_v44 = vld [vmem:[%s7271_s20 + $0x1e0] sm:$0xff] }
0x176b   :  { %v3347_v46 = vrot.slane %v3346_v45, 4 }
0x176d   :  { %v3348_v47 = vmax.f32 %v3346_v45, %v3347_v46  ;;  %v4571_v45 = vld [vmem:[%s7271_s20 + $0x1e8] sm:$0xff] }
0x176e   :  { %v3336_v48 = vpop.f32.mrb[112].mxu1  ;;  %v3542_v46 = vpack.c.bf16 %v4571_v45, %v4570_v44 }
0x176f   :  { %v3349_v50 = vrot.slane %v3348_v47, 2  ;;  %v3343_v51 = vmul.f32 4.0, %v3336_v48  ;;  %v5353_v25 = vpop.f32.mrb[113].mxu1  ;;  %v4573_v48 = vld [vmem:[%s7271_s20 + $0x1f8] sm:$0xff] }
0x1770   :  { %v3339_v29 = vpop.f32.mrb[114].mxu1  ;;  %v4585_v25 = vld [vmem:[%s7250_s5 + $0x1c8] sm:$0xff] }
0x1771   :  { %v3350_v52 = vmax.f32 %v3348_v47, %v3349_v50  ;;  %v3345_v53 = vsel %vm5785_vm4, -inf, %v3343_v51  ;;  %v5354_v54 = vpop.f32.mrb[115].mxu1  ;;  %v4572_v47 = vld [vmem:[%s7271_s20 + $0x1f0] sm:$0xff]  ;;  %v4584_v51 = vld [vmem:[%s7250_s5 + $0x1c0] sm:$0xff] }
0x1772   :  { %v3353_v56 = vsel %vm377_vm5, %v3345_v53, -inf  ;;  %v3543_v50 = vpack.c.bf16 %v4573_v48, %v4572_v47  ;;  %v3648_v29 = vpack.c.bf16 %v4585_v25, %v4584_v51 }
0x1773   :  { %v3351_v59 = vrot.slane %v3350_v52, 1  ;;  %v3354_v61 = vrot.slane %v3353_v56, 4 }
0x1775   :  { %v3352_v62 = vmax.f32 %v3350_v52, %v3351_v59  ;;  %v3355_v63 = vmax.f32 %v3353_v56, %v3354_v61  ;;  %v4586_v52 = vld [vmem:[%s7250_s5 + $0x1d0] sm:$0xff]  ;;  %v4588_v56 = vld [vmem:[%s7250_s5 + $0x1e0] sm:$0xff]  ;;  %v4589_v59 = vld [vmem:[%s7250_s5 + $0x1e8] sm:$0xff] }
0x1776   :  { %v3650_v61 = vpack.c.bf16 %v4589_v59, %v4588_v56 }
0x1777   :  { %v3360_v2 = vsub.f32 %v3344_v43, %v3352_v62  ;;  %v3356_v3 = vrot.slane %v3355_v63, 2  ;;  %v3541_v43 = vpack.c.bf16 %v4569_v17, %v4568_v15  ;;  %v4590_v62 = vld [vmem:[%s7250_s5 + $0x1f0] sm:$0xff] }
0x1779   :  { %v3362_v4 = vmul.f32 1.442695, %v3360_v2  ;;  %v3357_v5 = vmax.f32 %v3355_v63, %v3356_v3  ;;  %v4591_v63 = vld [vmem:[%s7250_s5 + $0x1f8] sm:$0xff]  ;;  %v4563_v3 = vld [vmem:[%s7251_s6 + $0x60] sm:$0xff] }
0x177a   :  { %v3651_v2 = vpack.c.bf16 %v4591_v63, %v4590_v62 }
0x177b   :  { %5514 = vpow2.f32 %v3362_v4  ;;  %v3358_v6 = vrot.slane %v3357_v5, 1  ;;  %v4564_v4 = vld [vmem:[%s7251_s6 + $0x68] sm:$0xff] }
0x177d   :  { %v3359_v7 = vmax.f32 %v3357_v5, %v3358_v6  ;;  %v3484_v5 = vpack.c.bf16 %v4564_v4, %v4563_v3 }
0x177f   :  { %v3361_v40 = vsub.f32 %v3345_v53, %v3359_v7  ;;  %v4587_v53 = vld [vmem:[%s7250_s5 + $0x1d8] sm:$0xff] }
0x1780   :  { %v3649_v54 = vpack.c.bf16 %v4587_v53, %v4586_v52 }
0x1781   :  { %v3364_v9 = vmul.f32 1.442695, %v3361_v40 }
0x1783   :  { %5516 = vpow2.f32 %v3364_v9 }
0x1785   :  { %v5515_v11 = vpop.eup %5514 }
0x1786   :  { %v3366_v12 = vsel %vm377_vm5, %v5515_v11, 0.0 }
0x1787   :  { %v3367_v13 = vrot.slane %v3366_v12, 4 }
0x1789   :  { %v3368_v58 = vadd.f32 %v3367_v13, %v3366_v12  ;;  %v4576_v12 = vld [vmem:[%s7272_s24 + $0x1c8] sm:$0xff] }
0x178b   :  { %v3369_v16 = vrot.slane %v3368_v58, 2 }
0x178d   :  { %v5517_v18 = vpop.eup %5516  ;;  %v3370_v21 = vadd.f32 %v3369_v16, %v3368_v58 }
0x178e   :  { %v3373_v10 = vsel %vm377_vm5, %v5517_v18, 0.0 }
0x178f   :  { %v3371_v39 = vrot.slane %v3370_v21, 1  ;;  %v3374_v41 = vrot.slane %v3373_v10, 4 }
0x1791   :  { %v3372_v22 = vadd.f32 %v3371_v39, %v3370_v21  ;;  %v3375_v23 = vadd.f32 %v3374_v41, %v3373_v10  ;;  %v4577_v21 = vld [vmem:[%s7272_s24 + $0x1d0] sm:$0xff]  ;;  %v4578_v10 = vld [vmem:[%s7272_s24 + $0x1d8] sm:$0xff] }
0x1793   :  { %5518 = vrcp.f32 %v3372_v22  ;;  %v3376_v24 = vrot.slane %v3375_v23, 2  ;;  %v3595_v22 = vpack.c.bf16 %v4578_v10, %v4577_v21 }
0x1795   :  { %v3377_v32 = vadd.f32 %v3376_v24, %v3375_v23  ;;  %v4579_v23 = vld [vmem:[%s7272_s24 + $0x1e0] sm:$0xff]  ;;  %v4580_v24 = vld [vmem:[%s7272_s24 + $0x1e8] sm:$0xff] }
0x1797   :  { %v3378_v33 = vrot.slane %v3377_v32, 1 }
0x1799   :  { %v3379_v34 = vadd.f32 %v3378_v33, %v3377_v32  ;;  %v3596_v32 = vpack.c.bf16 %v4580_v24, %v4579_v23  ;;  %v4581_v33 = vld [vmem:[%s7272_s24 + $0x1f0] sm:$0xff] }
0x179b   :  { %5520 = vrcp.f32 %v3379_v34  ;;  %v4582_v34 = vld [vmem:[%s7272_s24 + $0x1f8] sm:$0xff] }
0x179d   :  { %v5519_v35 = vpop.eup %5518 }
0x179e   :  { %v3382_v36 = vmul.f32 %v5519_v35, %v5515_v11  ;;  %v4575_v11 = vld [vmem:[%s7272_s24 + $0x1c0] sm:$0xff]  ;;  %v3597_v35 = vpack.c.bf16 %v4582_v34, %v4581_v33 }
0x179f   :  { %v3594_v58 = vpack.c.bf16 %v4576_v12, %v4575_v11 }
0x17a0   :  { %v3384_v8 = vpack.c.bf16 %v3382_v36, %v3382_v36 }
0x17a2   :  { %5358 = vmatmul.mubr.msk.bf16.vlgmr.msra.gmra.mrb[104].mxu0 %vm377_vm5, %v3384_v8 }
0x17a3   :  { %5369 = vmatprep.mubr.msk.bf16.mxu0 %vm5541_vm1, %v5540_v19  ;;  %5368 = vmatpush3.bf16.msra.mxu0 %v3484_v5 }
0x17a4   :  { %5385 = vmatprep.subr.bf16.mxu0 %v5540_v19 }
0x17a5   :  { %v5521_v1 = vpop.eup %5520 }
0x17a6   :  { %v3383_v37 = vmul.f32 %v5521_v1, %v5517_v18 }
0x17a8   :  { %v3385_v42 = vpack.c.bf16 %v3383_v37, %v3383_v37 }
0x17aa   :  { %5364 = vmatmul.mubr.msk.bf16.vlgmr.msra.gmra.mrb[116].mxu1 %vm377_vm5, %v3385_v42 }
0x17ab   :  { %5374 = vmatpush3.bf16.msra.mxu1 %v3540_v38  ;;  %5381 = vmatprep.mubr.msk.bf16.mxu1 %vm5541_vm1, %v5540_v19 }
0x17ac   :  { %5375 = vmatprep.subr.bf16.mxu1 %v5540_v19 }
0x17af   :  { %5376 = vmatpush3.bf16.msra.mxu1 %v3541_v43 }
0x17b0   :  { %5377 = vmatprep.subr.bf16.mxu1 %v5540_v19 }
0x17b3   :  { %5378 = vmatpush3.bf16.msra.mxu1 %v3542_v46 }
0x17b4   :  { %5379 = vmatprep.subr.bf16.mxu1 %v5540_v19 }
0x17b7   :  { %5380 = vmatpush3.bf16.msra.mxu1 %v3543_v50 }
0x17b8   :  { %5397 = vmatprep.subr.bf16.mxu1 %v5540_v19 }
0x17ba   :  { %5382 = vmatmul.mubr.msk.bf16.vlgmr.msra.gmra.mrb[120].mxu1 %vm69_vm0, %v6513_v27 }
0x17bb   :  { %5398 = vmatpush3.bf16.msra.mxu1 %v3648_v29  ;;  %5405 = vmatprep.mubr.msk.bf16.mxu1 %vm5541_vm1, %v5540_v19 }
0x17bc   :  { %5399 = vmatprep.subr.bf16.mxu1 %v5540_v19 }
0x17bf   :  { %5400 = vmatpush3.bf16.msra.mxu1 %v3649_v54 }
0x17c0   :  { %5401 = vmatprep.subr.bf16.mxu1 %v5540_v19 }
0x17c3   :  { %5402 = vmatpush3.bf16.msra.mxu1 %v3650_v61 }
0x17c4   :  { %5403 = vmatprep.subr.bf16.mxu1 %v5540_v19 }
0x17c7   :  { %5404 = vmatpush3.bf16.msra.mxu1 %v3651_v2 }
0x17c8   :  { %5421 = vmatprep.subr.bf16.mxu1 %v5540_v19 }
0x17ca   :  { %5406 = vmatmul.mubr.msk.bf16.vlgmr.msra.gmra.mrb[124].mxu1 %vm69_vm0, %v6513_v27 }
0x17cb   :  { %5423 = vmatprep.mubr.msk.bf16.mxu1 %vm5541_vm1, %v5540_v19 }
0x1875   :  { %v3428_v6 = vpop.f32.mrb[104].mxu0 }
0x1876   :  { %v5359_v7 = vpop.f32.mrb[105].mxu0 }
0x1877   :  { %v3431_v40 = vpop.f32.mrb[106].mxu0 }
0x1878   :  { %v5360_v9 = vpop.f32.mrb[107].mxu0 }
0x187d   :  { %v3474_v13 = vpop.f32.mrb[116].mxu1 }
0x187e   :  { %v3480_v16 = vpack.c.bf16 %v3474_v13, %v3428_v6  ;;  %v5365_v18 = vpop.f32.mrb[117].mxu1 }
0x187f   :  { %v3477_v39 = vpop.f32.mrb[118].mxu1 }
0x1880   :  { %v5366_v41 = vpop.f32.mrb[119].mxu1  ;;  %5370 = vmatmul.mubr.msk.bf16.vlgmr.msra.gmra.mrb[108].mxu0 %vm280_vm2, %v3480_v16 }
0x1881   :  { %5386 = vmatpush3.bf16.msra.mxu0 %v3594_v58  ;;  %5393 = vmatprep.mubr.msk.bf16.mxu0 %vm5541_vm1, %v5540_v19 }
0x1882   :  { %5387 = vmatprep.subr.bf16.mxu0 %v5540_v19 }
0x1885   :  { %5388 = vmatpush3.bf16.msra.mxu0 %v3595_v22 }
0x1886   :  { %5389 = vmatprep.subr.bf16.mxu0 %v5540_v19 }
0x1889   :  { %5390 = vmatpush3.bf16.msra.mxu0 %v3596_v32 }
0x188a   :  { %5391 = vmatprep.subr.bf16.mxu0 %v5540_v19 }
0x188d   :  { %v3578_v36 = vpop.f32.mrb[120].mxu1  ;;  %5392 = vmatpush3.bf16.msra.mxu0 %v3597_v35 }
0x188e   :  { %v5383_v8 = vpop.f32.mrb[121].mxu1  ;;  %5409 = vmatprep.subr.bf16.mxu0 %v5540_v19  ;;  %v3693_v54 = vpack.c.bf16 %v3578_v36, %v3578_v36 }
0x188f   :  { %v3581_v60 = vpop.f32.mrb[122].mxu1 }
0x1890   :  { %v5384_v0 = vpop.f32.mrb[123].mxu1  ;;  %5394 = vmatmul.mubr.msk.bf16.vlgmr.msra.gmra.mrb[112].mxu0 %vm69_vm0, %v6513_v27  ;;  %v3694_v56 = vpack.c.bf16 %v3581_v60, %v3581_v60 }
0x1891   :  { %5411 = vmatprep.mubr.msk.bf16.mxu0 %vm5541_vm1, %v5540_v19 }
0x189d   :  { %v3686_v1 = vpop.f32.mrb[124].mxu1 }
0x189e   :  { %v3833_v37 = vpack.c.bf16 %v3686_v1, %v3686_v1  ;;  %v5407_v38 = vpop.f32.mrb[125].mxu1 }
0x189f   :  { %v3689_v42 = vpop.f32.mrb[126].mxu1 }
0x18a0   :  { %v3839_v15 = vsel %vm423_vm3, %v3833_v37, 0  ;;  %v5408_v17 = vpop.f32.mrb[127].mxu1 }
0x18a1   :  { %5422 = vmatpush3.bf16.msra.mxu1 %v3839_v15 }
0x18a2   :  { %5433 = vmatprep.subr.bf16.mxu1 %v5540_v19 }
0x1953   :  { %v3522_v43 = vpop.f32.mrb[108].mxu0 }
0x1954   :  { %v6967_v44 = vadd.f32 %v3522_v43, %v6828_v14  ;;  %v5371_v45 = vpop.f32.mrb[109].mxu0 }
0x1955   :  { %v3525_v46 = vpop.f32.mrb[110].mxu0 }
0x1956   :  { %v6970_v27 = vadd.f32 %v3525_v46, %v6830_v20  ;;  %v5372_v47 = vpop.f32.mrb[111].mxu0  ;;  %v3834_v20 = vpack.c.bf16 %v3689_v42, %v3689_v42 }
0x1958   :  { %v3885_v59 = vsel %vm423_vm3, %v3834_v20, 0  ;;  %v4597_v20 = vld [vmem:[%s7251_s6 + $0x70] sm:$0xff] }
0x1963   :  { %v3632_v48 = vpop.f32.mrb[112].mxu0 }
0x1964   :  { %v3695_v50 = vpack.c.bf16 %v3632_v48, %v3632_v48  ;;  %v5395_v51 = vpop.f32.mrb[113].mxu0 }
0x1965   :  { %v3635_v25 = vpop.f32.mrb[114].mxu0 }
0x1966   :  { %v3701_v29 = vsel %vm280_vm2, %v3695_v50, 0  ;;  %v5396_v52 = vpop.f32.mrb[115].mxu0  ;;  %v3696_v53 = vpack.c.bf16 %v3635_v25, %v3635_v25 }
0x1967   :  { %5410 = vmatpush3.bf16.xpose.msra.mxu0 %v3701_v29 }
0x1968   :  { %5415 = vmatprep.subr.bf16.mxu0 %v5540_v19  ;;  %v3747_v14 = vsel %vm280_vm2, %v3696_v53, 0 }
0x196e   :  { %5412 = vmatmul.mubr.msk.bf16.vlgmr.msra.gmra.mrb[116].mxu0 %vm280_vm2, %v3693_v54 }
0x196f   :  { %5416 = vmatpush3.bf16.xpose.msra.mxu0 %v3747_v14  ;;  %5417 = vmatprep.mubr.msk.bf16.mxu0 %vm5541_vm1, %v5540_v19 }
0x1970   :  { %5427 = vmatprep.subr.bf16.mxu0 %v5540_v19 }
0x1976   :  { %5418 = vmatmul.mubr.msk.bf16.vlgmr.msra.gmra.mrb[120].mxu0 %vm280_vm2, %v3694_v56  ;;  %v4598_v56 = vld [vmem:[%s7251_s6 + $0x78] sm:$0xff] }
0x1977   :  { %5428 = vmatpush3.bf16.msra.mxu0 %v3885_v59  ;;  %5429 = vmatprep.mubr.msk.bf16.mxu0 %vm5541_vm1, %v5540_v19  ;;  %v3931_v59 = vpack.c.bf16 %v4598_v56, %v4597_v20  ;;  %v4641_v20 = vld [vmem:[%s7254_s12 + $0x188] sm:$0xff]  ;;  %v4624_v56 = vld [vmem:[%s7254_s12 + $0x100] sm:$0xff] }
0x1a41   :  { %v3737_v61 = vpop.f32.mrb[116].mxu0 }
0x1a42   :  { %v3789_v62 = vmul.f32 4.0, %v3737_v61  ;;  %v5413_v63 = vpop.f32.mrb[117].mxu0 }
0x1a43   :  { %v3740_v2 = vpop.f32.mrb[118].mxu0 }
0x1a44   :  { %v3791_v3 = vsel %vm5785_vm4, -inf, %v3789_v62  ;;  %v5414_v4 = vpop.f32.mrb[119].mxu0 }
0x1a45   :  { %v3793_v5 = vsel %vm377_vm5, %v3791_v3, -inf }
0x1a46   :  { %v3794_v6 = vrot.slane %v3793_v5, 4 }
0x1a48   :  { %v3795_v7 = vmax.f32 %v3793_v5, %v3794_v6 }
0x1a49   :  { %v3783_v40 = vpop.f32.mrb[120].mxu0 }
0x1a4a   :  { %v3796_v9 = vrot.slane %v3795_v7, 2  ;;  %v3790_v11 = vmul.f32 4.0, %v3783_v40  ;;  %v5419_v12 = vpop.f32.mrb[121].mxu0 }
0x1a4b   :  { %v3786_v13 = vpop.f32.mrb[122].mxu0 }
0x1a4c   :  { %v3797_v58 = vmax.f32 %v3795_v7, %v3796_v9  ;;  %v3792_v16 = vsel %vm5785_vm4, -inf, %v3790_v11  ;;  %v5420_v18 = vpop.f32.mrb[123].mxu0  ;;  %v4601_v11 = vld [vmem:[%s7252_s7 + $0x1] ss:$0 sm:$0xff] }
0x1a4d   :  { %v3800_v21 = vsel %vm377_vm5, %v3792_v16, -inf }
0x1a4e   :  { %v3798_v10 = vrot.slane %v3797_v58, 1  ;;  %v3801_v39 = vrot.slane %v3800_v21, 4 }
0x1a50   :  { %v3799_v41 = vmax.f32 %v3797_v58, %v3798_v10  ;;  %v3802_v22 = vmax.f32 %v3800_v21, %v3801_v39 }
0x1a52   :  { %v3807_v23 = vsub.f32 %v3791_v3, %v3799_v41  ;;  %v3803_v24 = vrot.slane %v3802_v22, 2 }
0x1a54   :  { %v3809_v32 = vmul.f32 1.442695, %v3807_v23  ;;  %v3804_v33 = vmax.f32 %v3802_v22, %v3803_v24 }
0x1a56   :  { %5522 = vpow2.f32 %v3809_v32  ;;  %v3805_v34 = vrot.slane %v3804_v33, 1 }
0x1a58   :  { %v3806_v35 = vmax.f32 %v3804_v33, %v3805_v34 }
0x1a5a   :  { %v3808_v36 = vsub.f32 %v3792_v16, %v3806_v35  ;;  %v4607_v35 = vld [vmem:[%s7253_s10 + $0x88] sm:$0xff] }
0x1a5c   :  { %v3811_v8 = vmul.f32 1.442695, %v3808_v36  ;;  %v4609_v36 = vld [vmem:[%s7253_s10 + $0x98] sm:$0xff] }
0x1a5e   :  { %5524 = vpow2.f32 %v3811_v8  ;;  %v4055_v8 = vpack.c.bf16 %v4609_v36, %v4607_v35 }
0x1a60   :  { %v5523_v60 = vpop.eup %5522  ;;  %4078 = vmatprep.subr.bf16.mxu0 %v4055_v8 }
0x1a61   :  { %v3813_v30 = vsel %vm377_vm5, %v5523_v60, 0.0 }
0x1a62   :  { %v3814_v0 = vrot.slane %v3813_v30, 4 }
0x1a64   :  { %v3815_v1 = vadd.f32 %v3814_v0, %v3813_v30  ;;  %v4608_v30 = vld [vmem:[%s7253_s10 + $0x90] sm:$0xff] }
0x1a66   :  { %v3816_v37 = vrot.slane %v3815_v1, 2 }
0x1a68   :  { %v5525_v38 = vpop.eup %5524  ;;  %v3817_v42 = vadd.f32 %v3816_v37, %v3815_v1  ;;  %v4611_v1 = vld [vmem:[%s7253_s10 + $0xa8] sm:$0xff]  ;;  %v4613_v37 = vld [vmem:[%s7253_s10 + $0xb8] sm:$0xff] }
0x1a69   :  { %v3820_v15 = vsel %vm377_vm5, %v5525_v38, 0.0 }
0x1a6a   :  { %v3818_v17 = vrot.slane %v3817_v42, 1  ;;  %v3821_v43 = vrot.slane %v3820_v15, 4 }
0x1a6c   :  { %v3819_v45 = vadd.f32 %v3818_v17, %v3817_v42  ;;  %v3822_v46 = vadd.f32 %v3821_v43, %v3820_v15  ;;  %v4610_v42 = vld [vmem:[%s7253_s10 + $0xa0] sm:$0xff]  ;;  %v4612_v15 = vld [vmem:[%s7253_s10 + $0xb0] sm:$0xff]  ;;  %v4615_v43 = vld [vmem:[%s7253_s10 + $0xc8] sm:$0xff] }
0x1a6d   :  { %v4056_v17 = vpack.c.bf16 %v4612_v15, %v4610_v42 }
0x1a6e   :  { %5526 = vrcp.f32 %v3819_v45  ;;  %v3823_v47 = vrot.slane %v3822_v46, 2  ;;  %v4617_v45 = vld [vmem:[%s7253_s10 + $0xd8] sm:$0xff] }
0x1a70   :  { %v3824_v48 = vadd.f32 %v3823_v47, %v3822_v46  ;;  %v4059_v46 = vpack.c.bf16 %v4617_v45, %v4615_v43  ;;  %v4614_v47 = vld [vmem:[%s7253_s10 + $0xc0] sm:$0xff] }
0x1a71   :  { %v4605_v45 = vld [vmem:[%s7256_s9 + $0x1] ss:$0 sm:$0xff] }
0x1a72   :  { %v3825_v50 = vrot.slane %v3824_v48, 1 }
0x1a74   :  { %v3826_v51 = vadd.f32 %v3825_v50, %v3824_v48  ;;  %v4616_v48 = vld [vmem:[%s7253_s10 + $0xd0] sm:$0xff] }
0x1a75   :  { %v4058_v50 = vpack.c.bf16 %v4616_v48, %v4614_v47 }
0x1a76   :  { %5528 = vrcp.f32 %v3826_v51  ;;  %v4619_v51 = vld [vmem:[%s7253_s10 + $0xe8] sm:$0xff] }
0x1a78   :  { %v5527_v25 = vpop.eup %5526 }
0x1a79   :  { %v3829_v29 = vmul.f32 %v5527_v25, %v5523_v60  ;;  %v4606_v60 = vld [vmem:[%s7253_s10 + $0x80] sm:$0xff]  ;;  %v4621_v25 = vld [vmem:[%s7253_s10 + $0xf8] sm:$0xff] }
0x1a7a   :  { %v4054_v0 = vpack.c.bf16 %v4608_v30, %v4606_v60 }
0x1a7b   :  { %v3831_v52 = vpack.c.bf16 %v3829_v29, %v3829_v29  ;;  %v4061_v29 = vpack.c.bf16 %v4621_v25, %v4619_v51  ;;  %v4652_v25 = vld [vmem:[%s7254_s12 + $0x1e0] sm:$0xff] }
0x1a7d   :  { %5424 = vmatmul.mubr.msk.bf16.vlgmr.msra.gmra.mrb[128].mxu1 %vm377_vm5, %v3831_v52  ;;  %v4618_v52 = vld [vmem:[%s7253_s10 + $0xe0] sm:$0xff] }
0x1a7e   :  { %5435 = vmatprep.mubr.msk.bf16.mxu1 %vm5541_vm1, %v5540_v19  ;;  %5434 = vmatpush3.bf16.msra.mxu1 %v3931_v59 }
0x1a80   :  { %v5529_v53 = vpop.eup %5528 }
0x1a81   :  { %v3830_v54 = vmul.f32 %v5529_v53, %v5525_v38  ;;  %v4057_v38 = vpack.c.bf16 %v4613_v37, %v4611_v1  ;;  %v4620_v53 = vld [vmem:[%s7253_s10 + $0xf0] sm:$0xff] }
0x1a83   :  { %v3832_v14 = vpack.c.bf16 %v3830_v54, %v3830_v54  ;;  %v4060_v54 = vpack.c.bf16 %v4620_v53, %v4618_v52  ;;  %v4636_v53 = vld [vmem:[%s7254_s12 + $0x160] sm:$0xff] }
0x1a85   :  { %5430 = vmatmul.mubr.msk.bf16.vlgmr.msra.gmra.mrb[124].mxu0 %vm377_vm5, %v3832_v14  ;;  %v4640_v14 = vld [vmem:[%s7254_s12 + $0x180] sm:$0xff] }
0x1a86   :  { %4110 = vmatprep.mubr.bf16.mxu0 %v5542_v49  ;;  %4079 = vmatpush1.bf16.msra.mxu0 %v4054_v0  ;;  %v4168_v59 = vpack.c.bf16 %v4641_v20, %v4640_v14  ;;  %v4654_v20 = vld [vmem:[%s7254_s12 + $0x1f0] sm:$0xff] }
0x1a87   :  { %4080 = vmatprep.subr.bf16.mxu0 %v4057_v38  ;;  %v4604_v38 = vld [vmem:[%s7255_s8 + $0x1] ss:$0 sm:$0xff] }
0x1a88   :  { %4884 = vmatprep.subr.bf16.mxu1 %v4168_v59 }
0x1a8a   :  { %4081 = vmatpush1.bf16.msra.mxu0 %v4056_v17 }
0x1a8b   :  { %4082 = vmatprep.subr.bf16.mxu0 %v4059_v46 }
0x1a8e   :  { %4083 = vmatpush1.bf16.msra.mxu0 %v4058_v50 }
0x1a8f   :  { %4084 = vmatprep.subr.bf16.mxu0 %v4061_v29  ;;  %v4653_v29 = vld [vmem:[%s7254_s12 + $0x1e8] sm:$0xff] }
0x1a90   :  { %v4174_v52 = vpack.c.bf16 %v4653_v29, %v4652_v25 }
0x1a92   :  { %4085 = vmatpush1.bf16.msra.mxu0 %v4060_v54  ;;  %v4637_v54 = vld [vmem:[%s7254_s12 + $0x168] sm:$0xff] }
0x1a93   :  { %5439 = vmatprep.subr.bf16.mxu0 %v5540_v19  ;;  %v4166_v14 = vpack.c.bf16 %v4637_v54, %v4636_v53 }
0x1b50   :  { %v3875_v61 = vpop.f32.mrb[128].mxu1 }
0x1b51   :  { %v5425_v62 = vpop.f32.mrb[129].mxu1 }
0x1b52   :  { %v3878_v63 = vpop.f32.mrb[130].mxu1  ;;  %v4642_v62 = vld [vmem:[%s7254_s12 + $0x190] sm:$0xff] }
0x1b53   :  { %v5426_v2 = vpop.f32.mrb[131].mxu1  ;;  %v4643_v63 = vld [vmem:[%s7254_s12 + $0x198] sm:$0xff] }
0x1b58   :  { %v3921_v3 = vpop.f32.mrb[124].mxu0 }
0x1b59   :  { %v3927_v4 = vpack.c.bf16 %v3921_v3, %v3875_v61  ;;  %v5431_v5 = vpop.f32.mrb[125].mxu0  ;;  %v4625_v61 = vld [vmem:[%s7254_s12 + $0x108] sm:$0xff]  ;;  %v4169_v3 = vpack.c.bf16 %v4643_v63, %v4642_v62  ;;  %v4639_v62 = vld [vmem:[%s7254_s12 + $0x178] sm:$0xff] }
0x1b5a   :  { %v3924_v6 = vpop.f32.mrb[126].mxu0  ;;  %v4160_v2 = vpack.c.bf16 %v4625_v61, %v4624_v56  ;;  %v4627_v5 = vld [vmem:[%s7254_s12 + $0x118] sm:$0xff]  ;;  %v4638_v61 = vld [vmem:[%s7254_s12 + $0x170] sm:$0xff] }
0x1b5b   :  { %v5432_v7 = vpop.f32.mrb[127].mxu0  ;;  %5436 = vmatmul.mubr.msk.bf16.vlgmr.msra.gmra.mrb[132].mxu1 %vm280_vm2, %v3927_v4  ;;  %v4626_v4 = vld [vmem:[%s7254_s12 + $0x110] sm:$0xff]  ;;  %v4644_v6 = vld [vmem:[%s7254_s12 + $0x1a0] sm:$0xff]  ;;  %v4655_v56 = vld [vmem:[%s7254_s12 + $0x1f8] sm:$0xff]  ;;  %v4167_v63 = vpack.c.bf16 %v4639_v62, %v4638_v61 }
0x1b5c   :  { %v4645_v7 = vld [vmem:[%s7254_s12 + $0x1a8] sm:$0xff]  ;;  %4885 = vmatpush3.bf16.msra.mxu1 %v4160_v2  ;;  %v4175_v59 = vpack.c.bf16 %v4655_v56, %v4654_v20  ;;  %v4622_v2 = vld [vmem:[%s7257_s11 + $0x2] sm:$0x3] }
0x1b5d   :  { %4886 = vmatprep.subr.bf16.mxu1 %v4169_v3  ;;  %v4068_v3 = vrot.slane %v4622_v2, %v1984_v55 }
0x1c2e   :  { %v3969_v49 = vpop.f32.mrb[132].mxu1 }
0x1c2f   :  { %v3976_v40 = vadd.f32 %v3969_v49, %v6967_v44  ;;  %v5437_v9 = vpop.f32.mrb[133].mxu1  ;;  %v4161_v49 = vpack.c.bf16 %v4627_v5, %v4626_v4  ;;  %v4072_v4 = vrot.slane %v4622_v2, %v1988_v57  ;;  %v4659_v2 = vld [vmem:[%s7261_s15] ss:$0 sm:$0xff] }
0x1c30   :  { %v3972_v12 = vpop.f32.mrb[134].mxu1  ;;  %v4628_v9 = vld [vmem:[%s7254_s12 + $0x120] sm:$0xff] }
0x1c31   :  { %v3978_v13 = vadd.f32 %v3976_v40, %v6432_v26  ;;  %v3977_v58 = vadd.f32 %v3972_v12, %v6970_v27  ;;  %v5438_v16 = vpop.f32.mrb[135].mxu1  ;;  %v4170_v40 = vpack.c.bf16 %v4645_v7, %v4644_v6  ;;  %v4646_v12 = vld [vmem:[%s7254_s12 + $0x1b0] sm:$0xff]  ;;  %4887 = vmatpush3.bf16.msra.mxu1 %v4161_v49 }
0x1c33   :  { %v7009_v18 = vadd.f32 %v4601_v11, %v3978_v13  ;;  %v3979_v21 = vadd.f32 %v3977_v58, %v6435_v31  ;;  %v4647_v13 = vld [vmem:[%s7254_s12 + $0x1b8] sm:$0xff]  ;;  %4888 = vmatprep.subr.bf16.mxu1 %v4170_v40 }
0x1c34   :  { %v4171_v16 = vpack.c.bf16 %v4647_v13, %v4646_v12 }
0x1c35   :  { %v7012_v10 = vadd.f32 %v4601_v11, %v3979_v21  ;;  %v3994_v44 = vsel %vm69_vm0, %v7009_v18, 0.0  ;;  %v4629_v11 = vld [vmem:[%s7254_s12 + $0x128] sm:$0xff]  ;;  %v4630_v21 = vld [vmem:[%s7254_s12 + $0x130] sm:$0xff] }
0x1c36   :  { %3995 = vadd.xlane.f32.xlu0 %v3994_v44  ;;  %v4162_v58 = vpack.c.bf16 %v4629_v11, %v4628_v9  ;;  %v4631_v44 = vld [vmem:[%s7254_s12 + $0x138] sm:$0xff] }
0x1c37   :  { %v3997_v39 = vsel %vm69_vm0, %v7012_v10, 0.0 }
0x1c38   :  { %3998 = vadd.xlane.f32.xlu1 %v3997_v39  ;;  %v4648_v39 = vld [vmem:[%s7254_s12 + $0x1c0] sm:$0xff]  ;;  %4889 = vmatpush3.bf16.msra.mxu1 %v4162_v58 }
0x1c39   :  { %4890 = vmatprep.subr.bf16.mxu1 %v4171_v16 }
0x1cc3   :  { %v3996_v41 = vpop.xlane.xlu0 %3995 }
0x1cc4   :  { %v4000_v22 = vmul.f32 0.015625, %v3996_v41  ;;  %v4649_v41 = vld [vmem:[%s7254_s12 + $0x1c8] sm:$0xff] }
0x1cc5   :  { %v3999_v26 = vpop.xlane.xlu1 %3998 }
0x1cc6   :  { %v7019_v27 = vsub.f32 %v7009_v18, %v4000_v22  ;;  %v4001_v23 = vmul.f32 0.015625, %v3999_v26  ;;  %v4163_v22 = vpack.c.bf16 %v4631_v44, %v4630_v21  ;;  %v4172_v26 = vpack.c.bf16 %v4649_v41, %v4648_v39 }
0x1cc8   :  { %v7022_v24 = vsub.f32 %v7012_v10, %v4001_v23  ;;  %v4004_v31 = vmul.f32 %v7019_v27, %v7019_v27  ;;  %v4632_v23 = vld [vmem:[%s7254_s12 + $0x140] sm:$0xff]  ;;  %4891 = vmatpush3.bf16.msra.mxu1 %v4163_v22 }
0x1cc9   :  { %4892 = vmatprep.subr.bf16.mxu1 %v4172_v26  ;;  %v4657_v26 = vld [vmem:[%s7258_s13 + $0x1] ss:$0 sm:$0xff] }
0x1cca   :  { %v4006_v32 = vsel %vm69_vm0, %v4004_v31, 0.0  ;;  %v4005_v33 = vmul.f32 %v7022_v24, %v7022_v24  ;;  %v4633_v31 = vld [vmem:[%s7254_s12 + $0x148] sm:$0xff] }
0x1ccb   :  { %4007 = vadd.xlane.f32.xlu0 %v4006_v32  ;;  %v4650_v32 = vld [vmem:[%s7254_s12 + $0x1d0] sm:$0xff] }
0x1ccc   :  { %v4009_v34 = vsel %vm69_vm0, %v4005_v33, 0.0  ;;  %v4651_v33 = vld [vmem:[%s7254_s12 + $0x1d8] sm:$0xff] }
0x1ccd   :  { %4010 = vadd.xlane.f32.xlu1 %v4009_v34  ;;  %v4164_v34 = vpack.c.bf16 %v4633_v31, %v4632_v23  ;;  %v4173_v35 = vpack.c.bf16 %v4651_v33, %v4650_v32 }
0x1ccf   :  { %4893 = vmatpush3.bf16.msra.mxu1 %v4164_v34 }
0x1cd0   :  { %4894 = vmatprep.subr.bf16.mxu1 %v4173_v35 }
0x1d58   :  { %v4008_v36 = vpop.xlane.xlu0 %4007 }
0x1d59   :  { %v4012_v8 = vmul.f32 0.015625, %v4008_v36 }
0x1d5a   :  { %v4011_v60 = vpop.xlane.xlu1 %4010 }
0x1d5b   :  { %v4014_v30 = vadd.f32 1e-05, %v4012_v8  ;;  %v4013_v0 = vmul.f32 0.015625, %v4011_v60 }
0x1d5d   :  { %5530 = vrsqrt.f32 %v4014_v30  ;;  %v4015_v1 = vadd.f32 1e-05, %v4013_v0 }
0x1d5f   :  { %5532 = vrsqrt.f32 %v4015_v1 }
0x1d67   :  { %v5531_v37 = vpop.eup %5530 }
0x1d68   :  { %v4018_v42 = vmul.f32 %v5531_v37, %v7019_v27  ;;  %v4634_v27 = vld [vmem:[%s7254_s12 + $0x150] sm:$0xff] }
0x1d69   :  { %v5533_v15 = vpop.eup %5532 }
0x1d6a   :  { %v4026_v17 = vmul.f32 %v4604_v38, %v4018_v42  ;;  %v4019_v43 = vmul.f32 %v5533_v15, %v7022_v24  ;;  %v4635_v24 = vld [vmem:[%s7254_s12 + $0x158] sm:$0xff]  ;;  %v4273_v15 = vld [vmem:[%s7259_s16] sm:$0xff] }
0x1d6b   :  { %v4165_v51 = vpack.c.bf16 %v4635_v24, %v4634_v27  ;;  %v4279_v24 = vld [vmem:[%s7259_s16 + $0x30] sm:$0xff] }
0x1d6c   :  { %v4027_v46 = vmul.f32 %v4604_v38, %v4019_v43  ;;  %v4034_v47 = vadd.f32 %v4605_v45, %v4026_v17  ;;  %v4274_v17 = vld [vmem:[%s7259_s16 + $0x8] sm:$0xff] }
0x1d6d   :  { %4895 = vmatpush3.bf16.msra.mxu1 %v4165_v51  ;;  %v4282_v43 = vpack.c.bf16 %v4274_v17, %v4273_v15  ;;  %v4280_v51 = vld [vmem:[%s7259_s16 + $0x38] sm:$0xff] }
0x1d6e   :  { %v4035_v48 = vadd.f32 %v4605_v45, %v4027_v46  ;;  %4896 = vmatprep.subr.bf16.mxu1 %v4174_v52  ;;  %v4275_v45 = vld [vmem:[%s7259_s16 + $0x10] sm:$0xff]  ;;  %v4276_v46 = vld [vmem:[%s7259_s16 + $0x18] sm:$0xff]  ;;  %v4285_v25 = vpack.c.bf16 %v4280_v51, %v4279_v24 }
0x1d70   :  { %v4053_v50 = vpack.c.bf16 %v4035_v48, %v4034_v47  ;;  %v4283_v47 = vpack.c.bf16 %v4276_v46, %v4275_v45  ;;  %v4277_v48 = vld [vmem:[%s7259_s16 + $0x20] sm:$0xff] }
0x1d71   :  { %4897 = vmatpush3.bf16.msra.mxu1 %v4166_v14 }
0x1d72   :  { %4623 = vmatmul.mubr.msk.bf16.vlgmr.msra.gmra.mrb[128].mxu0 %vm69_vm0, %v4053_v50  ;;  %4898 = vmatprep.subr.bf16.mxu1 %v4175_v59  ;;  %v4278_v50 = vld [vmem:[%s7259_s16 + $0x28] sm:$0xff] }
0x1d73   :  { %5447 = vmatprep.mubr.msk.bf16.mxu0 %vm5541_vm1, %v5540_v19  ;;  %5440 = vmatpush3.bf16.msra.mxu0 %v4282_v43  ;;  %v4284_v27 = vpack.c.bf16 %v4278_v50, %v4277_v48 }
0x1d74   :  { %5441 = vmatprep.subr.bf16.mxu0 %v5540_v19 }
0x1d75   :  { %4899 = vmatpush3.bf16.msra.mxu1 %v4167_v63 }
0x1d77   :  { %5442 = vmatpush3.bf16.msra.mxu0 %v4283_v47 }
0x1d78   :  { %5443 = vmatprep.subr.bf16.mxu0 %v5540_v19 }
0x1d7b   :  { %5444 = vmatpush3.bf16.msra.mxu0 %v4284_v27 }
0x1d7c   :  { %5445 = vmatprep.subr.bf16.mxu0 %v5540_v19  ;;  %v4658_v19 = vld [vmem:[%s7260_s14] ss:$0 sm:$0xff] }
0x1d7f   :  { %5446 = vmatpush3.bf16.msra.mxu0 %v4285_v25 }
0x1e45   :  { %v4112_v5 = vpop.f32.mrb[128].mxu0 }
0x1e46   :  { %v4113_v6 = vadd.f32 %v4112_v5, %v4068_v3  ;;  %v4114_v7 = vpop.f32.mrb[129].mxu0 }
0x1e47   :  { %v4115_v49 = vadd.f32 %v4114_v7, %v4072_v4  ;;  %v4116_v40 = vpop.f32.mrb[130].mxu0  ;;  %v4660_v7 = vld [vmem:[%s7262_s17] ss:$0 sm:$0xff] }
0x1e48   :  { %v4117_v9 = vadd.f32 %v4116_v40, %v4068_v3  ;;  %v4118_v11 = vpop.f32.mrb[131].mxu0  ;;  %v4121_v13 = vmax.f32 %v4113_v6, 0.0 }
0x1e49   :  { %v4119_v12 = vadd.f32 %v4118_v11, %v4072_v4  ;;  %v4122_v16 = vmax.f32 %v4115_v49, 0.0 }
0x1e4a   :  { %v4123_v58 = vmax.f32 %v4117_v9, 0.0 }
0x1e4b   :  { %v4124_v21 = vmax.f32 %v4119_v12, 0.0 }
0x1e4c   :  { %v4158_v44 = vpack.c.bf16 %v4123_v58, %v4121_v13 }
0x1e4d   :  { %v4159_v39 = vpack.c.bf16 %v4124_v21, %v4122_v16 }
0x1e4f   :  { %4208 = vmatprep.mubr.bf16.mxu1 %v4159_v39 }
0x1e50   :  { %4209 = vmatmul.mubr.bf16.vlgmr.msra.gmra.mrb[136].mxu1 %v4158_v44 }
0x1f23   :  { %v4900_v55 = vpop.f32.mrb[136].mxu1 }
0x1f24   :  { %v4901_v41 = vpop.f32.mrb[137].mxu1 }
0x1f25   :  { %v4902_v28 = vadd.f32 %v4901_v41, %v4900_v55  ;;  %v4903_v57 = vpop.f32.mrb[138].mxu1 }
0x1f26   :  { %v4904_v22 = vpop.f32.mrb[139].mxu1 }
0x1f27   :  { %v4217_v23 = vadd.f32 %v4902_v28, %v7009_v18  ;;  %v4905_v31 = vadd.f32 %v4904_v22, %v4903_v57 }
0x1f29   :  { %v4218_v32 = vadd.f32 %v4905_v31, %v7012_v10  ;;  %v4227_v33 = vadd.f32 %v4657_v26, %v4217_v23 }
0x1f2b   :  { %v4231_v34 = vsel %vm69_vm0, %v4227_v33, 0.0  ;;  %v4228_v35 = vadd.f32 %v4657_v26, %v4218_v32 }
0x1f2c   :  { %4232 = vadd.xlane.f32.xlu0 %v4231_v34 }
0x1f2d   :  { %v4234_v36 = vsel %vm69_vm0, %v4228_v35, 0.0 }
0x1f2e   :  { %4235 = vadd.xlane.f32.xlu1 %v4234_v36 }
0x1fb9   :  { %v4233_v8 = vpop.xlane.xlu0 %4232 }
0x1fba   :  { %v4237_v60 = vmul.f32 0.015625, %v4233_v8 }
0x1fbb   :  { %v4236_v30 = vpop.xlane.xlu1 %4235 }
0x1fbc   :  { %v4239_v0 = vsub.f32 %v4227_v33, %v4237_v60  ;;  %v4238_v1 = vmul.f32 0.015625, %v4236_v30 }
0x1fbe   :  { %v4240_v37 = vsub.f32 %v4228_v35, %v4238_v1  ;;  %v4241_v38 = vmul.f32 %v4239_v0, %v4239_v0 }
0x1fc0   :  { %v4243_v18 = vsel %vm69_vm0, %v4241_v38, 0.0  ;;  %v4242_v42 = vmul.f32 %v4240_v37, %v4240_v37 }
0x1fc1   :  { %4244 = vadd.xlane.f32.xlu0 %v4243_v18 }
0x1fc2   :  { %v4246_v10 = vsel %vm69_vm0, %v4242_v42, 0.0 }
0x1fc3   :  { %4247 = vadd.xlane.f32.xlu1 %v4246_v10 }
0x204e   :  { %v4245_v29 = vpop.xlane.xlu0 %4244 }
0x204f   :  { %v4249_v52 = vmul.f32 0.015625, %v4245_v29 }
0x2050   :  { %v4248_v53 = vpop.xlane.xlu1 %4247 }
0x2051   :  { %v4251_v54 = vadd.f32 1e-05, %v4249_v52  ;;  %v4250_v14 = vmul.f32 0.015625, %v4248_v53 }
0x2053   :  { %5534 = vrsqrt.f32 %v4251_v54  ;;  %v4252_v20 = vadd.f32 1e-05, %v4250_v14 }
0x2055   :  { %5536 = vrsqrt.f32 %v4252_v20 }
0x205d   :  { %v5535_v56 = vpop.eup %5534 }
0x205e   :  { %v4255_v59 = vmul.f32 %v5535_v56, %v4239_v0 }
0x205f   :  { %v5537_v61 = vpop.eup %5536 }
0x2060   :  { %v4263_v62 = vmul.f32 %v4658_v19, %v4255_v59  ;;  %v4256_v63 = vmul.f32 %v5537_v61, %v4240_v37 }
0x2062   :  { %v4264_v3 = vmul.f32 %v4658_v19, %v4256_v63  ;;  %v4271_v4 = vadd.f32 %v4659_v2, %v4263_v62 }
0x2064   :  { %v4272_v5 = vadd.f32 %v4659_v2, %v4264_v3 }
0x2066   :  { %v4281_v6 = vpack.c.bf16 %v4272_v5, %v4271_v4 }
0x2068   :  { %5448 = vmatmul.mubr.msk.bf16.vlgmr.msra.gmra.mrb[132].mxu0 %vm69_vm0, %v4281_v6 }
0x213b   :  { %v4330_v49 = vpop.f32.mrb[132].mxu0 }
0x213c   :  { %v4331_v40 = vadd.f32 %v4660_v7, %v4330_v49  ;;  %v5449_v9 = vpop.f32.mrb[133].mxu0 }
0x213d   :  { %v4333_v11 = vpop.f32.mrb[134].mxu0 }
0x213e   :  { %4337 = vst [vmem:[%s7263_s18] sm:$0xff] %v4331_v40  ;;  %v4334_v12 = vadd.f32 %v4660_v7, %v4333_v11  ;;  %v5450_v13 = vpop.f32.mrb[135].mxu0 }
0x2140   :  { %4338 = vst [vmem:[%s7263_s18 + $0x8] sm:$0xff] %v4334_v12 }

</bundles_post_ra>
